<compile_context>
chip_gen: v7x
topology: tpu7x:2x2x1
jax: 0.10.0
libtpu: 0.0.40
codegen_flags: <defaults>
</compile_context>

<pallas_src>
import functools

import jax
import jax.numpy as jnp
from jax import lax
from jax.experimental import pallas as pl
from jax.experimental.pallas import tpu as pltpu


# ----------------------------------------------------------------------------
# Fused kernel: channel attention + spatial attention + final multiply
# (Bt batch elements per grid step).
# ----------------------------------------------------------------------------
def _lesion_kernel(w_sp_ref, x_ref, w1_ref, w2_ref, out_ref, sp_ref, *, Bt, C, H, W, K):
    # w_sp_ref : SMEM (2*K*K,)   scalar-prefetched 7x7 conv weight (OIHW flattened)
    # x_ref    : (Bt, C, HW)     lane-dense input block
    # w1_ref   : (Cr, C)         Conv2d(C, C/r, 1) weight
    # w2_ref   : (C, Cr)         Conv2d(C/r, C, 1) weight
    # out_ref  : (Bt, C, HW)
    # sp_ref   : VMEM (2*Bt, HW) f32 — rows [0:Bt] = channel-mean maps, [Bt:2Bt] = channel-max
    pad = (K - 1) // 2
    HW = H * W
    f32 = jnp.float32

    w1 = w1_ref[...].astype(f32)
    w2 = w2_ref[...].astype(f32)

    # ---- Pass 1 (per batch element): channel attention, park x_ch in out_ref, and build
    #      the stacked channel-mean / channel-max spatial maps. ----
    for b in range(Bt):
        x = x_ref[b].astype(f32)                                   # (C, HW)
        avg = jnp.mean(x, axis=1, keepdims=True)                   # (C, 1)
        mx = jnp.max(x, axis=1, keepdims=True)                     # (C, 1)
        sel = lax.broadcasted_iota(jnp.int32, (C, 2), 1) == 0
        pooled = jnp.where(sel, avg, mx)                           # (C, 2) = [avg | max]
        h = jnp.maximum(jnp.dot(w1, pooled, preferred_element_type=f32), 0.0)
        logits = jnp.dot(w2, h, preferred_element_type=f32)        # (C, 2)
        ch_att = jax.nn.sigmoid(jnp.sum(logits, axis=1, keepdims=True))   # (C, 1)
        x_ch = x * ch_att                                          # (C, HW), lane-dense
        out_ref[b] = x_ch.astype(out_ref.dtype)                    # park x_ch for pass 3
        sp_ref[b:b + 1, :] = jnp.mean(x_ch, axis=0, keepdims=True)
        sp_ref[Bt + b:Bt + b + 1, :] = jnp.max(x_ch, axis=0, keepdims=True)

    # ---- Pass 2: 7x7 SAME conv in the lane-dense flattened layout (roll + static masks).
    #      One roll per tap covers all Bt batch elements and both conv input channels. ----
    sp = sp_ref[...]                                               # (2*Bt, HW) f32
    col_id = lax.broadcasted_iota(jnp.int32, (1, HW), 1)           # flat spatial index
    if (W & (W - 1)) == 0:
        xi = jnp.bitwise_and(col_id, W - 1)                        # p mod W (pow2 fast path)
    else:
        # TODO(synk): verify vector integer-div lowering for non-power-of-two W.
        xi = col_id - (col_id // W) * W

    def _row_mask(dh):                                             # validity of source row y+dh
        if dh > 0:
            return col_id < (H - dh) * W
        if dh < 0:
            return col_id >= (-dh) * W
        return None

    def _col_mask(dw):                                             # validity of source col x+dw
        if dw > 0:
            return xi < (W - dw)
        if dw < 0:
            return xi >= (-dw)
        return None

    col_masks = [_col_mask(kw - pad) for kw in range(K)]
    is_mean_row = lax.broadcasted_iota(jnp.int32, (2 * Bt, 1), 0) < Bt

    accs = [jnp.zeros((2 * Bt, HW), f32) for _ in range(4)]        # 4 accumulators for VALU ILP
    t = 0
    for kh in range(K):
        dh = kh - pad
        row_mask = _row_mask(dh)
        for kw in range(K):
            dw = kw - pad
            s = dh * W + dw                                        # flat source offset
            shifted = sp if s == 0 else pltpu.roll(sp, (-s) % HW, axis=1)
            masks = [m for m in (row_mask, col_masks[kw]) if m is not None]
            if masks:
                ok = masks[0] if len(masks) == 1 else (masks[0] & masks[1])
                shifted = jnp.where(ok, shifted, 0.0)              # zero-padded SAME conv
            w_mean = w_sp_ref[kh * K + kw]                         # weight for mean channel
            w_max = w_sp_ref[K * K + kh * K + kw]                  # weight for max channel
            wv = jnp.where(is_mean_row, w_mean, w_max)             # (2*Bt, 1) per-row weight
            accs[t % 4] = accs[t % 4] + shifted * wv
            t += 1
    acc = (accs[0] + accs[1]) + (accs[2] + accs[3])                # (2*Bt, HW)
    att = jax.nn.sigmoid(acc[:Bt, :] + acc[Bt:, :])                # (Bt, HW) spatial attention

    # ---- Pass 3: final multiply (x_ch was parked in out_ref). ----
    for b in range(Bt):
        x_ch = out_ref[b].astype(f32)                              # (C, HW)
        out_ref[b] = (x_ch * att[b:b + 1, :]).astype(out_ref.dtype)


# ----------------------------------------------------------------------------
# Wrapper
# ----------------------------------------------------------------------------
def lesion_attention(x, w1, w2, w_spatial, *, kernel_size=7, block_batch=None):
    """x: (B, C, H, W); w1: (C//r, C); w2: (C, C//r); w_spatial: (1, 2, K, K)."""
    B, C, H, W = x.shape
    Cr = w1.shape[0]
    K = kernel_size
    assert K % 2 == 1, "kernel_size must be odd"
    HW = H * W
    assert HW % 128 == 0, "lane-dense layout expects H*W to be a multiple of 128"
    Hp_unused = None  # (padded 2D scratch removed in v2)

    itemsize = x.dtype.itemsize
    per_b = C * HW * itemsize                                      # bytes of one batch element

    if block_batch is None:
        vmem_budget = 24 << 20                    # conservative vs v7x 64 MiB / 32 MiB scoped
        max_bt = max(1, vmem_budget // max(1, 5 * per_b))
        target_bt = max(1, (1 << 20) // max(1, per_b))             # aim for >= ~1 MiB blocks
        cap = max(1, min(max_bt, target_bt, 8))                    # cap: conv-phase reg pressure
        bt = 1
        for d in range(1, B + 1):
            if B % d == 0 and d <= cap:
                bt = d
        # v7x has 2 TensorCores: keep >=2 grid steps when the half-size block is still big.
        if B // bt == 1 and B % 2 == 0 and bt % 2 == 0 and (bt // 2) * per_b >= (256 << 10):
            bt //= 2
    else:
        bt = block_batch
    assert B % bt == 0, "block_batch must divide the batch size"

    x_flat = x.reshape(B, C, HW)                   # lane-dense layout (free for contiguous x)
    w_flat = w_spatial.reshape(-1).astype(jnp.float32)   # (2*K*K,), OIHW order -> SMEM prefetch

    block_bytes = bt * C * HW * itemsize
    vmem_limit = int(min(64 << 20,
                         max(8 << 20, 5 * block_bytes + 2 * bt * HW * 4 + (2 << 20))))

    out_flat = pl.pallas_call(
        functools.partial(_lesion_kernel, Bt=bt, C=C, H=H, W=W, K=K),
        out_shape=jax.ShapeDtypeStruct((B, C, HW), x.dtype),
        grid_spec=pltpu.PrefetchScalarGridSpec(
            num_scalar_prefetch=1,                 # conv weight lands in SMEM
            grid=(B // bt,),
            in_specs=[
                pl.BlockSpec((bt, C, HW), lambda g, w: (g, 0, 0)),
                pl.BlockSpec((Cr, C), lambda g, w: (0, 0)),
                pl.BlockSpec((C, Cr), lambda g, w: (0, 0)),
            ],
            out_specs=pl.BlockSpec((bt, C, HW), lambda g, w: (g, 0, 0)),
            scratch_shapes=[
                pltpu.VMEM((2 * bt, HW), jnp.float32),   # stacked mean/max spatial maps
            ],
        ),
        compiler_params=pltpu.CompilerParams(
            dimension_semantics=("parallel",),
            vmem_limit_bytes=vmem_limit,
        ),
    )(w_flat, x_flat, w1.astype(jnp.float32), w2.astype(jnp.float32))

    return out_flat.reshape(B, C, H, W)


# ----------------------------------------------------------------------------
# Pure-JAX reference (for correctness check)
# ----------------------------------------------------------------------------
def reference(x, w1, w2, w_spatial):
    avg = jnp.mean(x, axis=(2, 3), keepdims=True)
    mx = jnp.max(x, axis=(2, 3), keepdims=True)

    def mlp(v):
        h = jnp.maximum(jnp.einsum("rc,bcij->brij", w1, v), 0.0)
        return jnp.einsum("cr,brij->bcij", w2, h)

    channel_att = jax.nn.sigmoid(mlp(avg) + mlp(mx))
    x_channel = x * channel_att
    sp = jnp.stack([jnp.mean(x_channel, axis=1), jnp.max(x_channel, axis=1)], axis=1)
    conv = lax.conv_general_dilated(
        sp, w_spatial, window_strides=(1, 1), padding="SAME",
        dimension_numbers=("NCHW", "OIHW", "NCHW"))
    spatial_att = jax.nn.sigmoid(conv)
    return x_channel * spatial_att


if __name__ == "__main__":
    B, C, H, W = 2, 16, 16, 16
    reduction_ratio, kernel_size = 8, 7
    Cr = C // reduction_ratio

    key = jax.random.PRNGKey(0)
    k1, k2, k3, kx = jax.random.split(key, 4)
    # deterministic synthetic parameters (shapes from nn.Conv2d weights, bias=False)
    w1 = jax.random.normal(k1, (Cr, C), jnp.float32) * 0.1          # Conv2d(C, C/r, 1)
    w2 = jax.random.normal(k2, (C, Cr), jnp.float32) * 0.1          # Conv2d(C/r, C, 1)
    w_spatial = jax.random.normal(k3, (1, 2, kernel_size, kernel_size),
                                  jnp.float32) * 0.1                # Conv2d(2, 1, 7)
    x = jax.random.normal(kx, (B, C, H, W), jnp.float32)

    out = lesion_attention(x, w1, w2, w_spatial, kernel_size=kernel_size)
    out = jax.block_until_ready(out)

    ref = jax.block_until_ready(reference(x, w1, w2, w_spatial))
    assert out.shape == (B, C, H, W)
    assert jnp.max(jnp.abs(out - ref)) < 1e-4, "mismatch vs. reference"

    print("KERNEL_OK")
</pallas_src>

<mosaic_0001>
module attributes {stable_mosaic.version = 11 : i64} {
  func.func @_lesion_kernel(%arg0: i32, %arg1: memref<98xf32, #tpu.memory_space<smem>>, %arg2: memref<2x16x256xf32, #tpu.memory_space<vmem>>, %arg3: memref<2x16xf32, #tpu.memory_space<vmem>>, %arg4: memref<16x2xf32, #tpu.memory_space<vmem>>, %arg5: memref<2x16x256xf32, #tpu.memory_space<vmem>>, %arg6: memref<4x256xf32, #tpu.memory_space<vmem>>) attributes {dimension_semantics = [#tpu.dimension_semantics<parallel>], iteration_bounds = array<i64: 1>, scalar_prefetch = 1 : i64, scratch_operands = 1 : i64, tpu.core_type = #tpu.core_type<tc>, window_params = [{transform_indices = @transform_0, window_bounds = array<i64: 2, 16, 256>}, {pipeline_mode = #tpu.pipeline_mode<synchronous>, transform_indices = @transform_1, window_bounds = array<i64: 2, 16>}, {pipeline_mode = #tpu.pipeline_mode<synchronous>, transform_indices = @transform_2, window_bounds = array<i64: 16, 2>}, {transform_indices = @transform_3, window_bounds = array<i64: 2, 16, 256>}]} {
    %c0 = arith.constant 0 : index
    %c0_0 = arith.constant 0 : index
    %0 = vector.load %arg3[%c0, %c0_0] : memref<2x16xf32, #tpu.memory_space<vmem>>, vector<2x16xf32>
    %c0_1 = arith.constant 0 : index
    %c0_2 = arith.constant 0 : index
    %1 = vector.load %arg4[%c0_1, %c0_2] : memref<16x2xf32, #tpu.memory_space<vmem>>, vector<16x2xf32>
    %c0_3 = arith.constant 0 : index
    %c0_4 = arith.constant 0 : index
    %c0_5 = arith.constant 0 : index
    %2 = vector.load %arg2[%c0_3, %c0_4, %c0_5] : memref<2x16x256xf32, #tpu.memory_space<vmem>>, vector<1x16x256xf32>
    %3 = vector.shape_cast %2 : vector<1x16x256xf32> to vector<16x256xf32>
    %cst = arith.constant dense<0.000000e+00> : vector<16xf32>
    %4 = vector.multi_reduction <add>, %3, %cst [1] : vector<16x256xf32> to vector<16xf32>
    %5 = vector.shape_cast %4 : vector<16xf32> to vector<16x1xf32>
    %cst_6 = arith.constant 2.560000e+02 : f32
    %6 = vector.broadcast %cst_6 : f32 to vector<16x1xf32>
    %7 = arith.divf %5, %6 : vector<16x1xf32>
    %cst_7 = arith.constant dense<0xFF800000> : vector<16xf32>
    %8 = vector.multi_reduction <maximumf>, %3, %cst_7 [1] : vector<16x256xf32> to vector<16xf32>
    %9 = vector.shape_cast %8 : vector<16xf32> to vector<16x1xf32>
    %10 = tpu.iota {dimensions = array<i32: 1>} : vector<16x2xi32>
    %c0_i32 = arith.constant 0 : i32
    %11 = vector.broadcast %c0_i32 : i32 to vector<16x2xi32>
    %12 = arith.cmpi eq, %10, %11 : vector<16x2xi32>
    %13 = vector.shape_cast %7 : vector<16x1xf32> to vector<16x1xf32>
    %14 = vector.broadcast %13 : vector<16x1xf32> to vector<16x2xf32>
    %15 = vector.shape_cast %9 : vector<16x1xf32> to vector<16x1xf32>
    %16 = vector.broadcast %15 : vector<16x1xf32> to vector<16x2xf32>
    %17 = arith.select %12, %14, %16 : vector<16x2xi1>, vector<16x2xf32>
    %cst_8 = arith.constant dense<0.000000e+00> : vector<2x2xf32>
    %18 = tpu.matmul %0, %17, %cst_8 {dimension_numbers = #tpu.dot_dimension_numbers<[1], [0], [0], [1], [0, 0, 1, 1], [], []>} : vector<2x16xf32>, vector<16x2xf32>, vector<2x2xf32> -> vector<2x2xf32>
    %cst_9 = arith.constant 0.000000e+00 : f32
    %19 = vector.broadcast %cst_9 : f32 to vector<2x2xf32>
    %20 = arith.maximumf %18, %19 : vector<2x2xf32>
    %cst_10 = arith.constant dense<0.000000e+00> : vector<16x2xf32>
    %21 = tpu.matmul %1, %20, %cst_10 {dimension_numbers = #tpu.dot_dimension_numbers<[1], [0], [0], [1], [0, 0, 1, 1], [], []>} : vector<16x2xf32>, vector<2x2xf32>, vector<16x2xf32> -> vector<16x2xf32>
    %cst_11 = arith.constant dense<0.000000e+00> : vector<16xf32>
    %22 = vector.multi_reduction <add>, %21, %cst_11 [1] : vector<16x2xf32> to vector<16xf32>
    %23 = vector.shape_cast %22 : vector<16xf32> to vector<16x1xf32>
    %24 = arith.negf %23 : vector<16x1xf32>
    %25 = math.exp %24 : vector<16x1xf32>
    %cst_12 = arith.constant 1.000000e+00 : f32
    %26 = vector.broadcast %cst_12 : f32 to vector<16x1xf32>
    %27 = arith.addf %26, %25 : vector<16x1xf32>
    %28 = arith.divf %26, %27 : vector<16x1xf32>
    %29 = vector.broadcast %28 : vector<16x1xf32> to vector<16x256xf32>
    %30 = arith.mulf %3, %29 : vector<16x256xf32>
    %c0_13 = arith.constant 0 : index
    %c0_14 = arith.constant 0 : index
    %c0_15 = arith.constant 0 : index
    %31 = vector.load %arg5[%c0_13, %c0_14, %c0_15] : memref<2x16x256xf32, #tpu.memory_space<vmem>>, vector<1x16x256xf32>
    %32 = vector.shape_cast %31 : vector<1x16x256xf32> to vector<16x256xf32>
    %33 = vector.shape_cast %30 : vector<16x256xf32> to vector<1x16x256xf32>
    tpu.vector_store %arg5[%c0_13, %c0_14, %c0_15], %33 {strides = array<i32>} : memref<2x16x256xf32, #tpu.memory_space<vmem>>, vector<1x16x256xf32>,
    %cst_16 = arith.constant dense<0.000000e+00> : vector<256xf32>
    %34 = vector.multi_reduction <add>, %30, %cst_16 [0] : vector<16x256xf32> to vector<256xf32>
    %35 = vector.shape_cast %34 : vector<256xf32> to vector<1x256xf32>
    %cst_17 = arith.constant 1.600000e+01 : f32
    %36 = vector.broadcast %cst_17 : f32 to vector<1x256xf32>
    %37 = arith.divf %35, %36 : vector<1x256xf32>
    %c0_18 = arith.constant 0 : index
    %c0_19 = arith.constant 0 : index
    %38 = vector.load %arg6[%c0_18, %c0_19] : memref<4x256xf32, #tpu.memory_space<vmem>>, vector<1x256xf32>
    tpu.vector_store %arg6[%c0_18, %c0_19], %37 {strides = array<i32>} : memref<4x256xf32, #tpu.memory_space<vmem>>, vector<1x256xf32>,
    %cst_20 = arith.constant dense<0xFF800000> : vector<256xf32>
    %39 = vector.multi_reduction <maximumf>, %30, %cst_20 [0] : vector<16x256xf32> to vector<256xf32>
    %40 = vector.shape_cast %39 : vector<256xf32> to vector<1x256xf32>
    %c2 = arith.constant 2 : index
    %c0_21 = arith.constant 0 : index
    %41 = vector.load %arg6[%c2, %c0_21] : memref<4x256xf32, #tpu.memory_space<vmem>>, vector<1x256xf32>
    tpu.vector_store %arg6[%c2, %c0_21], %40 {strides = array<i32>} : memref<4x256xf32, #tpu.memory_space<vmem>>, vector<1x256xf32>,
    %c1 = arith.constant 1 : index
    %c0_22 = arith.constant 0 : index
    %c0_23 = arith.constant 0 : index
    %42 = vector.load %arg2[%c1, %c0_22, %c0_23] : memref<2x16x256xf32, #tpu.memory_space<vmem>>, vector<1x16x256xf32>
    %43 = vector.shape_cast %42 : vector<1x16x256xf32> to vector<16x256xf32>
    %cst_24 = arith.constant dense<0.000000e+00> : vector<16xf32>
    %44 = vector.multi_reduction <add>, %43, %cst_24 [1] : vector<16x256xf32> to vector<16xf32>
    %45 = vector.shape_cast %44 : vector<16xf32> to vector<16x1xf32>
    %cst_25 = arith.constant 2.560000e+02 : f32
    %46 = vector.broadcast %cst_25 : f32 to vector<16x1xf32>
    %47 = arith.divf %45, %46 : vector<16x1xf32>
    %cst_26 = arith.constant dense<0xFF800000> : vector<16xf32>
    %48 = vector.multi_reduction <maximumf>, %43, %cst_26 [1] : vector<16x256xf32> to vector<16xf32>
    %49 = vector.shape_cast %48 : vector<16xf32> to vector<16x1xf32>
    %50 = tpu.iota {dimensions = array<i32: 1>} : vector<16x2xi32>
    %c0_i32_27 = arith.constant 0 : i32
    %51 = vector.broadcast %c0_i32_27 : i32 to vector<16x2xi32>
    %52 = arith.cmpi eq, %50, %51 : vector<16x2xi32>
    %53 = vector.shape_cast %47 : vector<16x1xf32> to vector<16x1xf32>
    %54 = vector.broadcast %53 : vector<16x1xf32> to vector<16x2xf32>
    %55 = vector.shape_cast %49 : vector<16x1xf32> to vector<16x1xf32>
    %56 = vector.broadcast %55 : vector<16x1xf32> to vector<16x2xf32>
    %57 = arith.select %52, %54, %56 : vector<16x2xi1>, vector<16x2xf32>
    %cst_28 = arith.constant dense<0.000000e+00> : vector<2x2xf32>
    %58 = tpu.matmul %0, %57, %cst_28 {dimension_numbers = #tpu.dot_dimension_numbers<[1], [0], [0], [1], [0, 0, 1, 1], [], []>} : vector<2x16xf32>, vector<16x2xf32>, vector<2x2xf32> -> vector<2x2xf32>
    %cst_29 = arith.constant 0.000000e+00 : f32
    %59 = vector.broadcast %cst_29 : f32 to vector<2x2xf32>
    %60 = arith.maximumf %58, %59 : vector<2x2xf32>
    %cst_30 = arith.constant dense<0.000000e+00> : vector<16x2xf32>
    %61 = tpu.matmul %1, %60, %cst_30 {dimension_numbers = #tpu.dot_dimension_numbers<[1], [0], [0], [1], [0, 0, 1, 1], [], []>} : vector<16x2xf32>, vector<2x2xf32>, vector<16x2xf32> -> vector<16x2xf32>
    %cst_31 = arith.constant dense<0.000000e+00> : vector<16xf32>
    %62 = vector.multi_reduction <add>, %61, %cst_31 [1] : vector<16x2xf32> to vector<16xf32>
    %63 = vector.shape_cast %62 : vector<16xf32> to vector<16x1xf32>
    %64 = arith.negf %63 : vector<16x1xf32>
    %65 = math.exp %64 : vector<16x1xf32>
    %cst_32 = arith.constant 1.000000e+00 : f32
    %66 = vector.broadcast %cst_32 : f32 to vector<16x1xf32>
    %67 = arith.addf %66, %65 : vector<16x1xf32>
    %68 = arith.divf %66, %67 : vector<16x1xf32>
    %69 = vector.broadcast %68 : vector<16x1xf32> to vector<16x256xf32>
    %70 = arith.mulf %43, %69 : vector<16x256xf32>
    %c1_33 = arith.constant 1 : index
    %c0_34 = arith.constant 0 : index
    %c0_35 = arith.constant 0 : index
    %71 = vector.load %arg5[%c1_33, %c0_34, %c0_35] : memref<2x16x256xf32, #tpu.memory_space<vmem>>, vector<1x16x256xf32>
    %72 = vector.shape_cast %71 : vector<1x16x256xf32> to vector<16x256xf32>
    %73 = vector.shape_cast %70 : vector<16x256xf32> to vector<1x16x256xf32>
    tpu.vector_store %arg5[%c1_33, %c0_34, %c0_35], %73 {strides = array<i32>} : memref<2x16x256xf32, #tpu.memory_space<vmem>>, vector<1x16x256xf32>,
    %cst_36 = arith.constant dense<0.000000e+00> : vector<256xf32>
    %74 = vector.multi_reduction <add>, %70, %cst_36 [0] : vector<16x256xf32> to vector<256xf32>
    %75 = vector.shape_cast %74 : vector<256xf32> to vector<1x256xf32>
    %cst_37 = arith.constant 1.600000e+01 : f32
    %76 = vector.broadcast %cst_37 : f32 to vector<1x256xf32>
    %77 = arith.divf %75, %76 : vector<1x256xf32>
    %c1_38 = arith.constant 1 : index
    %c0_39 = arith.constant 0 : index
    %78 = vector.load %arg6[%c1_38, %c0_39] : memref<4x256xf32, #tpu.memory_space<vmem>>, vector<1x256xf32>
    tpu.vector_store %arg6[%c1_38, %c0_39], %77 {strides = array<i32>} : memref<4x256xf32, #tpu.memory_space<vmem>>, vector<1x256xf32>,
    %cst_40 = arith.constant dense<0xFF800000> : vector<256xf32>
    %79 = vector.multi_reduction <maximumf>, %70, %cst_40 [0] : vector<16x256xf32> to vector<256xf32>
    %80 = vector.shape_cast %79 : vector<256xf32> to vector<1x256xf32>
    %c3 = arith.constant 3 : index
    %c0_41 = arith.constant 0 : index
    %81 = vector.load %arg6[%c3, %c0_41] : memref<4x256xf32, #tpu.memory_space<vmem>>, vector<1x256xf32>
    tpu.vector_store %arg6[%c3, %c0_41], %80 {strides = array<i32>} : memref<4x256xf32, #tpu.memory_space<vmem>>, vector<1x256xf32>,
    %c0_42 = arith.constant 0 : index
    %c0_43 = arith.constant 0 : index
    %82 = vector.load %arg6[%c0_42, %c0_43] : memref<4x256xf32, #tpu.memory_space<vmem>>, vector<4x256xf32>
    %83 = tpu.iota {dimensions = array<i32: 1>} : vector<1x256xi32>
    %c15_i32 = arith.constant 15 : i32
    %84 = vector.broadcast %c15_i32 : i32 to vector<1x256xi32>
    %85 = arith.andi %83, %84 : vector<1x256xi32>
    %c3_i32 = arith.constant 3 : i32
    %86 = vector.broadcast %c3_i32 : i32 to vector<1x256xi32>
    %87 = arith.cmpi sge, %85, %86 : vector<1x256xi32>
    %c2_i32 = arith.constant 2 : i32
    %88 = vector.broadcast %c2_i32 : i32 to vector<1x256xi32>
    %89 = arith.cmpi sge, %85, %88 : vector<1x256xi32>
    %c1_i32 = arith.constant 1 : i32
    %90 = vector.broadcast %c1_i32 : i32 to vector<1x256xi32>
    %91 = arith.cmpi sge, %85, %90 : vector<1x256xi32>
    %c15_i32_44 = arith.constant 15 : i32
    %92 = vector.broadcast %c15_i32_44 : i32 to vector<1x256xi32>
    %93 = arith.cmpi slt, %85, %92 : vector<1x256xi32>
    %c14_i32 = arith.constant 14 : i32
    %94 = vector.broadcast %c14_i32 : i32 to vector<1x256xi32>
    %95 = arith.cmpi slt, %85, %94 : vector<1x256xi32>
    %c13_i32 = arith.constant 13 : i32
    %96 = vector.broadcast %c13_i32 : i32 to vector<1x256xi32>
    %97 = arith.cmpi slt, %85, %96 : vector<1x256xi32>
    %98 = tpu.iota {dimensions = array<i32: 0>} : vector<4x1xi32>
    %c2_i32_45 = arith.constant 2 : i32
    %99 = vector.broadcast %c2_i32_45 : i32 to vector<4x1xi32>
    %100 = arith.cmpi slt, %98, %99 : vector<4x1xi32>
    %cst_46 = arith.constant 0.000000e+00 : f32
    %101 = vector.broadcast %cst_46 : f32 to vector<4x256xf32>
    %cst_47 = arith.constant 0.000000e+00 : f32
    %102 = vector.broadcast %cst_47 : f32 to vector<4x256xf32>
    %cst_48 = arith.constant 0.000000e+00 : f32
    %103 = vector.broadcast %cst_48 : f32 to vector<4x256xf32>
    %cst_49 = arith.constant 0.000000e+00 : f32
    %104 = vector.broadcast %cst_49 : f32 to vector<4x256xf32>
    %c48_i32 = arith.constant 48 : i32
    %105 = vector.broadcast %c48_i32 : i32 to vector<1x256xi32>
    %106 = arith.cmpi sge, %83, %105 : vector<1x256xi32>
    %c51_i32 = arith.constant 51 : i32
    %107 = tpu.dynamic_rotate %82 by %c51_i32 dim 1 : vector<4x256xf32>, i32 -> vector<4x256xf32>
    %108 = arith.andi %106, %87 : vector<1x256xi1>
    %cst_50 = arith.constant 0.000000e+00 : f32
    %109 = vector.shape_cast %108 : vector<1x256xi1> to vector<1x256xi1>
    %110 = vector.broadcast %109 : vector<1x256xi1> to vector<4x256xi1>
    %111 = vector.broadcast %cst_50 : f32 to vector<4x256xf32>
    %112 = arith.select %110, %107, %111 : vector<4x256xi1>, vector<4x256xf32>
    %c0_51 = arith.constant 0 : index
    %113 = memref.load %arg1[%c0_51] : memref<98xf32, #tpu.memory_space<smem>>
    %c49 = arith.constant 49 : index
    %114 = memref.load %arg1[%c49] : memref<98xf32, #tpu.memory_space<smem>>
    %115 = vector.broadcast %113 : f32 to vector<4x1xf32>
    %116 = vector.broadcast %114 : f32 to vector<4x1xf32>
    %117 = arith.select %100, %115, %116 : vector<4x1xi1>, vector<4x1xf32>
    %118 = vector.broadcast %117 : vector<4x1xf32> to vector<4x256xf32>
    %119 = arith.mulf %112, %118 : vector<4x256xf32>
    %120 = arith.addf %101, %119 : vector<4x256xf32>
    %c50_i32 = arith.constant 50 : i32
    %121 = tpu.dynamic_rotate %82 by %c50_i32 dim 1 : vector<4x256xf32>, i32 -> vector<4x256xf32>
    %122 = arith.andi %106, %89 : vector<1x256xi1>
    %cst_52 = arith.constant 0.000000e+00 : f32
    %123 = vector.shape_cast %122 : vector<1x256xi1> to vector<1x256xi1>
    %124 = vector.broadcast %123 : vector<1x256xi1> to vector<4x256xi1>
    %125 = vector.broadcast %cst_52 : f32 to vector<4x256xf32>
    %126 = arith.select %124, %121, %125 : vector<4x256xi1>, vector<4x256xf32>
    %c1_53 = arith.constant 1 : index
    %127 = memref.load %arg1[%c1_53] : memref<98xf32, #tpu.memory_space<smem>>
    %c50 = arith.constant 50 : index
    %128 = memref.load %arg1[%c50] : memref<98xf32, #tpu.memory_space<smem>>
    %129 = vector.broadcast %127 : f32 to vector<4x1xf32>
    %130 = vector.broadcast %128 : f32 to vector<4x1xf32>
    %131 = arith.select %100, %129, %130 : vector<4x1xi1>, vector<4x1xf32>
    %132 = vector.broadcast %131 : vector<4x1xf32> to vector<4x256xf32>
    %133 = arith.mulf %126, %132 : vector<4x256xf32>
    %134 = arith.addf %102, %133 : vector<4x256xf32>
    %c49_i32 = arith.constant 49 : i32
    %135 = tpu.dynamic_rotate %82 by %c49_i32 dim 1 : vector<4x256xf32>, i32 -> vector<4x256xf32>
    %136 = arith.andi %106, %91 : vector<1x256xi1>
    %cst_54 = arith.constant 0.000000e+00 : f32
    %137 = vector.shape_cast %136 : vector<1x256xi1> to vector<1x256xi1>
    %138 = vector.broadcast %137 : vector<1x256xi1> to vector<4x256xi1>
    %139 = vector.broadcast %cst_54 : f32 to vector<4x256xf32>
    %140 = arith.select %138, %135, %139 : vector<4x256xi1>, vector<4x256xf32>
    %c2_55 = arith.constant 2 : index
    %141 = memref.load %arg1[%c2_55] : memref<98xf32, #tpu.memory_space<smem>>
    %c51 = arith.constant 51 : index
    %142 = memref.load %arg1[%c51] : memref<98xf32, #tpu.memory_space<smem>>
    %143 = vector.broadcast %141 : f32 to vector<4x1xf32>
    %144 = vector.broadcast %142 : f32 to vector<4x1xf32>
    %145 = arith.select %100, %143, %144 : vector<4x1xi1>, vector<4x1xf32>
    %146 = vector.broadcast %145 : vector<4x1xf32> to vector<4x256xf32>
    %147 = arith.mulf %140, %146 : vector<4x256xf32>
    %148 = arith.addf %103, %147 : vector<4x256xf32>
    %c48_i32_56 = arith.constant 48 : i32
    %149 = tpu.dynamic_rotate %82 by %c48_i32_56 dim 1 : vector<4x256xf32>, i32 -> vector<4x256xf32>
    %cst_57 = arith.constant 0.000000e+00 : f32
    %150 = vector.shape_cast %106 : vector<1x256xi1> to vector<1x256xi1>
    %151 = vector.broadcast %150 : vector<1x256xi1> to vector<4x256xi1>
    %152 = vector.broadcast %cst_57 : f32 to vector<4x256xf32>
    %153 = arith.select %151, %149, %152 : vector<4x256xi1>, vector<4x256xf32>
    %c3_58 = arith.constant 3 : index
    %154 = memref.load %arg1[%c3_58] : memref<98xf32, #tpu.memory_space<smem>>
    %c52 = arith.constant 52 : index
    %155 = memref.load %arg1[%c52] : memref<98xf32, #tpu.memory_space<smem>>
    %156 = vector.broadcast %154 : f32 to vector<4x1xf32>
    %157 = vector.broadcast %155 : f32 to vector<4x1xf32>
    %158 = arith.select %100, %156, %157 : vector<4x1xi1>, vector<4x1xf32>
    %159 = vector.broadcast %158 : vector<4x1xf32> to vector<4x256xf32>
    %160 = arith.mulf %153, %159 : vector<4x256xf32>
    %161 = arith.addf %104, %160 : vector<4x256xf32>
    %c47_i32 = arith.constant 47 : i32
    %162 = tpu.dynamic_rotate %82 by %c47_i32 dim 1 : vector<4x256xf32>, i32 -> vector<4x256xf32>
    %163 = arith.andi %106, %93 : vector<1x256xi1>
    %cst_59 = arith.constant 0.000000e+00 : f32
    %164 = vector.shape_cast %163 : vector<1x256xi1> to vector<1x256xi1>
    %165 = vector.broadcast %164 : vector<1x256xi1> to vector<4x256xi1>
    %166 = vector.broadcast %cst_59 : f32 to vector<4x256xf32>
    %167 = arith.select %165, %162, %166 : vector<4x256xi1>, vector<4x256xf32>
    %c4 = arith.constant 4 : index
    %168 = memref.load %arg1[%c4] : memref<98xf32, #tpu.memory_space<smem>>
    %c53 = arith.constant 53 : index
    %169 = memref.load %arg1[%c53] : memref<98xf32, #tpu.memory_space<smem>>
    %170 = vector.broadcast %168 : f32 to vector<4x1xf32>
    %171 = vector.broadcast %169 : f32 to vector<4x1xf32>
    %172 = arith.select %100, %170, %171 : vector<4x1xi1>, vector<4x1xf32>
    %173 = vector.broadcast %172 : vector<4x1xf32> to vector<4x256xf32>
    %174 = arith.mulf %167, %173 : vector<4x256xf32>
    %175 = arith.addf %120, %174 : vector<4x256xf32>
    %c46_i32 = arith.constant 46 : i32
    %176 = tpu.dynamic_rotate %82 by %c46_i32 dim 1 : vector<4x256xf32>, i32 -> vector<4x256xf32>
    %177 = arith.andi %106, %95 : vector<1x256xi1>
    %cst_60 = arith.constant 0.000000e+00 : f32
    %178 = vector.shape_cast %177 : vector<1x256xi1> to vector<1x256xi1>
    %179 = vector.broadcast %178 : vector<1x256xi1> to vector<4x256xi1>
    %180 = vector.broadcast %cst_60 : f32 to vector<4x256xf32>
    %181 = arith.select %179, %176, %180 : vector<4x256xi1>, vector<4x256xf32>
    %c5 = arith.constant 5 : index
    %182 = memref.load %arg1[%c5] : memref<98xf32, #tpu.memory_space<smem>>
    %c54 = arith.constant 54 : index
    %183 = memref.load %arg1[%c54] : memref<98xf32, #tpu.memory_space<smem>>
    %184 = vector.broadcast %182 : f32 to vector<4x1xf32>
    %185 = vector.broadcast %183 : f32 to vector<4x1xf32>
    %186 = arith.select %100, %184, %185 : vector<4x1xi1>, vector<4x1xf32>
    %187 = vector.broadcast %186 : vector<4x1xf32> to vector<4x256xf32>
    %188 = arith.mulf %181, %187 : vector<4x256xf32>
    %189 = arith.addf %134, %188 : vector<4x256xf32>
    %c45_i32 = arith.constant 45 : i32
    %190 = tpu.dynamic_rotate %82 by %c45_i32 dim 1 : vector<4x256xf32>, i32 -> vector<4x256xf32>
    %191 = arith.andi %106, %97 : vector<1x256xi1>
    %cst_61 = arith.constant 0.000000e+00 : f32
    %192 = vector.shape_cast %191 : vector<1x256xi1> to vector<1x256xi1>
    %193 = vector.broadcast %192 : vector<1x256xi1> to vector<4x256xi1>
    %194 = vector.broadcast %cst_61 : f32 to vector<4x256xf32>
    %195 = arith.select %193, %190, %194 : vector<4x256xi1>, vector<4x256xf32>
    %c6 = arith.constant 6 : index
    %196 = memref.load %arg1[%c6] : memref<98xf32, #tpu.memory_space<smem>>
    %c55 = arith.constant 55 : index
    %197 = memref.load %arg1[%c55] : memref<98xf32, #tpu.memory_space<smem>>
    %198 = vector.broadcast %196 : f32 to vector<4x1xf32>
    %199 = vector.broadcast %197 : f32 to vector<4x1xf32>
    %200 = arith.select %100, %198, %199 : vector<4x1xi1>, vector<4x1xf32>
    %201 = vector.broadcast %200 : vector<4x1xf32> to vector<4x256xf32>
    %202 = arith.mulf %195, %201 : vector<4x256xf32>
    %203 = arith.addf %148, %202 : vector<4x256xf32>
    %c32_i32 = arith.constant 32 : i32
    %204 = vector.broadcast %c32_i32 : i32 to vector<1x256xi32>
    %205 = arith.cmpi sge, %83, %204 : vector<1x256xi32>
    %c35_i32 = arith.constant 35 : i32
    %206 = tpu.dynamic_rotate %82 by %c35_i32 dim 1 : vector<4x256xf32>, i32 -> vector<4x256xf32>
    %207 = arith.andi %205, %87 : vector<1x256xi1>
    %cst_62 = arith.constant 0.000000e+00 : f32
    %208 = vector.shape_cast %207 : vector<1x256xi1> to vector<1x256xi1>
    %209 = vector.broadcast %208 : vector<1x256xi1> to vector<4x256xi1>
    %210 = vector.broadcast %cst_62 : f32 to vector<4x256xf32>
    %211 = arith.select %209, %206, %210 : vector<4x256xi1>, vector<4x256xf32>
    %c7 = arith.constant 7 : index
    %212 = memref.load %arg1[%c7] : memref<98xf32, #tpu.memory_space<smem>>
    %c56 = arith.constant 56 : index
    %213 = memref.load %arg1[%c56] : memref<98xf32, #tpu.memory_space<smem>>
    %214 = vector.broadcast %212 : f32 to vector<4x1xf32>
    %215 = vector.broadcast %213 : f32 to vector<4x1xf32>
    %216 = arith.select %100, %214, %215 : vector<4x1xi1>, vector<4x1xf32>
    %217 = vector.broadcast %216 : vector<4x1xf32> to vector<4x256xf32>
    %218 = arith.mulf %211, %217 : vector<4x256xf32>
    %219 = arith.addf %161, %218 : vector<4x256xf32>
    %c34_i32 = arith.constant 34 : i32
    %220 = tpu.dynamic_rotate %82 by %c34_i32 dim 1 : vector<4x256xf32>, i32 -> vector<4x256xf32>
    %221 = arith.andi %205, %89 : vector<1x256xi1>
    %cst_63 = arith.constant 0.000000e+00 : f32
    %222 = vector.shape_cast %221 : vector<1x256xi1> to vector<1x256xi1>
    %223 = vector.broadcast %222 : vector<1x256xi1> to vector<4x256xi1>
    %224 = vector.broadcast %cst_63 : f32 to vector<4x256xf32>
    %225 = arith.select %223, %220, %224 : vector<4x256xi1>, vector<4x256xf32>
    %c8 = arith.constant 8 : index
    %226 = memref.load %arg1[%c8] : memref<98xf32, #tpu.memory_space<smem>>
    %c57 = arith.constant 57 : index
    %227 = memref.load %arg1[%c57] : memref<98xf32, #tpu.memory_space<smem>>
    %228 = vector.broadcast %226 : f32 to vector<4x1xf32>
    %229 = vector.broadcast %227 : f32 to vector<4x1xf32>
    %230 = arith.select %100, %228, %229 : vector<4x1xi1>, vector<4x1xf32>
    %231 = vector.broadcast %230 : vector<4x1xf32> to vector<4x256xf32>
    %232 = arith.mulf %225, %231 : vector<4x256xf32>
    %233 = arith.addf %175, %232 : vector<4x256xf32>
    %c33_i32 = arith.constant 33 : i32
    %234 = tpu.dynamic_rotate %82 by %c33_i32 dim 1 : vector<4x256xf32>, i32 -> vector<4x256xf32>
    %235 = arith.andi %205, %91 : vector<1x256xi1>
    %cst_64 = arith.constant 0.000000e+00 : f32
    %236 = vector.shape_cast %235 : vector<1x256xi1> to vector<1x256xi1>
    %237 = vector.broadcast %236 : vector<1x256xi1> to vector<4x256xi1>
    %238 = vector.broadcast %cst_64 : f32 to vector<4x256xf32>
    %239 = arith.select %237, %234, %238 : vector<4x256xi1>, vector<4x256xf32>
    %c9 = arith.constant 9 : index
    %240 = memref.load %arg1[%c9] : memref<98xf32, #tpu.memory_space<smem>>
    %c58 = arith.constant 58 : index
    %241 = memref.load %arg1[%c58] : memref<98xf32, #tpu.memory_space<smem>>
    %242 = vector.broadcast %240 : f32 to vector<4x1xf32>
    %243 = vector.broadcast %241 : f32 to vector<4x1xf32>
    %244 = arith.select %100, %242, %243 : vector<4x1xi1>, vector<4x1xf32>
    %245 = vector.broadcast %244 : vector<4x1xf32> to vector<4x256xf32>
    %246 = arith.mulf %239, %245 : vector<4x256xf32>
    %247 = arith.addf %189, %246 : vector<4x256xf32>
    %c32_i32_65 = arith.constant 32 : i32
    %248 = tpu.dynamic_rotate %82 by %c32_i32_65 dim 1 : vector<4x256xf32>, i32 -> vector<4x256xf32>
    %cst_66 = arith.constant 0.000000e+00 : f32
    %249 = vector.shape_cast %205 : vector<1x256xi1> to vector<1x256xi1>
    %250 = vector.broadcast %249 : vector<1x256xi1> to vector<4x256xi1>
    %251 = vector.broadcast %cst_66 : f32 to vector<4x256xf32>
    %252 = arith.select %250, %248, %251 : vector<4x256xi1>, vector<4x256xf32>
    %c10 = arith.constant 10 : index
    %253 = memref.load %arg1[%c10] : memref<98xf32, #tpu.memory_space<smem>>
    %c59 = arith.constant 59 : index
    %254 = memref.load %arg1[%c59] : memref<98xf32, #tpu.memory_space<smem>>
    %255 = vector.broadcast %253 : f32 to vector<4x1xf32>
    %256 = vector.broadcast %254 : f32 to vector<4x1xf32>
    %257 = arith.select %100, %255, %256 : vector<4x1xi1>, vector<4x1xf32>
    %258 = vector.broadcast %257 : vector<4x1xf32> to vector<4x256xf32>
    %259 = arith.mulf %252, %258 : vector<4x256xf32>
    %260 = arith.addf %203, %259 : vector<4x256xf32>
    %c31_i32 = arith.constant 31 : i32
    %261 = tpu.dynamic_rotate %82 by %c31_i32 dim 1 : vector<4x256xf32>, i32 -> vector<4x256xf32>
    %262 = arith.andi %205, %93 : vector<1x256xi1>
    %cst_67 = arith.constant 0.000000e+00 : f32
    %263 = vector.shape_cast %262 : vector<1x256xi1> to vector<1x256xi1>
    %264 = vector.broadcast %263 : vector<1x256xi1> to vector<4x256xi1>
    %265 = vector.broadcast %cst_67 : f32 to vector<4x256xf32>
    %266 = arith.select %264, %261, %265 : vector<4x256xi1>, vector<4x256xf32>
    %c11 = arith.constant 11 : index
    %267 = memref.load %arg1[%c11] : memref<98xf32, #tpu.memory_space<smem>>
    %c60 = arith.constant 60 : index
    %268 = memref.load %arg1[%c60] : memref<98xf32, #tpu.memory_space<smem>>
    %269 = vector.broadcast %267 : f32 to vector<4x1xf32>
    %270 = vector.broadcast %268 : f32 to vector<4x1xf32>
    %271 = arith.select %100, %269, %270 : vector<4x1xi1>, vector<4x1xf32>
    %272 = vector.broadcast %271 : vector<4x1xf32> to vector<4x256xf32>
    %273 = arith.mulf %266, %272 : vector<4x256xf32>
    %274 = arith.addf %219, %273 : vector<4x256xf32>
    %c30_i32 = arith.constant 30 : i32
    %275 = tpu.dynamic_rotate %82 by %c30_i32 dim 1 : vector<4x256xf32>, i32 -> vector<4x256xf32>
    %276 = arith.andi %205, %95 : vector<1x256xi1>
    %cst_68 = arith.constant 0.000000e+00 : f32
    %277 = vector.shape_cast %276 : vector<1x256xi1> to vector<1x256xi1>
    %278 = vector.broadcast %277 : vector<1x256xi1> to vector<4x256xi1>
    %279 = vector.broadcast %cst_68 : f32 to vector<4x256xf32>
    %280 = arith.select %278, %275, %279 : vector<4x256xi1>, vector<4x256xf32>
    %c12 = arith.constant 12 : index
    %281 = memref.load %arg1[%c12] : memref<98xf32, #tpu.memory_space<smem>>
    %c61 = arith.constant 61 : index
    %282 = memref.load %arg1[%c61] : memref<98xf32, #tpu.memory_space<smem>>
    %283 = vector.broadcast %281 : f32 to vector<4x1xf32>
    %284 = vector.broadcast %282 : f32 to vector<4x1xf32>
    %285 = arith.select %100, %283, %284 : vector<4x1xi1>, vector<4x1xf32>
    %286 = vector.broadcast %285 : vector<4x1xf32> to vector<4x256xf32>
    %287 = arith.mulf %280, %286 : vector<4x256xf32>
    %288 = arith.addf %233, %287 : vector<4x256xf32>
    %c29_i32 = arith.constant 29 : i32
    %289 = tpu.dynamic_rotate %82 by %c29_i32 dim 1 : vector<4x256xf32>, i32 -> vector<4x256xf32>
    %290 = arith.andi %205, %97 : vector<1x256xi1>
    %cst_69 = arith.constant 0.000000e+00 : f32
    %291 = vector.shape_cast %290 : vector<1x256xi1> to vector<1x256xi1>
    %292 = vector.broadcast %291 : vector<1x256xi1> to vector<4x256xi1>
    %293 = vector.broadcast %cst_69 : f32 to vector<4x256xf32>
    %294 = arith.select %292, %289, %293 : vector<4x256xi1>, vector<4x256xf32>
    %c13 = arith.constant 13 : index
    %295 = memref.load %arg1[%c13] : memref<98xf32, #tpu.memory_space<smem>>
    %c62 = arith.constant 62 : index
    %296 = memref.load %arg1[%c62] : memref<98xf32, #tpu.memory_space<smem>>
    %297 = vector.broadcast %295 : f32 to vector<4x1xf32>
    %298 = vector.broadcast %296 : f32 to vector<4x1xf32>
    %299 = arith.select %100, %297, %298 : vector<4x1xi1>, vector<4x1xf32>
    %300 = vector.broadcast %299 : vector<4x1xf32> to vector<4x256xf32>
    %301 = arith.mulf %294, %300 : vector<4x256xf32>
    %302 = arith.addf %247, %301 : vector<4x256xf32>
    %c16_i32 = arith.constant 16 : i32
    %303 = vector.broadcast %c16_i32 : i32 to vector<1x256xi32>
    %304 = arith.cmpi sge, %83, %303 : vector<1x256xi32>
    %c19_i32 = arith.constant 19 : i32
    %305 = tpu.dynamic_rotate %82 by %c19_i32 dim 1 : vector<4x256xf32>, i32 -> vector<4x256xf32>
    %306 = arith.andi %304, %87 : vector<1x256xi1>
    %cst_70 = arith.constant 0.000000e+00 : f32
    %307 = vector.shape_cast %306 : vector<1x256xi1> to vector<1x256xi1>
    %308 = vector.broadcast %307 : vector<1x256xi1> to vector<4x256xi1>
    %309 = vector.broadcast %cst_70 : f32 to vector<4x256xf32>
    %310 = arith.select %308, %305, %309 : vector<4x256xi1>, vector<4x256xf32>
    %c14 = arith.constant 14 : index
    %311 = memref.load %arg1[%c14] : memref<98xf32, #tpu.memory_space<smem>>
    %c63 = arith.constant 63 : index
    %312 = memref.load %arg1[%c63] : memref<98xf32, #tpu.memory_space<smem>>
    %313 = vector.broadcast %311 : f32 to vector<4x1xf32>
    %314 = vector.broadcast %312 : f32 to vector<4x1xf32>
    %315 = arith.select %100, %313, %314 : vector<4x1xi1>, vector<4x1xf32>
    %316 = vector.broadcast %315 : vector<4x1xf32> to vector<4x256xf32>
    %317 = arith.mulf %310, %316 : vector<4x256xf32>
    %318 = arith.addf %260, %317 : vector<4x256xf32>
    %c18_i32 = arith.constant 18 : i32
    %319 = tpu.dynamic_rotate %82 by %c18_i32 dim 1 : vector<4x256xf32>, i32 -> vector<4x256xf32>
    %320 = arith.andi %304, %89 : vector<1x256xi1>
    %cst_71 = arith.constant 0.000000e+00 : f32
    %321 = vector.shape_cast %320 : vector<1x256xi1> to vector<1x256xi1>
    %322 = vector.broadcast %321 : vector<1x256xi1> to vector<4x256xi1>
    %323 = vector.broadcast %cst_71 : f32 to vector<4x256xf32>
    %324 = arith.select %322, %319, %323 : vector<4x256xi1>, vector<4x256xf32>
    %c15 = arith.constant 15 : index
    %325 = memref.load %arg1[%c15] : memref<98xf32, #tpu.memory_space<smem>>
    %c64 = arith.constant 64 : index
    %326 = memref.load %arg1[%c64] : memref<98xf32, #tpu.memory_space<smem>>
    %327 = vector.broadcast %325 : f32 to vector<4x1xf32>
    %328 = vector.broadcast %326 : f32 to vector<4x1xf32>
    %329 = arith.select %100, %327, %328 : vector<4x1xi1>, vector<4x1xf32>
    %330 = vector.broadcast %329 : vector<4x1xf32> to vector<4x256xf32>
    %331 = arith.mulf %324, %330 : vector<4x256xf32>
    %332 = arith.addf %274, %331 : vector<4x256xf32>
    %c17_i32 = arith.constant 17 : i32
    %333 = tpu.dynamic_rotate %82 by %c17_i32 dim 1 : vector<4x256xf32>, i32 -> vector<4x256xf32>
    %334 = arith.andi %304, %91 : vector<1x256xi1>
    %cst_72 = arith.constant 0.000000e+00 : f32
    %335 = vector.shape_cast %334 : vector<1x256xi1> to vector<1x256xi1>
    %336 = vector.broadcast %335 : vector<1x256xi1> to vector<4x256xi1>
    %337 = vector.broadcast %cst_72 : f32 to vector<4x256xf32>
    %338 = arith.select %336, %333, %337 : vector<4x256xi1>, vector<4x256xf32>
    %c16 = arith.constant 16 : index
    %339 = memref.load %arg1[%c16] : memref<98xf32, #tpu.memory_space<smem>>
    %c65 = arith.constant 65 : index
    %340 = memref.load %arg1[%c65] : memref<98xf32, #tpu.memory_space<smem>>
    %341 = vector.broadcast %339 : f32 to vector<4x1xf32>
    %342 = vector.broadcast %340 : f32 to vector<4x1xf32>
    %343 = arith.select %100, %341, %342 : vector<4x1xi1>, vector<4x1xf32>
    %344 = vector.broadcast %343 : vector<4x1xf32> to vector<4x256xf32>
    %345 = arith.mulf %338, %344 : vector<4x256xf32>
    %346 = arith.addf %288, %345 : vector<4x256xf32>
    %c16_i32_73 = arith.constant 16 : i32
    %347 = tpu.dynamic_rotate %82 by %c16_i32_73 dim 1 : vector<4x256xf32>, i32 -> vector<4x256xf32>
    %cst_74 = arith.constant 0.000000e+00 : f32
    %348 = vector.shape_cast %304 : vector<1x256xi1> to vector<1x256xi1>
    %349 = vector.broadcast %348 : vector<1x256xi1> to vector<4x256xi1>
    %350 = vector.broadcast %cst_74 : f32 to vector<4x256xf32>
    %351 = arith.select %349, %347, %350 : vector<4x256xi1>, vector<4x256xf32>
    %c17 = arith.constant 17 : index
    %352 = memref.load %arg1[%c17] : memref<98xf32, #tpu.memory_space<smem>>
    %c66 = arith.constant 66 : index
    %353 = memref.load %arg1[%c66] : memref<98xf32, #tpu.memory_space<smem>>
    %354 = vector.broadcast %352 : f32 to vector<4x1xf32>
    %355 = vector.broadcast %353 : f32 to vector<4x1xf32>
    %356 = arith.select %100, %354, %355 : vector<4x1xi1>, vector<4x1xf32>
    %357 = vector.broadcast %356 : vector<4x1xf32> to vector<4x256xf32>
    %358 = arith.mulf %351, %357 : vector<4x256xf32>
    %359 = arith.addf %302, %358 : vector<4x256xf32>
    %c15_i32_75 = arith.constant 15 : i32
    %360 = tpu.dynamic_rotate %82 by %c15_i32_75 dim 1 : vector<4x256xf32>, i32 -> vector<4x256xf32>
    %361 = arith.andi %304, %93 : vector<1x256xi1>
    %cst_76 = arith.constant 0.000000e+00 : f32
    %362 = vector.shape_cast %361 : vector<1x256xi1> to vector<1x256xi1>
    %363 = vector.broadcast %362 : vector<1x256xi1> to vector<4x256xi1>
    %364 = vector.broadcast %cst_76 : f32 to vector<4x256xf32>
    %365 = arith.select %363, %360, %364 : vector<4x256xi1>, vector<4x256xf32>
    %c18 = arith.constant 18 : index
    %366 = memref.load %arg1[%c18] : memref<98xf32, #tpu.memory_space<smem>>
    %c67 = arith.constant 67 : index
    %367 = memref.load %arg1[%c67] : memref<98xf32, #tpu.memory_space<smem>>
    %368 = vector.broadcast %366 : f32 to vector<4x1xf32>
    %369 = vector.broadcast %367 : f32 to vector<4x1xf32>
    %370 = arith.select %100, %368, %369 : vector<4x1xi1>, vector<4x1xf32>
    %371 = vector.broadcast %370 : vector<4x1xf32> to vector<4x256xf32>
    %372 = arith.mulf %365, %371 : vector<4x256xf32>
    %373 = arith.addf %318, %372 : vector<4x256xf32>
    %c14_i32_77 = arith.constant 14 : i32
    %374 = tpu.dynamic_rotate %82 by %c14_i32_77 dim 1 : vector<4x256xf32>, i32 -> vector<4x256xf32>
    %375 = arith.andi %304, %95 : vector<1x256xi1>
    %cst_78 = arith.constant 0.000000e+00 : f32
    %376 = vector.shape_cast %375 : vector<1x256xi1> to vector<1x256xi1>
    %377 = vector.broadcast %376 : vector<1x256xi1> to vector<4x256xi1>
    %378 = vector.broadcast %cst_78 : f32 to vector<4x256xf32>
    %379 = arith.select %377, %374, %378 : vector<4x256xi1>, vector<4x256xf32>
    %c19 = arith.constant 19 : index
    %380 = memref.load %arg1[%c19] : memref<98xf32, #tpu.memory_space<smem>>
    %c68 = arith.constant 68 : index
    %381 = memref.load %arg1[%c68] : memref<98xf32, #tpu.memory_space<smem>>
    %382 = vector.broadcast %380 : f32 to vector<4x1xf32>
    %383 = vector.broadcast %381 : f32 to vector<4x1xf32>
    %384 = arith.select %100, %382, %383 : vector<4x1xi1>, vector<4x1xf32>
    %385 = vector.broadcast %384 : vector<4x1xf32> to vector<4x256xf32>
    %386 = arith.mulf %379, %385 : vector<4x256xf32>
    %387 = arith.addf %332, %386 : vector<4x256xf32>
    %c13_i32_79 = arith.constant 13 : i32
    %388 = tpu.dynamic_rotate %82 by %c13_i32_79 dim 1 : vector<4x256xf32>, i32 -> vector<4x256xf32>
    %389 = arith.andi %304, %97 : vector<1x256xi1>
    %cst_80 = arith.constant 0.000000e+00 : f32
    %390 = vector.shape_cast %389 : vector<1x256xi1> to vector<1x256xi1>
    %391 = vector.broadcast %390 : vector<1x256xi1> to vector<4x256xi1>
    %392 = vector.broadcast %cst_80 : f32 to vector<4x256xf32>
    %393 = arith.select %391, %388, %392 : vector<4x256xi1>, vector<4x256xf32>
    %c20 = arith.constant 20 : index
    %394 = memref.load %arg1[%c20] : memref<98xf32, #tpu.memory_space<smem>>
    %c69 = arith.constant 69 : index
    %395 = memref.load %arg1[%c69] : memref<98xf32, #tpu.memory_space<smem>>
    %396 = vector.broadcast %394 : f32 to vector<4x1xf32>
    %397 = vector.broadcast %395 : f32 to vector<4x1xf32>
    %398 = arith.select %100, %396, %397 : vector<4x1xi1>, vector<4x1xf32>
    %399 = vector.broadcast %398 : vector<4x1xf32> to vector<4x256xf32>
    %400 = arith.mulf %393, %399 : vector<4x256xf32>
    %401 = arith.addf %346, %400 : vector<4x256xf32>
    %c3_i32_81 = arith.constant 3 : i32
    %402 = tpu.dynamic_rotate %82 by %c3_i32_81 dim 1 : vector<4x256xf32>, i32 -> vector<4x256xf32>
    %cst_82 = arith.constant 0.000000e+00 : f32
    %403 = vector.shape_cast %87 : vector<1x256xi1> to vector<1x256xi1>
    %404 = vector.broadcast %403 : vector<1x256xi1> to vector<4x256xi1>
    %405 = vector.broadcast %cst_82 : f32 to vector<4x256xf32>
    %406 = arith.select %404, %402, %405 : vector<4x256xi1>, vector<4x256xf32>
    %c21 = arith.constant 21 : index
    %407 = memref.load %arg1[%c21] : memref<98xf32, #tpu.memory_space<smem>>
    %c70 = arith.constant 70 : index
    %408 = memref.load %arg1[%c70] : memref<98xf32, #tpu.memory_space<smem>>
    %409 = vector.broadcast %407 : f32 to vector<4x1xf32>
    %410 = vector.broadcast %408 : f32 to vector<4x1xf32>
    %411 = arith.select %100, %409, %410 : vector<4x1xi1>, vector<4x1xf32>
    %412 = vector.broadcast %411 : vector<4x1xf32> to vector<4x256xf32>
    %413 = arith.mulf %406, %412 : vector<4x256xf32>
    %414 = arith.addf %359, %413 : vector<4x256xf32>
    %c2_i32_83 = arith.constant 2 : i32
    %415 = tpu.dynamic_rotate %82 by %c2_i32_83 dim 1 : vector<4x256xf32>, i32 -> vector<4x256xf32>
    %cst_84 = arith.constant 0.000000e+00 : f32
    %416 = vector.shape_cast %89 : vector<1x256xi1> to vector<1x256xi1>
    %417 = vector.broadcast %416 : vector<1x256xi1> to vector<4x256xi1>
    %418 = vector.broadcast %cst_84 : f32 to vector<4x256xf32>
    %419 = arith.select %417, %415, %418 : vector<4x256xi1>, vector<4x256xf32>
    %c22 = arith.constant 22 : index
    %420 = memref.load %arg1[%c22] : memref<98xf32, #tpu.memory_space<smem>>
    %c71 = arith.constant 71 : index
    %421 = memref.load %arg1[%c71] : memref<98xf32, #tpu.memory_space<smem>>
    %422 = vector.broadcast %420 : f32 to vector<4x1xf32>
    %423 = vector.broadcast %421 : f32 to vector<4x1xf32>
    %424 = arith.select %100, %422, %423 : vector<4x1xi1>, vector<4x1xf32>
    %425 = vector.broadcast %424 : vector<4x1xf32> to vector<4x256xf32>
    %426 = arith.mulf %419, %425 : vector<4x256xf32>
    %427 = arith.addf %373, %426 : vector<4x256xf32>
    %c1_i32_85 = arith.constant 1 : i32
    %428 = tpu.dynamic_rotate %82 by %c1_i32_85 dim 1 : vector<4x256xf32>, i32 -> vector<4x256xf32>
    %cst_86 = arith.constant 0.000000e+00 : f32
    %429 = vector.shape_cast %91 : vector<1x256xi1> to vector<1x256xi1>
    %430 = vector.broadcast %429 : vector<1x256xi1> to vector<4x256xi1>
    %431 = vector.broadcast %cst_86 : f32 to vector<4x256xf32>
    %432 = arith.select %430, %428, %431 : vector<4x256xi1>, vector<4x256xf32>
    %c23 = arith.constant 23 : index
    %433 = memref.load %arg1[%c23] : memref<98xf32, #tpu.memory_space<smem>>
    %c72 = arith.constant 72 : index
    %434 = memref.load %arg1[%c72] : memref<98xf32, #tpu.memory_space<smem>>
    %435 = vector.broadcast %433 : f32 to vector<4x1xf32>
    %436 = vector.broadcast %434 : f32 to vector<4x1xf32>
    %437 = arith.select %100, %435, %436 : vector<4x1xi1>, vector<4x1xf32>
    %438 = vector.broadcast %437 : vector<4x1xf32> to vector<4x256xf32>
    %439 = arith.mulf %432, %438 : vector<4x256xf32>
    %440 = arith.addf %387, %439 : vector<4x256xf32>
    %c24 = arith.constant 24 : index
    %441 = memref.load %arg1[%c24] : memref<98xf32, #tpu.memory_space<smem>>
    %c73 = arith.constant 73 : index
    %442 = memref.load %arg1[%c73] : memref<98xf32, #tpu.memory_space<smem>>
    %443 = vector.broadcast %441 : f32 to vector<4x1xf32>
    %444 = vector.broadcast %442 : f32 to vector<4x1xf32>
    %445 = arith.select %100, %443, %444 : vector<4x1xi1>, vector<4x1xf32>
    %446 = vector.broadcast %445 : vector<4x1xf32> to vector<4x256xf32>
    %447 = arith.mulf %82, %446 : vector<4x256xf32>
    %448 = arith.addf %401, %447 : vector<4x256xf32>
    %c255_i32 = arith.constant 255 : i32
    %449 = tpu.dynamic_rotate %82 by %c255_i32 dim 1 : vector<4x256xf32>, i32 -> vector<4x256xf32>
    %cst_87 = arith.constant 0.000000e+00 : f32
    %450 = vector.shape_cast %93 : vector<1x256xi1> to vector<1x256xi1>
    %451 = vector.broadcast %450 : vector<1x256xi1> to vector<4x256xi1>
    %452 = vector.broadcast %cst_87 : f32 to vector<4x256xf32>
    %453 = arith.select %451, %449, %452 : vector<4x256xi1>, vector<4x256xf32>
    %c25 = arith.constant 25 : index
    %454 = memref.load %arg1[%c25] : memref<98xf32, #tpu.memory_space<smem>>
    %c74 = arith.constant 74 : index
    %455 = memref.load %arg1[%c74] : memref<98xf32, #tpu.memory_space<smem>>
    %456 = vector.broadcast %454 : f32 to vector<4x1xf32>
    %457 = vector.broadcast %455 : f32 to vector<4x1xf32>
    %458 = arith.select %100, %456, %457 : vector<4x1xi1>, vector<4x1xf32>
    %459 = vector.broadcast %458 : vector<4x1xf32> to vector<4x256xf32>
    %460 = arith.mulf %453, %459 : vector<4x256xf32>
    %461 = arith.addf %414, %460 : vector<4x256xf32>
    %c254_i32 = arith.constant 254 : i32
    %462 = tpu.dynamic_rotate %82 by %c254_i32 dim 1 : vector<4x256xf32>, i32 -> vector<4x256xf32>
    %cst_88 = arith.constant 0.000000e+00 : f32
    %463 = vector.shape_cast %95 : vector<1x256xi1> to vector<1x256xi1>
    %464 = vector.broadcast %463 : vector<1x256xi1> to vector<4x256xi1>
    %465 = vector.broadcast %cst_88 : f32 to vector<4x256xf32>
    %466 = arith.select %464, %462, %465 : vector<4x256xi1>, vector<4x256xf32>
    %c26 = arith.constant 26 : index
    %467 = memref.load %arg1[%c26] : memref<98xf32, #tpu.memory_space<smem>>
    %c75 = arith.constant 75 : index
    %468 = memref.load %arg1[%c75] : memref<98xf32, #tpu.memory_space<smem>>
    %469 = vector.broadcast %467 : f32 to vector<4x1xf32>
    %470 = vector.broadcast %468 : f32 to vector<4x1xf32>
    %471 = arith.select %100, %469, %470 : vector<4x1xi1>, vector<4x1xf32>
    %472 = vector.broadcast %471 : vector<4x1xf32> to vector<4x256xf32>
    %473 = arith.mulf %466, %472 : vector<4x256xf32>
    %474 = arith.addf %427, %473 : vector<4x256xf32>
    %c253_i32 = arith.constant 253 : i32
    %475 = tpu.dynamic_rotate %82 by %c253_i32 dim 1 : vector<4x256xf32>, i32 -> vector<4x256xf32>
    %cst_89 = arith.constant 0.000000e+00 : f32
    %476 = vector.shape_cast %97 : vector<1x256xi1> to vector<1x256xi1>
    %477 = vector.broadcast %476 : vector<1x256xi1> to vector<4x256xi1>
    %478 = vector.broadcast %cst_89 : f32 to vector<4x256xf32>
    %479 = arith.select %477, %475, %478 : vector<4x256xi1>, vector<4x256xf32>
    %c27 = arith.constant 27 : index
    %480 = memref.load %arg1[%c27] : memref<98xf32, #tpu.memory_space<smem>>
    %c76 = arith.constant 76 : index
    %481 = memref.load %arg1[%c76] : memref<98xf32, #tpu.memory_space<smem>>
    %482 = vector.broadcast %480 : f32 to vector<4x1xf32>
    %483 = vector.broadcast %481 : f32 to vector<4x1xf32>
    %484 = arith.select %100, %482, %483 : vector<4x1xi1>, vector<4x1xf32>
    %485 = vector.broadcast %484 : vector<4x1xf32> to vector<4x256xf32>
    %486 = arith.mulf %479, %485 : vector<4x256xf32>
    %487 = arith.addf %440, %486 : vector<4x256xf32>
    %c240_i32 = arith.constant 240 : i32
    %488 = vector.broadcast %c240_i32 : i32 to vector<1x256xi32>
    %489 = arith.cmpi slt, %83, %488 : vector<1x256xi32>
    %c243_i32 = arith.constant 243 : i32
    %490 = tpu.dynamic_rotate %82 by %c243_i32 dim 1 : vector<4x256xf32>, i32 -> vector<4x256xf32>
    %491 = arith.andi %489, %87 : vector<1x256xi1>
    %cst_90 = arith.constant 0.000000e+00 : f32
    %492 = vector.shape_cast %491 : vector<1x256xi1> to vector<1x256xi1>
    %493 = vector.broadcast %492 : vector<1x256xi1> to vector<4x256xi1>
    %494 = vector.broadcast %cst_90 : f32 to vector<4x256xf32>
    %495 = arith.select %493, %490, %494 : vector<4x256xi1>, vector<4x256xf32>
    %c28 = arith.constant 28 : index
    %496 = memref.load %arg1[%c28] : memref<98xf32, #tpu.memory_space<smem>>
    %c77 = arith.constant 77 : index
    %497 = memref.load %arg1[%c77] : memref<98xf32, #tpu.memory_space<smem>>
    %498 = vector.broadcast %496 : f32 to vector<4x1xf32>
    %499 = vector.broadcast %497 : f32 to vector<4x1xf32>
    %500 = arith.select %100, %498, %499 : vector<4x1xi1>, vector<4x1xf32>
    %501 = vector.broadcast %500 : vector<4x1xf32> to vector<4x256xf32>
    %502 = arith.mulf %495, %501 : vector<4x256xf32>
    %503 = arith.addf %448, %502 : vector<4x256xf32>
    %c242_i32 = arith.constant 242 : i32
    %504 = tpu.dynamic_rotate %82 by %c242_i32 dim 1 : vector<4x256xf32>, i32 -> vector<4x256xf32>
    %505 = arith.andi %489, %89 : vector<1x256xi1>
    %cst_91 = arith.constant 0.000000e+00 : f32
    %506 = vector.shape_cast %505 : vector<1x256xi1> to vector<1x256xi1>
    %507 = vector.broadcast %506 : vector<1x256xi1> to vector<4x256xi1>
    %508 = vector.broadcast %cst_91 : f32 to vector<4x256xf32>
    %509 = arith.select %507, %504, %508 : vector<4x256xi1>, vector<4x256xf32>
    %c29 = arith.constant 29 : index
    %510 = memref.load %arg1[%c29] : memref<98xf32, #tpu.memory_space<smem>>
    %c78 = arith.constant 78 : index
    %511 = memref.load %arg1[%c78] : memref<98xf32, #tpu.memory_space<smem>>
    %512 = vector.broadcast %510 : f32 to vector<4x1xf32>
    %513 = vector.broadcast %511 : f32 to vector<4x1xf32>
    %514 = arith.select %100, %512, %513 : vector<4x1xi1>, vector<4x1xf32>
    %515 = vector.broadcast %514 : vector<4x1xf32> to vector<4x256xf32>
    %516 = arith.mulf %509, %515 : vector<4x256xf32>
    %517 = arith.addf %461, %516 : vector<4x256xf32>
    %c241_i32 = arith.constant 241 : i32
    %518 = tpu.dynamic_rotate %82 by %c241_i32 dim 1 : vector<4x256xf32>, i32 -> vector<4x256xf32>
    %519 = arith.andi %489, %91 : vector<1x256xi1>
    %cst_92 = arith.constant 0.000000e+00 : f32
    %520 = vector.shape_cast %519 : vector<1x256xi1> to vector<1x256xi1>
    %521 = vector.broadcast %520 : vector<1x256xi1> to vector<4x256xi1>
    %522 = vector.broadcast %cst_92 : f32 to vector<4x256xf32>
    %523 = arith.select %521, %518, %522 : vector<4x256xi1>, vector<4x256xf32>
    %c30 = arith.constant 30 : index
    %524 = memref.load %arg1[%c30] : memref<98xf32, #tpu.memory_space<smem>>
    %c79 = arith.constant 79 : index
    %525 = memref.load %arg1[%c79] : memref<98xf32, #tpu.memory_space<smem>>
    %526 = vector.broadcast %524 : f32 to vector<4x1xf32>
    %527 = vector.broadcast %525 : f32 to vector<4x1xf32>
    %528 = arith.select %100, %526, %527 : vector<4x1xi1>, vector<4x1xf32>
    %529 = vector.broadcast %528 : vector<4x1xf32> to vector<4x256xf32>
    %530 = arith.mulf %523, %529 : vector<4x256xf32>
    %531 = arith.addf %474, %530 : vector<4x256xf32>
    %c240_i32_93 = arith.constant 240 : i32
    %532 = tpu.dynamic_rotate %82 by %c240_i32_93 dim 1 : vector<4x256xf32>, i32 -> vector<4x256xf32>
    %cst_94 = arith.constant 0.000000e+00 : f32
    %533 = vector.shape_cast %489 : vector<1x256xi1> to vector<1x256xi1>
    %534 = vector.broadcast %533 : vector<1x256xi1> to vector<4x256xi1>
    %535 = vector.broadcast %cst_94 : f32 to vector<4x256xf32>
    %536 = arith.select %534, %532, %535 : vector<4x256xi1>, vector<4x256xf32>
    %c31 = arith.constant 31 : index
    %537 = memref.load %arg1[%c31] : memref<98xf32, #tpu.memory_space<smem>>
    %c80 = arith.constant 80 : index
    %538 = memref.load %arg1[%c80] : memref<98xf32, #tpu.memory_space<smem>>
    %539 = vector.broadcast %537 : f32 to vector<4x1xf32>
    %540 = vector.broadcast %538 : f32 to vector<4x1xf32>
    %541 = arith.select %100, %539, %540 : vector<4x1xi1>, vector<4x1xf32>
    %542 = vector.broadcast %541 : vector<4x1xf32> to vector<4x256xf32>
    %543 = arith.mulf %536, %542 : vector<4x256xf32>
    %544 = arith.addf %487, %543 : vector<4x256xf32>
    %c239_i32 = arith.constant 239 : i32
    %545 = tpu.dynamic_rotate %82 by %c239_i32 dim 1 : vector<4x256xf32>, i32 -> vector<4x256xf32>
    %546 = arith.andi %489, %93 : vector<1x256xi1>
    %cst_95 = arith.constant 0.000000e+00 : f32
    %547 = vector.shape_cast %546 : vector<1x256xi1> to vector<1x256xi1>
    %548 = vector.broadcast %547 : vector<1x256xi1> to vector<4x256xi1>
    %549 = vector.broadcast %cst_95 : f32 to vector<4x256xf32>
    %550 = arith.select %548, %545, %549 : vector<4x256xi1>, vector<4x256xf32>
    %c32 = arith.constant 32 : index
    %551 = memref.load %arg1[%c32] : memref<98xf32, #tpu.memory_space<smem>>
    %c81 = arith.constant 81 : index
    %552 = memref.load %arg1[%c81] : memref<98xf32, #tpu.memory_space<smem>>
    %553 = vector.broadcast %551 : f32 to vector<4x1xf32>
    %554 = vector.broadcast %552 : f32 to vector<4x1xf32>
    %555 = arith.select %100, %553, %554 : vector<4x1xi1>, vector<4x1xf32>
    %556 = vector.broadcast %555 : vector<4x1xf32> to vector<4x256xf32>
    %557 = arith.mulf %550, %556 : vector<4x256xf32>
    %558 = arith.addf %503, %557 : vector<4x256xf32>
    %c238_i32 = arith.constant 238 : i32
    %559 = tpu.dynamic_rotate %82 by %c238_i32 dim 1 : vector<4x256xf32>, i32 -> vector<4x256xf32>
    %560 = arith.andi %489, %95 : vector<1x256xi1>
    %cst_96 = arith.constant 0.000000e+00 : f32
    %561 = vector.shape_cast %560 : vector<1x256xi1> to vector<1x256xi1>
    %562 = vector.broadcast %561 : vector<1x256xi1> to vector<4x256xi1>
    %563 = vector.broadcast %cst_96 : f32 to vector<4x256xf32>
    %564 = arith.select %562, %559, %563 : vector<4x256xi1>, vector<4x256xf32>
    %c33 = arith.constant 33 : index
    %565 = memref.load %arg1[%c33] : memref<98xf32, #tpu.memory_space<smem>>
    %c82 = arith.constant 82 : index
    %566 = memref.load %arg1[%c82] : memref<98xf32, #tpu.memory_space<smem>>
    %567 = vector.broadcast %565 : f32 to vector<4x1xf32>
    %568 = vector.broadcast %566 : f32 to vector<4x1xf32>
    %569 = arith.select %100, %567, %568 : vector<4x1xi1>, vector<4x1xf32>
    %570 = vector.broadcast %569 : vector<4x1xf32> to vector<4x256xf32>
    %571 = arith.mulf %564, %570 : vector<4x256xf32>
    %572 = arith.addf %517, %571 : vector<4x256xf32>
    %c237_i32 = arith.constant 237 : i32
    %573 = tpu.dynamic_rotate %82 by %c237_i32 dim 1 : vector<4x256xf32>, i32 -> vector<4x256xf32>
    %574 = arith.andi %489, %97 : vector<1x256xi1>
    %cst_97 = arith.constant 0.000000e+00 : f32
    %575 = vector.shape_cast %574 : vector<1x256xi1> to vector<1x256xi1>
    %576 = vector.broadcast %575 : vector<1x256xi1> to vector<4x256xi1>
    %577 = vector.broadcast %cst_97 : f32 to vector<4x256xf32>
    %578 = arith.select %576, %573, %577 : vector<4x256xi1>, vector<4x256xf32>
    %c34 = arith.constant 34 : index
    %579 = memref.load %arg1[%c34] : memref<98xf32, #tpu.memory_space<smem>>
    %c83 = arith.constant 83 : index
    %580 = memref.load %arg1[%c83] : memref<98xf32, #tpu.memory_space<smem>>
    %581 = vector.broadcast %579 : f32 to vector<4x1xf32>
    %582 = vector.broadcast %580 : f32 to vector<4x1xf32>
    %583 = arith.select %100, %581, %582 : vector<4x1xi1>, vector<4x1xf32>
    %584 = vector.broadcast %583 : vector<4x1xf32> to vector<4x256xf32>
    %585 = arith.mulf %578, %584 : vector<4x256xf32>
    %586 = arith.addf %531, %585 : vector<4x256xf32>
    %c224_i32 = arith.constant 224 : i32
    %587 = vector.broadcast %c224_i32 : i32 to vector<1x256xi32>
    %588 = arith.cmpi slt, %83, %587 : vector<1x256xi32>
    %c227_i32 = arith.constant 227 : i32
    %589 = tpu.dynamic_rotate %82 by %c227_i32 dim 1 : vector<4x256xf32>, i32 -> vector<4x256xf32>
    %590 = arith.andi %588, %87 : vector<1x256xi1>
    %cst_98 = arith.constant 0.000000e+00 : f32
    %591 = vector.shape_cast %590 : vector<1x256xi1> to vector<1x256xi1>
    %592 = vector.broadcast %591 : vector<1x256xi1> to vector<4x256xi1>
    %593 = vector.broadcast %cst_98 : f32 to vector<4x256xf32>
    %594 = arith.select %592, %589, %593 : vector<4x256xi1>, vector<4x256xf32>
    %c35 = arith.constant 35 : index
    %595 = memref.load %arg1[%c35] : memref<98xf32, #tpu.memory_space<smem>>
    %c84 = arith.constant 84 : index
    %596 = memref.load %arg1[%c84] : memref<98xf32, #tpu.memory_space<smem>>
    %597 = vector.broadcast %595 : f32 to vector<4x1xf32>
    %598 = vector.broadcast %596 : f32 to vector<4x1xf32>
    %599 = arith.select %100, %597, %598 : vector<4x1xi1>, vector<4x1xf32>
    %600 = vector.broadcast %599 : vector<4x1xf32> to vector<4x256xf32>
    %601 = arith.mulf %594, %600 : vector<4x256xf32>
    %602 = arith.addf %544, %601 : vector<4x256xf32>
    %c226_i32 = arith.constant 226 : i32
    %603 = tpu.dynamic_rotate %82 by %c226_i32 dim 1 : vector<4x256xf32>, i32 -> vector<4x256xf32>
    %604 = arith.andi %588, %89 : vector<1x256xi1>
    %cst_99 = arith.constant 0.000000e+00 : f32
    %605 = vector.shape_cast %604 : vector<1x256xi1> to vector<1x256xi1>
    %606 = vector.broadcast %605 : vector<1x256xi1> to vector<4x256xi1>
    %607 = vector.broadcast %cst_99 : f32 to vector<4x256xf32>
    %608 = arith.select %606, %603, %607 : vector<4x256xi1>, vector<4x256xf32>
    %c36 = arith.constant 36 : index
    %609 = memref.load %arg1[%c36] : memref<98xf32, #tpu.memory_space<smem>>
    %c85 = arith.constant 85 : index
    %610 = memref.load %arg1[%c85] : memref<98xf32, #tpu.memory_space<smem>>
    %611 = vector.broadcast %609 : f32 to vector<4x1xf32>
    %612 = vector.broadcast %610 : f32 to vector<4x1xf32>
    %613 = arith.select %100, %611, %612 : vector<4x1xi1>, vector<4x1xf32>
    %614 = vector.broadcast %613 : vector<4x1xf32> to vector<4x256xf32>
    %615 = arith.mulf %608, %614 : vector<4x256xf32>
    %616 = arith.addf %558, %615 : vector<4x256xf32>
    %c225_i32 = arith.constant 225 : i32
    %617 = tpu.dynamic_rotate %82 by %c225_i32 dim 1 : vector<4x256xf32>, i32 -> vector<4x256xf32>
    %618 = arith.andi %588, %91 : vector<1x256xi1>
    %cst_100 = arith.constant 0.000000e+00 : f32
    %619 = vector.shape_cast %618 : vector<1x256xi1> to vector<1x256xi1>
    %620 = vector.broadcast %619 : vector<1x256xi1> to vector<4x256xi1>
    %621 = vector.broadcast %cst_100 : f32 to vector<4x256xf32>
    %622 = arith.select %620, %617, %621 : vector<4x256xi1>, vector<4x256xf32>
    %c37 = arith.constant 37 : index
    %623 = memref.load %arg1[%c37] : memref<98xf32, #tpu.memory_space<smem>>
    %c86 = arith.constant 86 : index
    %624 = memref.load %arg1[%c86] : memref<98xf32, #tpu.memory_space<smem>>
    %625 = vector.broadcast %623 : f32 to vector<4x1xf32>
    %626 = vector.broadcast %624 : f32 to vector<4x1xf32>
    %627 = arith.select %100, %625, %626 : vector<4x1xi1>, vector<4x1xf32>
    %628 = vector.broadcast %627 : vector<4x1xf32> to vector<4x256xf32>
    %629 = arith.mulf %622, %628 : vector<4x256xf32>
    %630 = arith.addf %572, %629 : vector<4x256xf32>
    %c224_i32_101 = arith.constant 224 : i32
    %631 = tpu.dynamic_rotate %82 by %c224_i32_101 dim 1 : vector<4x256xf32>, i32 -> vector<4x256xf32>
    %cst_102 = arith.constant 0.000000e+00 : f32
    %632 = vector.shape_cast %588 : vector<1x256xi1> to vector<1x256xi1>
    %633 = vector.broadcast %632 : vector<1x256xi1> to vector<4x256xi1>
    %634 = vector.broadcast %cst_102 : f32 to vector<4x256xf32>
    %635 = arith.select %633, %631, %634 : vector<4x256xi1>, vector<4x256xf32>
    %c38 = arith.constant 38 : index
    %636 = memref.load %arg1[%c38] : memref<98xf32, #tpu.memory_space<smem>>
    %c87 = arith.constant 87 : index
    %637 = memref.load %arg1[%c87] : memref<98xf32, #tpu.memory_space<smem>>
    %638 = vector.broadcast %636 : f32 to vector<4x1xf32>
    %639 = vector.broadcast %637 : f32 to vector<4x1xf32>
    %640 = arith.select %100, %638, %639 : vector<4x1xi1>, vector<4x1xf32>
    %641 = vector.broadcast %640 : vector<4x1xf32> to vector<4x256xf32>
    %642 = arith.mulf %635, %641 : vector<4x256xf32>
    %643 = arith.addf %586, %642 : vector<4x256xf32>
    %c223_i32 = arith.constant 223 : i32
    %644 = tpu.dynamic_rotate %82 by %c223_i32 dim 1 : vector<4x256xf32>, i32 -> vector<4x256xf32>
    %645 = arith.andi %588, %93 : vector<1x256xi1>
    %cst_103 = arith.constant 0.000000e+00 : f32
    %646 = vector.shape_cast %645 : vector<1x256xi1> to vector<1x256xi1>
    %647 = vector.broadcast %646 : vector<1x256xi1> to vector<4x256xi1>
    %648 = vector.broadcast %cst_103 : f32 to vector<4x256xf32>
    %649 = arith.select %647, %644, %648 : vector<4x256xi1>, vector<4x256xf32>
    %c39 = arith.constant 39 : index
    %650 = memref.load %arg1[%c39] : memref<98xf32, #tpu.memory_space<smem>>
    %c88 = arith.constant 88 : index
    %651 = memref.load %arg1[%c88] : memref<98xf32, #tpu.memory_space<smem>>
    %652 = vector.broadcast %650 : f32 to vector<4x1xf32>
    %653 = vector.broadcast %651 : f32 to vector<4x1xf32>
    %654 = arith.select %100, %652, %653 : vector<4x1xi1>, vector<4x1xf32>
    %655 = vector.broadcast %654 : vector<4x1xf32> to vector<4x256xf32>
    %656 = arith.mulf %649, %655 : vector<4x256xf32>
    %657 = arith.addf %602, %656 : vector<4x256xf32>
    %c222_i32 = arith.constant 222 : i32
    %658 = tpu.dynamic_rotate %82 by %c222_i32 dim 1 : vector<4x256xf32>, i32 -> vector<4x256xf32>
    %659 = arith.andi %588, %95 : vector<1x256xi1>
    %cst_104 = arith.constant 0.000000e+00 : f32
    %660 = vector.shape_cast %659 : vector<1x256xi1> to vector<1x256xi1>
    %661 = vector.broadcast %660 : vector<1x256xi1> to vector<4x256xi1>
    %662 = vector.broadcast %cst_104 : f32 to vector<4x256xf32>
    %663 = arith.select %661, %658, %662 : vector<4x256xi1>, vector<4x256xf32>
    %c40 = arith.constant 40 : index
    %664 = memref.load %arg1[%c40] : memref<98xf32, #tpu.memory_space<smem>>
    %c89 = arith.constant 89 : index
    %665 = memref.load %arg1[%c89] : memref<98xf32, #tpu.memory_space<smem>>
    %666 = vector.broadcast %664 : f32 to vector<4x1xf32>
    %667 = vector.broadcast %665 : f32 to vector<4x1xf32>
    %668 = arith.select %100, %666, %667 : vector<4x1xi1>, vector<4x1xf32>
    %669 = vector.broadcast %668 : vector<4x1xf32> to vector<4x256xf32>
    %670 = arith.mulf %663, %669 : vector<4x256xf32>
    %671 = arith.addf %616, %670 : vector<4x256xf32>
    %c221_i32 = arith.constant 221 : i32
    %672 = tpu.dynamic_rotate %82 by %c221_i32 dim 1 : vector<4x256xf32>, i32 -> vector<4x256xf32>
    %673 = arith.andi %588, %97 : vector<1x256xi1>
    %cst_105 = arith.constant 0.000000e+00 : f32
    %674 = vector.shape_cast %673 : vector<1x256xi1> to vector<1x256xi1>
    %675 = vector.broadcast %674 : vector<1x256xi1> to vector<4x256xi1>
    %676 = vector.broadcast %cst_105 : f32 to vector<4x256xf32>
    %677 = arith.select %675, %672, %676 : vector<4x256xi1>, vector<4x256xf32>
    %c41 = arith.constant 41 : index
    %678 = memref.load %arg1[%c41] : memref<98xf32, #tpu.memory_space<smem>>
    %c90 = arith.constant 90 : index
    %679 = memref.load %arg1[%c90] : memref<98xf32, #tpu.memory_space<smem>>
    %680 = vector.broadcast %678 : f32 to vector<4x1xf32>
    %681 = vector.broadcast %679 : f32 to vector<4x1xf32>
    %682 = arith.select %100, %680, %681 : vector<4x1xi1>, vector<4x1xf32>
    %683 = vector.broadcast %682 : vector<4x1xf32> to vector<4x256xf32>
    %684 = arith.mulf %677, %683 : vector<4x256xf32>
    %685 = arith.addf %630, %684 : vector<4x256xf32>
    %c208_i32 = arith.constant 208 : i32
    %686 = vector.broadcast %c208_i32 : i32 to vector<1x256xi32>
    %687 = arith.cmpi slt, %83, %686 : vector<1x256xi32>
    %c211_i32 = arith.constant 211 : i32
    %688 = tpu.dynamic_rotate %82 by %c211_i32 dim 1 : vector<4x256xf32>, i32 -> vector<4x256xf32>
    %689 = arith.andi %687, %87 : vector<1x256xi1>
    %cst_106 = arith.constant 0.000000e+00 : f32
    %690 = vector.shape_cast %689 : vector<1x256xi1> to vector<1x256xi1>
    %691 = vector.broadcast %690 : vector<1x256xi1> to vector<4x256xi1>
    %692 = vector.broadcast %cst_106 : f32 to vector<4x256xf32>
    %693 = arith.select %691, %688, %692 : vector<4x256xi1>, vector<4x256xf32>
    %c42 = arith.constant 42 : index
    %694 = memref.load %arg1[%c42] : memref<98xf32, #tpu.memory_space<smem>>
    %c91 = arith.constant 91 : index
    %695 = memref.load %arg1[%c91] : memref<98xf32, #tpu.memory_space<smem>>
    %696 = vector.broadcast %694 : f32 to vector<4x1xf32>
    %697 = vector.broadcast %695 : f32 to vector<4x1xf32>
    %698 = arith.select %100, %696, %697 : vector<4x1xi1>, vector<4x1xf32>
    %699 = vector.broadcast %698 : vector<4x1xf32> to vector<4x256xf32>
    %700 = arith.mulf %693, %699 : vector<4x256xf32>
    %701 = arith.addf %643, %700 : vector<4x256xf32>
    %c210_i32 = arith.constant 210 : i32
    %702 = tpu.dynamic_rotate %82 by %c210_i32 dim 1 : vector<4x256xf32>, i32 -> vector<4x256xf32>
    %703 = arith.andi %687, %89 : vector<1x256xi1>
    %cst_107 = arith.constant 0.000000e+00 : f32
    %704 = vector.shape_cast %703 : vector<1x256xi1> to vector<1x256xi1>
    %705 = vector.broadcast %704 : vector<1x256xi1> to vector<4x256xi1>
    %706 = vector.broadcast %cst_107 : f32 to vector<4x256xf32>
    %707 = arith.select %705, %702, %706 : vector<4x256xi1>, vector<4x256xf32>
    %c43 = arith.constant 43 : index
    %708 = memref.load %arg1[%c43] : memref<98xf32, #tpu.memory_space<smem>>
    %c92 = arith.constant 92 : index
    %709 = memref.load %arg1[%c92] : memref<98xf32, #tpu.memory_space<smem>>
    %710 = vector.broadcast %708 : f32 to vector<4x1xf32>
    %711 = vector.broadcast %709 : f32 to vector<4x1xf32>
    %712 = arith.select %100, %710, %711 : vector<4x1xi1>, vector<4x1xf32>
    %713 = vector.broadcast %712 : vector<4x1xf32> to vector<4x256xf32>
    %714 = arith.mulf %707, %713 : vector<4x256xf32>
    %715 = arith.addf %657, %714 : vector<4x256xf32>
    %c209_i32 = arith.constant 209 : i32
    %716 = tpu.dynamic_rotate %82 by %c209_i32 dim 1 : vector<4x256xf32>, i32 -> vector<4x256xf32>
    %717 = arith.andi %687, %91 : vector<1x256xi1>
    %cst_108 = arith.constant 0.000000e+00 : f32
    %718 = vector.shape_cast %717 : vector<1x256xi1> to vector<1x256xi1>
    %719 = vector.broadcast %718 : vector<1x256xi1> to vector<4x256xi1>
    %720 = vector.broadcast %cst_108 : f32 to vector<4x256xf32>
    %721 = arith.select %719, %716, %720 : vector<4x256xi1>, vector<4x256xf32>
    %c44 = arith.constant 44 : index
    %722 = memref.load %arg1[%c44] : memref<98xf32, #tpu.memory_space<smem>>
    %c93 = arith.constant 93 : index
    %723 = memref.load %arg1[%c93] : memref<98xf32, #tpu.memory_space<smem>>
    %724 = vector.broadcast %722 : f32 to vector<4x1xf32>
    %725 = vector.broadcast %723 : f32 to vector<4x1xf32>
    %726 = arith.select %100, %724, %725 : vector<4x1xi1>, vector<4x1xf32>
    %727 = vector.broadcast %726 : vector<4x1xf32> to vector<4x256xf32>
    %728 = arith.mulf %721, %727 : vector<4x256xf32>
    %729 = arith.addf %671, %728 : vector<4x256xf32>
    %c208_i32_109 = arith.constant 208 : i32
    %730 = tpu.dynamic_rotate %82 by %c208_i32_109 dim 1 : vector<4x256xf32>, i32 -> vector<4x256xf32>
    %cst_110 = arith.constant 0.000000e+00 : f32
    %731 = vector.shape_cast %687 : vector<1x256xi1> to vector<1x256xi1>
    %732 = vector.broadcast %731 : vector<1x256xi1> to vector<4x256xi1>
    %733 = vector.broadcast %cst_110 : f32 to vector<4x256xf32>
    %734 = arith.select %732, %730, %733 : vector<4x256xi1>, vector<4x256xf32>
    %c45 = arith.constant 45 : index
    %735 = memref.load %arg1[%c45] : memref<98xf32, #tpu.memory_space<smem>>
    %c94 = arith.constant 94 : index
    %736 = memref.load %arg1[%c94] : memref<98xf32, #tpu.memory_space<smem>>
    %737 = vector.broadcast %735 : f32 to vector<4x1xf32>
    %738 = vector.broadcast %736 : f32 to vector<4x1xf32>
    %739 = arith.select %100, %737, %738 : vector<4x1xi1>, vector<4x1xf32>
    %740 = vector.broadcast %739 : vector<4x1xf32> to vector<4x256xf32>
    %741 = arith.mulf %734, %740 : vector<4x256xf32>
    %742 = arith.addf %685, %741 : vector<4x256xf32>
    %c207_i32 = arith.constant 207 : i32
    %743 = tpu.dynamic_rotate %82 by %c207_i32 dim 1 : vector<4x256xf32>, i32 -> vector<4x256xf32>
    %744 = arith.andi %687, %93 : vector<1x256xi1>
    %cst_111 = arith.constant 0.000000e+00 : f32
    %745 = vector.shape_cast %744 : vector<1x256xi1> to vector<1x256xi1>
    %746 = vector.broadcast %745 : vector<1x256xi1> to vector<4x256xi1>
    %747 = vector.broadcast %cst_111 : f32 to vector<4x256xf32>
    %748 = arith.select %746, %743, %747 : vector<4x256xi1>, vector<4x256xf32>
    %c46 = arith.constant 46 : index
    %749 = memref.load %arg1[%c46] : memref<98xf32, #tpu.memory_space<smem>>
    %c95 = arith.constant 95 : index
    %750 = memref.load %arg1[%c95] : memref<98xf32, #tpu.memory_space<smem>>
    %751 = vector.broadcast %749 : f32 to vector<4x1xf32>
    %752 = vector.broadcast %750 : f32 to vector<4x1xf32>
    %753 = arith.select %100, %751, %752 : vector<4x1xi1>, vector<4x1xf32>
    %754 = vector.broadcast %753 : vector<4x1xf32> to vector<4x256xf32>
    %755 = arith.mulf %748, %754 : vector<4x256xf32>
    %756 = arith.addf %701, %755 : vector<4x256xf32>
    %c206_i32 = arith.constant 206 : i32
    %757 = tpu.dynamic_rotate %82 by %c206_i32 dim 1 : vector<4x256xf32>, i32 -> vector<4x256xf32>
    %758 = arith.andi %687, %95 : vector<1x256xi1>
    %cst_112 = arith.constant 0.000000e+00 : f32
    %759 = vector.shape_cast %758 : vector<1x256xi1> to vector<1x256xi1>
    %760 = vector.broadcast %759 : vector<1x256xi1> to vector<4x256xi1>
    %761 = vector.broadcast %cst_112 : f32 to vector<4x256xf32>
    %762 = arith.select %760, %757, %761 : vector<4x256xi1>, vector<4x256xf32>
    %c47 = arith.constant 47 : index
    %763 = memref.load %arg1[%c47] : memref<98xf32, #tpu.memory_space<smem>>
    %c96 = arith.constant 96 : index
    %764 = memref.load %arg1[%c96] : memref<98xf32, #tpu.memory_space<smem>>
    %765 = vector.broadcast %763 : f32 to vector<4x1xf32>
    %766 = vector.broadcast %764 : f32 to vector<4x1xf32>
    %767 = arith.select %100, %765, %766 : vector<4x1xi1>, vector<4x1xf32>
    %768 = vector.broadcast %767 : vector<4x1xf32> to vector<4x256xf32>
    %769 = arith.mulf %762, %768 : vector<4x256xf32>
    %770 = arith.addf %715, %769 : vector<4x256xf32>
    %c205_i32 = arith.constant 205 : i32
    %771 = tpu.dynamic_rotate %82 by %c205_i32 dim 1 : vector<4x256xf32>, i32 -> vector<4x256xf32>
    %772 = arith.andi %687, %97 : vector<1x256xi1>
    %cst_113 = arith.constant 0.000000e+00 : f32
    %773 = vector.shape_cast %772 : vector<1x256xi1> to vector<1x256xi1>
    %774 = vector.broadcast %773 : vector<1x256xi1> to vector<4x256xi1>
    %775 = vector.broadcast %cst_113 : f32 to vector<4x256xf32>
    %776 = arith.select %774, %771, %775 : vector<4x256xi1>, vector<4x256xf32>
    %c48 = arith.constant 48 : index
    %777 = memref.load %arg1[%c48] : memref<98xf32, #tpu.memory_space<smem>>
    %c97 = arith.constant 97 : index
    %778 = memref.load %arg1[%c97] : memref<98xf32, #tpu.memory_space<smem>>
    %779 = vector.broadcast %777 : f32 to vector<4x1xf32>
    %780 = vector.broadcast %778 : f32 to vector<4x1xf32>
    %781 = arith.select %100, %779, %780 : vector<4x1xi1>, vector<4x1xf32>
    %782 = vector.broadcast %781 : vector<4x1xf32> to vector<4x256xf32>
    %783 = arith.mulf %776, %782 : vector<4x256xf32>
    %784 = arith.addf %729, %783 : vector<4x256xf32>
    %785 = arith.addf %784, %742 : vector<4x256xf32>
    %786 = arith.addf %756, %770 : vector<4x256xf32>
    %787 = arith.addf %785, %786 : vector<4x256xf32>
    %788 = vector.extract_strided_slice %787 {offsets = [0, 0], sizes = [2, 256], strides = [1, 1]} : vector<4x256xf32> to vector<2x256xf32>
    %789 = vector.extract_strided_slice %787 {offsets = [2, 0], sizes = [2, 256], strides = [1, 1]} : vector<4x256xf32> to vector<2x256xf32>
    %790 = arith.addf %788, %789 : vector<2x256xf32>
    %791 = arith.negf %790 : vector<2x256xf32>
    %792 = math.exp %791 : vector<2x256xf32>
    %cst_114 = arith.constant 1.000000e+00 : f32
    %793 = vector.broadcast %cst_114 : f32 to vector<2x256xf32>
    %794 = arith.addf %793, %792 : vector<2x256xf32>
    %795 = arith.divf %793, %794 : vector<2x256xf32>
    %c0_115 = arith.constant 0 : index
    %c0_116 = arith.constant 0 : index
    %c0_117 = arith.constant 0 : index
    %796 = vector.load %arg5[%c0_115, %c0_116, %c0_117] : memref<2x16x256xf32, #tpu.memory_space<vmem>>, vector<1x16x256xf32>
    %797 = vector.shape_cast %796 : vector<1x16x256xf32> to vector<16x256xf32>
    %798 = vector.extract_strided_slice %795 {offsets = [0, 0], sizes = [1, 256], strides = [1, 1]} : vector<2x256xf32> to vector<1x256xf32>
    %799 = vector.broadcast %798 : vector<1x256xf32> to vector<16x256xf32>
    %800 = arith.mulf %797, %799 : vector<16x256xf32>
    %c0_118 = arith.constant 0 : index
    %c0_119 = arith.constant 0 : index
    %c0_120 = arith.constant 0 : index
    %801 = vector.load %arg5[%c0_118, %c0_119, %c0_120] : memref<2x16x256xf32, #tpu.memory_space<vmem>>, vector<1x16x256xf32>
    %802 = vector.shape_cast %801 : vector<1x16x256xf32> to vector<16x256xf32>
    %803 = vector.shape_cast %800 : vector<16x256xf32> to vector<1x16x256xf32>
    tpu.vector_store %arg5[%c0_118, %c0_119, %c0_120], %803 {strides = array<i32>} : memref<2x16x256xf32, #tpu.memory_space<vmem>>, vector<1x16x256xf32>,
    %c1_121 = arith.constant 1 : index
    %c0_122 = arith.constant 0 : index
    %c0_123 = arith.constant 0 : index
    %804 = vector.load %arg5[%c1_121, %c0_122, %c0_123] : memref<2x16x256xf32, #tpu.memory_space<vmem>>, vector<1x16x256xf32>
    %805 = vector.shape_cast %804 : vector<1x16x256xf32> to vector<16x256xf32>
    %806 = vector.extract_strided_slice %795 {offsets = [1, 0], sizes = [1, 256], strides = [1, 1]} : vector<2x256xf32> to vector<1x256xf32>
    %807 = vector.broadcast %806 : vector<1x256xf32> to vector<16x256xf32>
    %808 = arith.mulf %805, %807 : vector<16x256xf32>
    %c1_124 = arith.constant 1 : index
    %c0_125 = arith.constant 0 : index
    %c0_126 = arith.constant 0 : index
    %809 = vector.load %arg5[%c1_124, %c0_125, %c0_126] : memref<2x16x256xf32, #tpu.memory_space<vmem>>, vector<1x16x256xf32>
    %810 = vector.shape_cast %809 : vector<1x16x256xf32> to vector<16x256xf32>
    %811 = vector.shape_cast %808 : vector<16x256xf32> to vector<1x16x256xf32>
    tpu.vector_store %arg5[%c1_124, %c0_125, %c0_126], %811 {strides = array<i32>} : memref<2x16x256xf32, #tpu.memory_space<vmem>>, vector<1x16x256xf32>,
    return
  }
  func.func @transform_0(%arg0: i32, %arg1: memref<98xf32, #tpu.memory_space<smem>>) -> (i32, i32, i32) {
    %c0_i32 = arith.constant 0 : i32
    %c0_i32_0 = arith.constant 0 : i32
    %c0_i32_1 = arith.constant 0 : i32
    return %arg0, %c0_i32, %c0_i32_0 : i32, i32, i32
  }
  func.func @transform_1(%arg0: i32, %arg1: memref<98xf32, #tpu.memory_space<smem>>) -> (i32, i32) {
    %c0_i32 = arith.constant 0 : i32
    %c0_i32_0 = arith.constant 0 : i32
    %c0_i32_1 = arith.constant 0 : i32
    return %c0_i32, %c0_i32_0 : i32, i32
  }
  func.func @transform_2(%arg0: i32, %arg1: memref<98xf32, #tpu.memory_space<smem>>) -> (i32, i32) {
    %c0_i32 = arith.constant 0 : i32
    %c0_i32_0 = arith.constant 0 : i32
    %c0_i32_1 = arith.constant 0 : i32
    return %c0_i32, %c0_i32_0 : i32, i32
  }
  func.func @transform_3(%arg0: i32, %arg1: memref<98xf32, #tpu.memory_space<smem>>) -> (i32, i32, i32) {
    %c0_i32 = arith.constant 0 : i32
    %c0_i32_0 = arith.constant 0 : i32
    %c0_i32_1 = arith.constant 0 : i32
    return %arg0, %c0_i32, %c0_i32_0 : i32, i32, i32
  }
}

</mosaic_0001>

<bundles_post_ra>
// kernel: tpu_custom_call.1
= control target key start
LH: loop header
LB: loop body
LE: loop exit
PB: predicated region body
PF: predicated region fallthrough
CT: control target
= control target key end

     0   :  { %s3872_s0 = inlined_call_operand.vmem [shape: f32[98], index: 0, kind: input, shape index: {}]   ;;  %s3873_s1 = inlined_call_operand.hbm [shape: f32[2,16,256], index: 1, kind: input, shape index: {}]   ;;  %s3874_s2 = inlined_call_operand.vmem [shape: f32[2,16], index: 2, kind: input, shape index: {}]   ;;  %s3875_s3 = inlined_call_operand.vmem [shape: f32[16,2], index: 3, kind: input, shape index: {}]   ;;  %s3876_s4 = inlined_call_operand.hbm [shape: f32[2,16,256], index: 4, kind: output, shape index: {}]  }
   0x1   :  { %s9_s17 = sshll.u32 %s3872_s0, 4  ;;  %s10_s17 = int_to_ptr.vmem [resolvable:$true] %s9_s17 }
   0x2   :  { %s2092_s18 = scalar_lea.vmem %s10_s17, 16  ;;  %p2097_p1 = scmp.lt.s32.totalorder %s10_s17, %s10_s17 }
   0x3   :  { %p2093_p0 = scmp.ne.s32.totalorder %s10_s17, %s2092_s18  ;;  %p2098_p2 = scmp.lt.s32.totalorder %s2092_s18, %s2092_s18 }
   0x5   :  { %p2099_p3 = por %p2098_p2, %p2097_p1 }
   0x7   :  { %p2100_p4 = pnand %p2099_p3, %p2093_p0 }
   0x9   :  { %2103 = shalt.err (!%p2100_p4)  }
   0xa   :  { %s2154_s19 = smov [#allocation4]  }
   0xb   :  { %12 = dma.vmem_to_smem %s10_s17, 16, %s2154_s19, [#allocation3] }
   0xc   :  { %2148 = dma.done.wait [#allocation3], 16 }
   0xd   :  { %2149 = vsyncadd [#allocation3], 4294967280 }
   0xe   :  { %14 = sfence }
   0xf   :  { %15 = vsyncpa [#allocation6], 0 }
  0x10   :  { %16 = vsyncpa [#allocation7], 0  ;;  %s2155_s20 = smov [#allocation5]   ;;  %s2104_s23 = scalar_lea.hbm %s3873_s1, 1024 }
  0x11   :  { %s22_s21 = sshll.u32 %s2155_s20, 4  ;;  %p2105_p5 = scmp.ne.s32.totalorder %s3873_s1, %s2104_s23  ;;  %s23_s21 = int_to_ptr.vmem [resolvable:$true] %s22_s21 }
  0x12   :  { %p2108_p6 = scmp.lt.u32.totalorder %s2104_s23, %s3873_s1 }
  0x14   :  { %p2110_p7 = pnand %p2108_p6, %p2105_p5 }
  0x16   :  { %2113 = shalt.err (!%p2110_p7)
}
  0x17   :  { %s2114_s28 = scalar_lea.vmem %s23_s21, 1024  ;;  %p2119_p9 = scmp.lt.s32.totalorder %s23_s21, %s23_s21 }
  0x18   :  { %p2115_p8 = scmp.ne.s32.totalorder %s23_s21, %s2114_s28  ;;  %p2120_p10 = scmp.lt.s32.totalorder %s2114_s28, %s2114_s28 }
  0x1a   :  { %p2121_p11 = por %p2120_p10, %p2119_p9 }
  0x1c   :  { %p2122_p12 = pnand %p2121_p11, %p2115_p8 }
  0x1e   :  { %2125 = shalt.err (!%p2122_p12)
}
  0x1f   :  { %s2156_s29 = smov 256   ;;  %s2157_s30 = smov 16  }
  0x20   :  { %28 = dma.hbm_to_vmem [thread:$0]  %s3873_s1, 1024, %s23_s21, [#allocation6], %s2156_s29, %s2156_s29, %s2157_s30  }
  0x21   :  { %2150 = dma.done.wait [#allocation6], 1024  }
  0x22   :  { %2151 = vsyncadd [#allocation6], 4294966272  ;;  %v2254_v0 = vld [vmem:[#allocation5] sm:$0xff]  ;;  %v2256_v1 = vld [vmem:[#allocation5 + $0x8] sm:$0xff]  ;;  %v2158_v8 = vmov 0.0|0.0   ;;  %vm2159_vm0 = vmmov 0   ;;  %v58_v18 = vlaneseq }
  0x23   :  { %v2258_v2 = vld [vmem:[#allocation5 + $0x10] sm:$0xff]  ;;  %v43_v3 = vadd.f32 %v2256_v1, %v2254_v0  ;;  %v52_v4 = vmax.f32 %v2254_v0, %v2256_v1  ;;  %v2264_v5 = vld [vmem:[#allocation5 + $0x18] sm:$0xff]  ;;  %2003 = vmatprep.subr.bf16.mxu0 %v2158_v8  ;;  %v2160_v9 = vmov 0.0   ;;  %v2275_v12 = vld [vmem:[#allocation5 + $0x20] sm:$0xff]  ;;  %vm63_vm2 = vcmask 130048   ;;  %s2163_s11 = smov 51  }
  0x24   :  { %v46_v6 = vadd.f32 %v2264_v5, %v2258_v2  ;;  %v55_v7 = vmax.f32 %v2258_v2, %v2264_v5  ;;  %1983 = vmatprep.mubr.msk.f32.mxu0 %vm2159_vm0, %v2160_v9  ;;  %v2271_v10 = vld [vmem:[#allocation5 + $0x30] sm:$0xff]  ;;  %v2273_v11 = vld [vmem:[#allocation5 + $0x38] sm:$0xff]  ;;  %v2279_v14 = vld [vmem:[#allocation5 + $0x28] sm:$0xff]  ;;  %v2288_v20 = vand.u32 127, %v58_v18  ;;  %vm138_vm3 = vcmask 15360   ;;  %s2164_s12 = smov 49  }
  0x25   :  { %44 = vadd.xlane.f32.xlu0 %v43_v3  ;;  %53 = vmax.xlane.f32.xlu1 %v52_v4  ;;  %v332_v13 = vadd.f32 %v2273_v11, %v2271_v10  ;;  %v329_v15 = vadd.f32 %v2279_v14, %v2275_v12  ;;  %v340_v16 = vmax.f32 %v2271_v10, %v2273_v11  ;;  %v36_v29 = vld [vmem:[%s3874_s2] sm:$0x3]  ;;  %vm145_vm4 = vcmask 1041408   ;;  %v38_v42 = vld [vmem:[%s3875_s3 + $0x8] sm:$0xff]  ;;  %s2165_s13 = smov 48   ;;  %s2166_s14 = smov 47  }
  0x26   :  { %v337_v17 = vmax.f32 %v2275_v12, %v2279_v14  ;;  %vm60_vm1 = vcmp.eq.s32.totalorder %v2288_v20, 0  ;;  %v37_v30 = vld [vmem:[%s3875_s3] sm:$0xff]  ;;  %vm2333_vm5 = vcmp.lt.s32.totalorder %v58_v18, 256  ;;  %s2162_s3 = smov 50   ;;  %s2167_s15 = smov 46   ;;  %vm619_vm6 = vcmp.lt.s32.totalorder %v2288_v20, 51 }
  0x27   :  { %1988 = vmatprep.mubr.msk.f32.mxu1 %vm138_vm3, %v37_v30  ;;  %s2168_s16 = smov 45   ;;  %s2169_s17 = smov 35   ;;  %vm643_vm7 = vcmp.lt.s32.totalorder %v2288_v20, 50  ;;  %vm667_vm8 = vcmp.lt.s32.totalorder %v2288_v20, 49  ;;  %vm610_vm11 = vcmp.ge.s32.totalorder %v2288_v20, 48  ;;  %vm691_vm13 = vcmp.lt.s32.totalorder %v2288_v20, 48 }
  0x28   :  { %s2170_s18 = smov 34   ;;  %s2171_s19 = smov 33  }
  0x29   :  { %47 = vadd.xlane.f32.xlu0 %v46_v6  ;;  %56 = vmax.xlane.f32.xlu1 %v55_v7  ;;  %s2172_s20 = smov 32   ;;  %s2173_s21 = smov 31  }
  0x2a   :  { %s2174_s22 = smov 30   ;;  %s2175_s0 = smov 29  }
  0x2b   :  { %s2176_s23 = smov 19   ;;  %s2177_s24 = smov 18  }
  0x2c   :  { %s2178_s25 = smov 17   ;;  %s2179_s26 = smov 15  }
  0x2d   :  { %333 = vadd.xlane.f32.xlu1 %v332_v13  ;;  %330 = vadd.xlane.f32.xlu0 %v329_v15  ;;  %s2180_s27 = smov 14   ;;  %s2181_s28 = smov 13  }
  0x2e   :  { %s2182_s5 = smov 3   ;;  %s2183_s6 = smov 2  }
  0x2f   :  { %s2184_s1 = smov 1   ;;  %s2185_s7 = smov 127  }
  0x30   :  { %s2186_s8 = smov 126   ;;  %s2187_s9 = smov 125  }
  0x31   :  { %341 = vmax.xlane.f32.xlu1 %v340_v16  ;;  %338 = vmax.xlane.f32.xlu0 %v337_v17  ;;  %v2161_v17 = vmov 1966171168   ;;  %s2188_s2 = smov 115   ;;  %s2189_s10 = smov 114  }
  0xb2   :  { %v45_v19 = vpop.xlane.xlu0 %44  ;;  %v54_v21 = vpop.xlane.xlu1 %53 }
  0xb3   :  { %v50_v22 = vmul.f32 0.00390625, %v45_v19 }
  0xb5   :  { %v61_v26 = vsel %vm60_vm1, %v50_v22, %v54_v21 }
  0xb6   :  { %v48_v23 = vpop.xlane.xlu0 %47  ;;  %v57_v24 = vpop.xlane.xlu1 %56 }
  0xb7   :  { %v51_v25 = vmul.f32 0.00390625, %v48_v23 }
  0xb9   :  { %v62_v27 = vsel %vm60_vm1, %v51_v25, %v57_v24 }
  0xba   :  { %v2004_v28 = vpack.c.bf16 %v62_v27, %v61_v26  ;;  %v334_v31 = vpop.xlane.xlu1 %333  ;;  %v331_v32 = vpop.xlane.xlu0 %330  ;;  %v2326_v26 = vshrl.u32 %v58_v18, 7 }
  0xbb   :  { %v336_v33 = vmul.f32 0.00390625, %v334_v31  ;;  %v335_v34 = vmul.f32 0.00390625, %v331_v32 }
  0xbc   :  { %2005 = vmatpush3.bf16.msra.mxu0 %v2004_v28  ;;  %vm609_vm9 = vcmp.lt.s32.totalorder %v2326_v26, 2 }
  0xbe   :  { %v342_v35 = vpop.xlane.xlu1 %341  ;;  %v339_v36 = vpop.xlane.xlu0 %338 }
  0xbf   :  { %1984 = vmatmul.mubr.msk.f32.vlgmr.msra.gmra.mrb[0].mxu0 %vm63_vm2, %v36_v29  ;;  %v344_v38 = vsel %vm60_vm1, %v336_v33, %v342_v35  ;;  %v343_v39 = vsel %vm60_vm1, %v335_v34, %v339_v36 }
  0xc0   :  { %2000 = vmatprep.mubr.msk.f32.mxu0 %vm138_vm3, %v37_v30  ;;  %v2007_v43 = vpack.c.bf16 %v344_v38, %v343_v39 }
 0x192   :  { %v133_v37 = vpop.f32.mrb[0].mxu0 }
 0x193   :  { %v137_v40 = vmax.f32 %v133_v37, 0.0  ;;  %v1985_v41 = vpop.f32.mrb[1].mxu0 }
 0x195   :  { %1986 = vmatprep.subr.msk.mxu1 %vm145_vm4, %v137_v40 }
 0x196   :  { %1987 = vmatpush3.msk.msra.mxu1 %vm145_vm4, %v137_v40 }
 0x197   :  { %1989 = vmatmul.mubr.msk.f32.vlgmr.msra.gmra.mrb[0].mxu1 %vm138_vm3, %v38_v42  ;;  %2006 = vmatprep.subr.bf16.mxu1 %v2158_v8 }
 0x198   :  { %2008 = vmatpush3.bf16.msra.mxu1 %v2007_v43  ;;  %1995 = vmatprep.mubr.msk.f32.mxu1 %vm2159_vm0, %v2160_v9 }
 0x19b   :  { %1996 = vmatmul.mubr.msk.f32.vlgmr.msra.gmra.mrb[2].mxu1 %vm63_vm2, %v36_v29 }
 0x26a   :  { %v1990_v44 = vpop.f32.mrb[0].mxu1 }
 0x26b   :  { %v215_v45 = vpop.f32.mrb[1].mxu1  ;;  %v227_v46 = vsel %vm138_vm3, %v1990_v44, 0.0 }
 0x26c   :  { %228 = vadd.xlane.f32.xlu1 %v227_v46  ;;  %v224_v47 = vsel %vm138_vm3, %v215_v45, 0.0 }
 0x26d   :  { %225 = vadd.xlane.f32.xlu0 %v224_v47 }
 0x26e   :  { %v411_v48 = vpop.f32.mrb[2].mxu1 }
 0x26f   :  { %v415_v49 = vmax.f32 %v411_v48, 0.0  ;;  %v1997_v50 = vpop.f32.mrb[3].mxu1 }
 0x271   :  { %1998 = vmatprep.subr.msk.mxu0 %vm145_vm4, %v415_v49 }
 0x272   :  { %1999 = vmatpush3.msk.msra.mxu0 %vm145_vm4, %v415_v49 }
 0x273   :  { %2001 = vmatmul.mubr.msk.f32.vlgmr.msra.gmra.mrb[2].mxu0 %vm138_vm3, %v38_v42 }
 0x2f9   :  { %v229_v51 = vpop.xlane.xlu1 %228 }
 0x2fa   :  { %v1861_v52 = vmul.f32 -1.442695, %v229_v51  ;;  %v226_v53 = vpop.xlane.xlu0 %225 }
 0x2fb   :  { %v1860_v54 = vmul.f32 -1.442695, %v226_v53 }
 0x2fc   :  { %2067 = vpow2.f32 %v1861_v52 }
 0x2fd   :  { %2069 = vpow2.f32 %v1860_v54 }
 0x306   :  { %v2068_v55 = vpop.eup %2067 }
 0x307   :  { %v2070_v56 = vpop.eup %2069  ;;  %v237_v57 = vadd.f32 1.0, %v2068_v55 }
 0x308   :  { %v236_v58 = vadd.f32 1.0, %v2070_v56 }
 0x309   :  { %2071 = vrcp.f32 %v237_v57 }
 0x30a   :  { %2073 = vrcp.f32 %v236_v58 }
 0x313   :  { %v2072_v59 = vpop.eup %2071 }
 0x314   :  { %v2074_v60 = vpop.eup %2073  ;;  %v244_v61 = vmul.f32 %v2072_v59, %v2258_v2  ;;  %v245_v62 = vmul.f32 %v2072_v59, %v2264_v5  ;;  %v271_v2 = vunpack.c.l.s4 %v2161_v17 }
 0x315   :  { %v242_v63 = vmul.f32 %v2074_v60, %v2254_v0  ;;  %v243_v3 = vmul.f32 %v2074_v60, %v2256_v1 }
 0x316   :  { %248 = vst [vmem:[#allocation8 + $0x10] sm:$0xff] %v244_v61  ;;  %249 = vst [vmem:[#allocation8 + $0x18] sm:$0xff] %v245_v62  ;;  %v272_v25 = vunpack.c.0.s8 %v271_v2 }
 0x317   :  { %246 = vst [vmem:[#allocation8] sm:$0xff] %v242_v63  ;;  %247 = vst [vmem:[#allocation8 + $0x8] sm:$0xff] %v243_v3  ;;  %v250_v4 = vadd.f32 %v244_v61, %v242_v63  ;;  %v257_v6 = vadd.f32 %v245_v62, %v243_v3  ;;  %v290_v7 = vmax.f32 %v242_v63, %v244_v61 }
 0x318   :  { %v297_v8 = vmax.f32 %v243_v3, %v245_v62  ;;  %v2329_v35 = vsub.s32 %v272_v25, %v2326_v26 }
 0x319   :  { %v251_v9 = vrot.slane %v250_v4, 4  ;;  %v258_v13 = vrot.slane %v257_v6, 4  ;;  %v291_v15 = vrot.slane %v290_v7, 4 }
 0x31a   :  { %v298_v16 = vrot.slane %v297_v8, 4 }
 0x31b   :  { %v252_v19 = vadd.f32 %v251_v9, %v250_v4  ;;  %v259_v5 = vadd.f32 %v258_v13, %v257_v6  ;;  %v292_v21 = vmax.f32 %v290_v7, %v291_v15 }
 0x31c   :  { %v299_v0 = vmax.f32 %v297_v8, %v298_v16 }
 0x31d   :  { %v253_v22 = vrot.slane %v252_v19, 2  ;;  %v260_v1 = vrot.slane %v259_v5, 2  ;;  %v293_v23 = vrot.slane %v292_v21, 2 }
 0x31e   :  { %v300_v24 = vrot.slane %v299_v0, 2 }
 0x31f   :  { %v254_v27 = vadd.f32 %v253_v22, %v252_v19  ;;  %v261_v28 = vadd.f32 %v260_v1, %v259_v5  ;;  %v294_v29 = vmax.f32 %v292_v21, %v293_v23 }
 0x320   :  { %v301_v30 = vmax.f32 %v299_v0, %v300_v24 }
 0x321   :  { %v255_v31 = vrot.slane %v254_v27, 1  ;;  %v262_v32 = vrot.slane %v261_v28, 1  ;;  %v295_v33 = vrot.slane %v294_v29, 1 }
 0x322   :  { %v302_v34 = vrot.slane %v301_v30, 1 }
 0x323   :  { %v256_v36 = vadd.f32 %v255_v31, %v254_v27  ;;  %v263_v37 = vadd.f32 %v262_v32, %v261_v28  ;;  %v296_v38 = vmax.f32 %v294_v29, %v295_v33 }
 0x324   :  { %v303_v39 = vmax.f32 %v301_v30, %v302_v34 }
 0x325   :  { %v265_v40 = vmul.f32 0.0625, %v256_v36  ;;  %v266_v41 = vmul.f32 0.0625, %v263_v37 }
 0x326   :  { %v306_v42 = vcombine.low %v296_v38, %v303_v39 }
 0x327   :  { %v269_v43 = vcombine.low %v265_v40, %v266_v41 }
 0x328   :  { %v313_v44 = vrot.slane %v306_v42, %v2329_v35 }
 0x329   :  { %v276_v46 = vrot.slane %v269_v43, %v2329_v35 }
 0x32a   :  { %v320_v47 = vrot.slane %v313_v44, %v2329_v35 }
 0x32b   :  { %v283_v48 = vrot.slane %v276_v46, %v2329_v35 }
 0x32c   :  { %323 = vst.msk [vmem:[#allocation2 + $0x2] ss:$4 sm:$0x3] %vm2333_vm5, %v320_v47 }
 0x32d   :  { %289 = vst.msk [vmem:[#allocation2] ss:$4 sm:$0x3] %vm2333_vm5, %v283_v48 }
 0x346   :  { %v2002_v49 = vpop.f32.mrb[2].mxu0 }
 0x347   :  { %v485_v50 = vpop.f32.mrb[3].mxu0  ;;  %v497_v51 = vsel %vm138_vm3, %v2002_v49, 0.0  ;;  %v2442_v49 = vadd.s32 128, %v2288_v20 }
 0x348   :  { %498 = vadd.xlane.f32.xlu1 %v497_v51  ;;  %v494_v18 = vsel %vm138_vm3, %v485_v50, 0.0  ;;  %v2455_v50 = vand.u32 15, %v2288_v20 }
 0x349   :  { %495 = vadd.xlane.f32.xlu0 %v494_v18 }
 0x34a   :  { %vm3878_vm10 = vcmp.ge.s32.totalorder %v2455_v50, 3  ;;  %vm3882_vm14 = vcmp.ge.s32.totalorder %v2455_v50, 2  ;;  %vm3880_vm0 = vcmp.ge.s32.totalorder %v2455_v50, 1  ;;  %vm3877_vm1 = vcmp.lt.s32.totalorder %v2455_v50, 15 }
 0x34b   :  { %vm2515_vm2 = vmand %vm610_vm11, %vm3878_vm10 }
 0x34c   :  { %vm2569_vm10 = vmand %vm610_vm11, %vm3882_vm14 }
 0x3d5   :  { %v499_v52 = vpop.xlane.xlu1 %498 }
 0x3d6   :  { %v1867_v53 = vmul.f32 -1.442695, %v499_v52  ;;  %v496_v54 = vpop.xlane.xlu0 %495 }
 0x3d7   :  { %v1866_v55 = vmul.f32 -1.442695, %v496_v54  ;;  %v2462_v54 = vand.u32 15, %v2442_v49 }
 0x3d8   :  { %2075 = vpow2.f32 %v1867_v53 }
 0x3d9   :  { %2077 = vpow2.f32 %v1866_v55  ;;  %vm3879_vm12 = vcmp.ge.s32.totalorder %v2462_v54, 3  ;;  %vm3887_vm15 = vcmp.ge.s32.totalorder %v2462_v54, 2  ;;  %vm3881_vm3 = vcmp.ge.s32.totalorder %v2462_v54, 1 }
 0x3da   :  { %vm3883_vm4 = vcmp.lt.s32.totalorder %v2462_v54, 15 }
 0x3e2   :  { %v2076_v56 = vpop.eup %2075 }
 0x3e3   :  { %v2078_v57 = vpop.eup %2077  ;;  %v507_v58 = vadd.f32 1.0, %v2076_v56 }
 0x3e4   :  { %v506_v59 = vadd.f32 1.0, %v2078_v57 }
 0x3e5   :  { %2079 = vrcp.f32 %v507_v58 }
 0x3e6   :  { %2081 = vrcp.f32 %v506_v59 }
 0x3ef   :  { %v2080_v60 = vpop.eup %2079 }
 0x3f0   :  { %v2082_v61 = vpop.eup %2081  ;;  %v514_v62 = vmul.f32 %v2080_v60, %v2271_v10  ;;  %v515_v63 = vmul.f32 %v2080_v60, %v2273_v11 }
 0x3f1   :  { %v512_v3 = vmul.f32 %v2082_v61, %v2275_v12  ;;  %v513_v4 = vmul.f32 %v2082_v61, %v2279_v14 }
 0x3f2   :  { %519 = vst [vmem:[#allocation8 + $0x30] sm:$0xff] %v514_v62  ;;  %520 = vst [vmem:[#allocation8 + $0x38] sm:$0xff] %v515_v63 }
 0x3f3   :  { %517 = vst [vmem:[#allocation8 + $0x20] sm:$0xff] %v512_v3  ;;  %518 = vst [vmem:[#allocation8 + $0x28] sm:$0xff] %v513_v4  ;;  %v521_v6 = vadd.f32 %v514_v62, %v512_v3  ;;  %v528_v7 = vadd.f32 %v515_v63, %v513_v4  ;;  %v557_v8 = vmax.f32 %v512_v3, %v514_v62 }
 0x3f4   :  { %v564_v9 = vmax.f32 %v513_v4, %v515_v63 }
 0x3f5   :  { %v522_v13 = vrot.slane %v521_v6, 4  ;;  %v529_v15 = vrot.slane %v528_v7, 4  ;;  %v558_v16 = vrot.slane %v557_v8, 4 }
 0x3f6   :  { %v565_v17 = vrot.slane %v564_v9, 4 }
 0x3f7   :  { %v523_v2 = vadd.f32 %v522_v13, %v521_v6  ;;  %v530_v10 = vadd.f32 %v529_v15, %v528_v7  ;;  %v559_v19 = vmax.f32 %v557_v8, %v558_v16 }
 0x3f8   :  { %v566_v11 = vmax.f32 %v564_v9, %v565_v17 }
 0x3f9   :  { %v524_v5 = vrot.slane %v523_v2, 2  ;;  %v531_v12 = vrot.slane %v530_v10, 2  ;;  %v560_v21 = vrot.slane %v559_v19, 2 }
 0x3fa   :  { %v567_v14 = vrot.slane %v566_v11, 2 }
 0x3fb   :  { %v525_v0 = vadd.f32 %v524_v5, %v523_v2  ;;  %v532_v22 = vadd.f32 %v531_v12, %v530_v10  ;;  %v561_v1 = vmax.f32 %v559_v19, %v560_v21 }
 0x3fc   :  { %v568_v23 = vmax.f32 %v566_v11, %v567_v14 }
 0x3fd   :  { %v526_v24 = vrot.slane %v525_v0, 1  ;;  %v533_v25 = vrot.slane %v532_v22, 1  ;;  %v562_v27 = vrot.slane %v561_v1, 1 }
 0x3fe   :  { %v569_v28 = vrot.slane %v568_v23, 1 }
 0x3ff   :  { %v527_v29 = vadd.f32 %v526_v24, %v525_v0  ;;  %v534_v30 = vadd.f32 %v533_v25, %v532_v22  ;;  %v563_v31 = vmax.f32 %v561_v1, %v562_v27 }
 0x400   :  { %v570_v32 = vmax.f32 %v568_v23, %v569_v28 }
 0x401   :  { %v535_v33 = vmul.f32 0.0625, %v527_v29  ;;  %v536_v34 = vmul.f32 0.0625, %v534_v30 }
 0x402   :  { %v573_v36 = vcombine.low %v563_v31, %v570_v32 }
 0x403   :  { %v539_v37 = vcombine.low %v535_v33, %v536_v34 }
 0x404   :  { %v580_v38 = vrot.slane %v573_v36, %v2329_v35 }
 0x405   :  { %v546_v39 = vrot.slane %v539_v37, %v2329_v35 }
 0x406   :  { %v587_v40 = vrot.slane %v580_v38, %v2329_v35 }
 0x407   :  { %v553_v41 = vrot.slane %v546_v39, %v2329_v35 }
 0x408   :  { %590 = vst.msk [vmem:[#allocation2 + $0x3] ss:$4 sm:$0x3] %vm2333_vm5, %v587_v40 }
 0x409   :  { %556 = vst.msk [vmem:[#allocation2 + $0x1] ss:$4 sm:$0x3] %vm2333_vm5, %v553_v41  ;;  %vm713_vm5 = vcmp.lt.s32.totalorder %v2288_v20, 47 }
 0x410   :  { %v2358_v42 = vld [vmem:[#allocation2] sm:$0xff] }
 0x411   :  { %639 = vrot.lane.b32.xlu1 %v2358_v42, %s2162_s3  ;;  %615 = vrot.lane.b32.xlu0 %v2358_v42, %s2163_s11  ;;  %v2364_v43 = vcombine.high %v2358_v42, %v2358_v42 }
 0x415   :  { %663 = vrot.lane.b32.xlu0 %v2358_v42, %s2164_s12  ;;  %617 = vrot.lane.b32.xlu1 %v2364_v43, %s2163_s11  ;;  %s2191_s11 = smov 112  }
 0x419   :  { %687 = vrot.lane.b32.xlu0 %v2358_v42, %s2165_s13  ;;  %641 = vrot.lane.b32.xlu1 %v2364_v43, %s2162_s3  ;;  %s2190_s3 = smov 113  }
 0x41d   :  { %709 = vrot.lane.b32.xlu0 %v2358_v42, %s2166_s14  ;;  %665 = vrot.lane.b32.xlu1 %v2364_v43, %s2164_s12  ;;  %s2427_s12 = sld [smem:[#allocation4]] }
 0x421   :  { %733 = vrot.lane.b32.xlu0 %v2358_v42, %s2167_s15  ;;  %689 = vrot.lane.b32.xlu1 %v2364_v43, %s2165_s13  ;;  %s2429_s13 = sld [smem:[#allocation4 + $0x31]] }
 0x423   :  { %v632_v55 = vstv %s2427_s12  ;;  %s2699_s12 = sld [smem:[#allocation4 + $0x3b]] }
 0x425   :  { %757 = vrot.lane.b32.xlu0 %v2358_v42, %s2168_s16  ;;  %711 = vrot.lane.b32.xlu1 %v2364_v43, %s2166_s14  ;;  %s2431_s14 = sld [smem:[#allocation4 + $0x1]] }
 0x427   :  { %v633_v56 = vstv %s2429_s13  ;;  %s2199_s13 = smov 95  }
 0x428   :  { %v634_v4 = vsel %vm609_vm9, %v632_v55, %v633_v56 }
 0x429   :  { %783 = vrot.lane.b32.xlu0 %v2358_v42, %s2169_s17  ;;  %735 = vrot.lane.b32.xlu1 %v2364_v43, %s2167_s15  ;;  %s2437_s15 = sld [smem:[#allocation4 + $0x32]] }
 0x42b   :  { %v656_v59 = vstv %s2431_s14  ;;  %s2731_s14 = sld [smem:[#allocation4 + $0xb]] }
 0x42d   :  { %807 = vrot.lane.b32.xlu0 %v2358_v42, %s2170_s18  ;;  %759 = vrot.lane.b32.xlu1 %v2364_v43, %s2168_s16  ;;  %s2439_s16 = sld [smem:[#allocation4 + $0x2]] }
 0x42f   :  { %v657_v60 = vstv %s2437_s15  ;;  %s2733_s15 = sld [smem:[#allocation4 + $0x3c]] }
 0x430   :  { %v2505_v8 = vsel %vm609_vm9, %v656_v59, %v657_v60 }
 0x431   :  { %831 = vrot.lane.b32.xlu0 %v2358_v42, %s2171_s19  ;;  %785 = vrot.lane.b32.xlu1 %v2364_v43, %s2169_s17  ;;  %s2192_s17 = smov 111  }
 0x433   :  { %v680_v63 = vstv %s2439_s16  ;;  %s2200_s16 = smov 94  }
 0x435   :  { %855 = vrot.lane.b32.xlu0 %v2358_v42, %s2172_s20  ;;  %809 = vrot.lane.b32.xlu1 %v2364_v43, %s2170_s18  ;;  %s2448_s18 = sld [smem:[#allocation4 + $0x33]] }
 0x439   :  { %877 = vrot.lane.b32.xlu0 %v2358_v42, %s2173_s21  ;;  %833 = vrot.lane.b32.xlu1 %v2364_v43, %s2171_s19  ;;  %s2450_s19 = sld [smem:[#allocation4 + $0x4]] }
 0x43b   :  { %v681_v3 = vstv %s2448_s18  ;;  %s2772_s18 = sld [smem:[#allocation4 + $0x3d]] }
 0x43c   :  { %v2522_v16 = vsel %vm609_vm9, %v680_v63, %v681_v3 }
 0x43d   :  { %901 = vrot.lane.b32.xlu0 %v2358_v42, %s2174_s22  ;;  %857 = vrot.lane.b32.xlu1 %v2364_v43, %s2172_s20  ;;  %s2452_s20 = sld [smem:[#allocation4 + $0x35]] }
 0x43f   :  { %v726_v6 = vstv %s2450_s19  ;;  %s2201_s19 = smov 93  }
 0x441   :  { %925 = vrot.lane.b32.xlu0 %v2358_v42, %s2175_s0  ;;  %879 = vrot.lane.b32.xlu1 %v2364_v43, %s2173_s21  ;;  %s2193_s21 = smov 110  }
 0x443   :  { %v727_v7 = vstv %s2452_s20  ;;  %s2787_s20 = sld [smem:[#allocation4 + $0xd]] }
 0x444   :  { %v728_v19 = vsel %vm609_vm9, %v726_v6, %v727_v7 }
 0x445   :  { %951 = vrot.lane.b32.xlu0 %v2358_v42, %s2176_s23  ;;  %903 = vrot.lane.b32.xlu1 %v2364_v43, %s2174_s22  ;;  %s2468_s22 = sld [smem:[#allocation4 + $0x3]] }
 0x449   :  { %975 = vrot.lane.b32.xlu0 %v2358_v42, %s2177_s24  ;;  %927 = vrot.lane.b32.xlu1 %v2364_v43, %s2175_s0  ;;  %s2471_s0 = sld [smem:[#allocation4 + $0x5]] }
 0x44b   :  { %v702_v10 = vstv %s2468_s22  ;;  %s2202_s22 = smov 83  }
 0x44d   :  { %999 = vrot.lane.b32.xlu0 %v2358_v42, %s2178_s25  ;;  %953 = vrot.lane.b32.xlu1 %v2364_v43, %s2176_s23  ;;  %s2477_s23 = sld [smem:[#allocation4 + $0x36]] }
 0x44f   :  { %v750_v5 = vstv %s2471_s0  ;;  %s2818_s0 = sld [smem:[#allocation4 + $0xe]] }
 0x451   :  { %1023 = vrot.lane.b32.xlu0 %v2358_v42, %s2157_s30  ;;  %977 = vrot.lane.b32.xlu1 %v2364_v43, %s2177_s24  ;;  %s2194_s24 = smov 109  }
 0x453   :  { %v751_v22 = vstv %s2477_s23  ;;  %s2820_s23 = sld [smem:[#allocation4 + $0x3f]] }
 0x454   :  { %v752_v40 = vsel %vm609_vm9, %v750_v5, %v751_v22 }
 0x455   :  { %1045 = vrot.lane.b32.xlu0 %v2358_v42, %s2179_s26  ;;  %1001 = vrot.lane.b32.xlu1 %v2364_v43, %s2178_s25  ;;  %s2493_s25 = sld [smem:[#allocation4 + $0x6]] }
 0x459   :  { %1069 = vrot.lane.b32.xlu0 %v2358_v42, %s2180_s27  ;;  %1025 = vrot.lane.b32.xlu1 %v2364_v43, %s2157_s30 }
 0x45b   :  { %v774_v28 = vstv %s2493_s25  ;;  %s2847_s25 = sld [smem:[#allocation4 + $0xf]] }
 0x45d   :  { %1093 = vrot.lane.b32.xlu0 %v2358_v42, %s2181_s28  ;;  %1047 = vrot.lane.b32.xlu1 %v2364_v43, %s2179_s26  ;;  %s2495_s26 = sld [smem:[#allocation4 + $0x37]] }
 0x461   :  { %1117 = vrot.lane.b32.xlu0 %v2358_v42, %s2182_s5  ;;  %1071 = vrot.lane.b32.xlu1 %v2364_v43, %s2180_s27  ;;  %s2508_s27 = sld [smem:[#allocation4 + $0x34]] }
 0x463   :  { %v775_v29 = vstv %s2495_s26  ;;  %s2849_s26 = sld [smem:[#allocation4 + $0x40]] }
 0x465   :  { %1139 = vrot.lane.b32.xlu0 %v2358_v42, %s2183_s6  ;;  %1095 = vrot.lane.b32.xlu1 %v2364_v43, %s2181_s28  ;;  %s2195_s28 = smov 99  }
 0x467   :  { %v703_v38 = vstv %s2508_s27  ;;  %s2204_s27 = smov 81  }
 0x469   :  { %1161 = vrot.lane.b32.xlu0 %v2358_v42, %s2184_s1  ;;  %1119 = vrot.lane.b32.xlu1 %v2364_v43, %s2182_s5  ;;  %s2553_s5 = sld [smem:[#allocation4 + $0x7]] }
 0x46d   :  { %1203 = vrot.lane.b32.xlu0 %v2358_v42, %s2185_s7  ;;  %1141 = vrot.lane.b32.xlu1 %v2364_v43, %s2183_s6  ;;  %s2563_s6 = sld [smem:[#allocation4 + $0x38]] }
 0x46f   :  { %v800_v3 = vstv %s2553_s5  ;;  %s2881_s5 = sld [smem:[#allocation4 + $0x41]] }
 0x471   :  { %1225 = vrot.lane.b32.xlu0 %v2358_v42, %s2186_s8  ;;  %1163 = vrot.lane.b32.xlu1 %v2364_v43, %s2184_s1  ;;  %s2196_s1 = smov 98  }
 0x475   :  { %1247 = vrot.lane.b32.xlu0 %v2358_v42, %s2187_s9  ;;  %1205 = vrot.lane.b32.xlu1 %v2364_v43, %s2185_s7  ;;  %s2606_s7 = sld [smem:[#allocation4 + $0x8]] }
 0x479   :  { %1271 = vrot.lane.b32.xlu0 %v2358_v42, %s2188_s2  ;;  %1227 = vrot.lane.b32.xlu1 %v2364_v43, %s2186_s8  ;;  %s2608_s8 = sld [smem:[#allocation4 + $0x39]] }
 0x47d   :  { %1295 = vrot.lane.b32.xlu0 %v2358_v42, %s2189_s10  ;;  %1249 = vrot.lane.b32.xlu1 %v2364_v43, %s2187_s9  ;;  %s2197_s9 = smov 97  }
 0x47f   :  { %v825_v22 = vstv %s2608_s8  ;;  %s2206_s8 = smov 79  }
 0x481   :  { %1319 = vrot.lane.b32.xlu0 %v2358_v42, %s2190_s3  ;;  %1273 = vrot.lane.b32.xlu1 %v2364_v43, %s2188_s2  ;;  %s2655_s2 = sld [smem:[#allocation4 + $0x9]] }
 0x483   :  { %v640_v35 = vpop.permute.xlu1 %639  ;;  %v616_v44 = vpop.permute.xlu0 %615 }
 0x485   :  { %1343 = vrot.lane.b32.xlu0 %v2358_v42, %s2191_s11  ;;  %1297 = vrot.lane.b32.xlu1 %v2364_v43, %s2189_s10  ;;  %s2657_s10 = sld [smem:[#allocation4 + $0x3a]] }
 0x487   :  { %v664_v45 = vpop.permute.xlu0 %663  ;;  %v618_v46 = vpop.permute.xlu1 %617 }
 0x488   :  { %v2433_v47 = vsel %vm619_vm6, %v616_v44, %v618_v46  ;;  %v2435_v48 = vsel %vm619_vm6, %v618_v46, %v616_v44  ;;  %vm2545_vm6 = vmand %vm610_vm11, %vm3877_vm1  ;;  %vm605_vm1 = vcmp.lt.s32.totalorder %v2455_v50, 13 }
 0x489   :  { %1365 = vrot.lane.b32.xlu0 %v2358_v42, %s2192_s17  ;;  %1321 = vrot.lane.b32.xlu1 %v2364_v43, %s2190_s3  ;;  %v628_v12 = vsel %vm2515_vm2, %v2435_v48, 0.0  ;;  %v629_v21 = vsel %vm3879_vm12, %v2433_v47, 0.0  ;;  %vm606_vm2 = vcmp.lt.s32.totalorder %v2462_v54, 13  ;;  %vm761_vm12 = vcmp.lt.s32.totalorder %v2288_v20, 45  ;;  %s2198_s3 = smov 96  }
 0x48a   :  { %v635_v30 = vmul.f32 %v634_v4, %v628_v12  ;;  %v636_v31 = vmul.f32 %v634_v4, %v629_v21  ;;  %v801_v4 = vstv %s2563_s6  ;;  %s2205_s6 = smov 80  }
 0x48b   :  { %v688_v51 = vpop.permute.xlu0 %687  ;;  %v642_v18 = vpop.permute.xlu1 %641 }
 0x48c   :  { %v2457_v52 = vsel %vm643_vm7, %v640_v35, %v642_v18  ;;  %v2459_v53 = vsel %vm643_vm7, %v642_v18, %v640_v35  ;;  %vm603_vm7 = vcmp.lt.s32.totalorder %v2455_v50, 14  ;;  %v776_v18 = vsel %vm609_vm9, %v774_v28, %v775_v29 }
 0x48d   :  { %1389 = vrot.lane.b32.xlu0 %v2358_v42, %s2193_s21  ;;  %1345 = vrot.lane.b32.xlu1 %v2364_v43, %s2191_s11  ;;  %v652_v36 = vsel %vm2569_vm10, %v2459_v53, 0.0  ;;  %v653_v37 = vsel %vm3887_vm15, %v2457_v52, 0.0  ;;  %vm781_vm10 = vcmp.ge.s32.totalorder %v2288_v20, 32  ;;  %s2697_s11 = sld [smem:[#allocation4 + $0xa]] }
 0x48e   :  { %v659_v52 = vmul.f32 %v2505_v8, %v652_v36  ;;  %v660_v53 = vmul.f32 %v2505_v8, %v653_v37  ;;  %v848_v37 = vstv %s2655_s2  ;;  %s2943_s2 = sld [smem:[#allocation4 + $0x43]] }
 0x48f   :  { %v710_v57 = vpop.permute.xlu0 %709  ;;  %v666_v58 = vpop.permute.xlu1 %665 }
 0x490   :  { %v2481_v61 = vsel %vm667_vm8, %v664_v45, %v666_v58  ;;  %v2483_v62 = vsel %vm667_vm8, %v666_v58, %v664_v45  ;;  %vm3884_vm8 = vcmp.lt.s32.totalorder %v2462_v54, 14 }
 0x491   :  { %1413 = vrot.lane.b32.xlu0 %v2358_v42, %s2194_s24  ;;  %1367 = vrot.lane.b32.xlu1 %v2364_v43, %s2192_s17  ;;  %v677_v59 = vsel %vm3881_vm3, %v2481_v61, 0.0  ;;  %v704_v61 = vsel %vm609_vm9, %v702_v10, %v703_v38  ;;  %v849_v38 = vstv %s2657_s10  ;;  %s2764_s17 = sld [smem:[#allocation4 + $0xc]]  ;;  %s2207_s10 = smov 78  }
 0x492   :  { %v684_v10 = vmul.f32 %v2522_v16, %v677_v59 }
 0x493   :  { %v734_v9 = vpop.permute.xlu0 %733  ;;  %v690_v13 = vpop.permute.xlu1 %689 }
 0x494   :  { %v2526_v17 = vsel %vm691_vm13, %v688_v51, %v690_v13  ;;  %v2530_v2 = vsel %vm691_vm13, %v690_v13, %v688_v51  ;;  %vm737_vm13 = vcmp.lt.s32.totalorder %v2288_v20, 46 }
 0x495   :  { %1439 = vrot.lane.b32.xlu0 %v2358_v42, %s2195_s28  ;;  %1391 = vrot.lane.b32.xlu1 %v2364_v43, %s2193_s21  ;;  %v698_v12 = vsel %vm610_vm11, %v2530_v2, 0.0  ;;  %v706_v29 = vmul.f32 %v704_v61, %v2526_v17  ;;  %s2789_s21 = sld [smem:[#allocation4 + $0x3e]] }
 0x496   :  { %v705_v28 = vmul.f32 %v704_v61, %v698_v12  ;;  %v894_v61 = vstv %s2731_s14  ;;  %s2997_s14 = sld [smem:[#allocation4 + $0x45]] }
 0x497   :  { %v758_v14 = vpop.permute.xlu0 %757  ;;  %v712_v0 = vpop.permute.xlu1 %711 }
 0x498   :  { %v714_v23 = vsel %vm713_vm5, %v710_v57, %v712_v0  ;;  %v715_v24 = vsel %vm713_vm5, %v712_v0, %v710_v57  ;;  %vm2593_vm5 = vmand %vm610_vm11, %vm603_vm7 }
 0x499   :  { %v722_v25 = vsel %vm2545_vm6, %v715_v24, 0.0  ;;  %v723_v27 = vsel %vm3883_vm4, %v714_v23, 0.0  ;;  %1463 = vrot.lane.b32.xlu0 %v2358_v42, %s2196_s1  ;;  %1415 = vrot.lane.b32.xlu1 %v2364_v43, %s2194_s24  ;;  %vm2614_vm6 = vmand %vm610_vm11, %vm3880_vm0  ;;  %s2203_s24 = smov 82  }
 0x49a   :  { %v729_v32 = vmul.f32 %v728_v19, %v722_v25  ;;  %v730_v33 = vmul.f32 %v728_v19, %v723_v27  ;;  %v676_v58 = vsel %vm2614_vm6, %v2483_v62, 0.0 }
 0x49b   :  { %v784_v39 = vpop.permute.xlu0 %783  ;;  %v736_v41 = vpop.permute.xlu1 %735  ;;  %v683_v15 = vmul.f32 %v2522_v16, %v676_v58  ;;  %v824_v16 = vstv %s2606_s7  ;;  %s2912_s7 = sld [smem:[#allocation4 + $0x42]] }
 0x49c   :  { %v2618_v44 = vadd.f32 %v729_v32, %v635_v30  ;;  %v2620_v45 = vadd.f32 %v730_v33, %v636_v31  ;;  %v738_v46 = vsel %vm737_vm13, %v734_v9, %v736_v41  ;;  %v739_v47 = vsel %vm737_vm13, %v736_v41, %v734_v9  ;;  %vm2643_vm13 = vmand %vm610_vm11, %vm605_vm1 }
 0x49d   :  { %v746_v48 = vsel %vm2593_vm5, %v739_v47, 0.0  ;;  %v747_v51 = vsel %vm3884_vm8, %v738_v46, 0.0  ;;  %1487 = vrot.lane.b32.xlu0 %v2358_v42, %s2197_s9  ;;  %1441 = vrot.lane.b32.xlu1 %v2364_v43, %s2195_s28  ;;  %vm3902_vm5 = vcmp.ge.s32.totalorder %v2455_v50, 3  ;;  %vm3905_vm11 = vcmp.ge.s32.totalorder %v2462_v54, 3  ;;  %s2879_s28 = sld [smem:[#allocation4 + $0x10]] }
 0x49e   :  { %v753_v55 = vmul.f32 %v752_v40, %v746_v48  ;;  %v754_v56 = vmul.f32 %v752_v40, %v747_v51  ;;  %vm2686_vm6 = vmand %vm781_vm10, %vm3902_vm5  ;;  %v826_v34 = vsel %vm609_vm9, %v824_v16, %v825_v22  ;;  %vm835_vm5 = vcmp.lt.s32.totalorder %v2288_v20, 33 }
 0x49f   :  { %v808_v60 = vpop.permute.xlu0 %807  ;;  %v760_v63 = vpop.permute.xlu1 %759  ;;  %v918_v16 = vstv %s2764_s17  ;;  %s3047_s17 = sld [smem:[#allocation4 + $0x16]] }
 0x4a0   :  { %v2659_v6 = vadd.f32 %v753_v55, %v659_v52  ;;  %v2661_v7 = vadd.f32 %v754_v56, %v660_v53  ;;  %v762_v8 = vsel %vm761_vm12, %v758_v14, %v760_v63  ;;  %v763_v62 = vsel %vm761_vm12, %v760_v63, %v758_v14 }
 0x4a1   :  { %v770_v9 = vsel %vm2643_vm13, %v763_v62, 0.0  ;;  %v771_v13 = vsel %vm606_vm2, %v762_v8, 0.0  ;;  %1511 = vrot.lane.b32.xlu0 %v2358_v42, %s2198_s3  ;;  %1465 = vrot.lane.b32.xlu1 %v2364_v43, %s2196_s1  ;;  %vm787_vm12 = vcmp.lt.s32.totalorder %v2288_v20, 35  ;;  %v802_v14 = vsel %vm609_vm9, %v800_v3, %v801_v4  ;;  %s2910_s1 = sld [smem:[#allocation4 + $0x11]] }
 0x4a2   :  { %v777_v19 = vmul.f32 %v776_v18, %v770_v9  ;;  %v778_v11 = vmul.f32 %v776_v18, %v771_v13  ;;  %vm811_vm13 = vcmp.lt.s32.totalorder %v2288_v20, 34  ;;  %v850_v52 = vsel %vm609_vm9, %v848_v37, %v849_v38 }
 0x4a3   :  { %v832_v21 = vpop.permute.xlu0 %831  ;;  %v786_v0 = vpop.permute.xlu1 %785  ;;  %v870_v55 = vstv %s2697_s11  ;;  %v871_v56 = vstv %s2699_s12  ;;  %v895_v9 = vstv %s2733_s15  ;;  %s2980_s11 = sld [smem:[#allocation4 + $0x44]]  ;;  %s2208_s12 = smov 77  }
 0x4a4   :  { %v2701_v1 = vadd.f32 %v777_v19, %v683_v15  ;;  %v2703_v23 = vadd.f32 %v778_v11, %v684_v10  ;;  %v788_v24 = vsel %vm787_vm12, %v784_v39, %v786_v0  ;;  %v789_v2 = vsel %vm787_vm12, %v786_v0, %v784_v39  ;;  %vm2723_vm12 = vmand %vm781_vm10, %vm3882_vm14  ;;  %s3024_s15 = sld [smem:[#allocation4 + $0x15]] }
 0x4a5   :  { %v796_v25 = vsel %vm2686_vm6, %v789_v2, 0.0  ;;  %v797_v27 = vsel %vm3905_vm11, %v788_v24, 0.0  ;;  %1533 = vrot.lane.b32.xlu0 %v2358_v42, %s2199_s13  ;;  %1489 = vrot.lane.b32.xlu1 %v2364_v43, %s2197_s9  ;;  %vm2756_vm6 = vmand %vm781_vm10, %vm3880_vm0  ;;  %vm859_vm11 = vcmp.lt.s32.totalorder %v2288_v20, 32  ;;  %v872_v4 = vsel %vm609_vm9, %v870_v55, %v871_v56  ;;  %s2941_s9 = sld [smem:[#allocation4 + $0x12]] }
 0x4a6   :  { %v803_v30 = vmul.f32 %v802_v14, %v796_v25  ;;  %v804_v31 = vmul.f32 %v802_v14, %v797_v27  ;;  %v896_v14 = vsel %vm609_vm9, %v894_v61, %v895_v9  ;;  %v919_v25 = vstv %s2772_s18  ;;  %s3049_s18 = sld [smem:[#allocation4 + $0x47]] }
 0x4a7   :  { %v856_v33 = vpop.permute.xlu0 %855  ;;  %v810_v36 = vpop.permute.xlu1 %809 }
 0x4a8   :  { %v2735_v17 = vadd.f32 %v803_v30, %v705_v28  ;;  %v2737_v39 = vadd.f32 %v804_v31, %v706_v29  ;;  %v812_v40 = vsel %vm811_vm13, %v808_v60, %v810_v36  ;;  %v813_v41 = vsel %vm811_vm13, %v810_v36, %v808_v60 }
 0x4a9   :  { %v820_v35 = vsel %vm2723_vm12, %v813_v41, 0.0  ;;  %v821_v46 = vsel %vm3887_vm15, %v812_v40, 0.0  ;;  %1557 = vrot.lane.b32.xlu0 %v2358_v42, %s2200_s16  ;;  %1513 = vrot.lane.b32.xlu1 %v2364_v43, %s2198_s3  ;;  %vm881_vm13 = vcmp.lt.s32.totalorder %v2288_v20, 31  ;;  %vm3910_vm12 = vcmp.lt.s32.totalorder %v2455_v50, 15  ;;  %s2972_s3 = sld [smem:[#allocation4 + $0x13]] }
 0x4aa   :  { %v827_v47 = vmul.f32 %v826_v34, %v820_v35  ;;  %v828_v48 = vmul.f32 %v826_v34, %v821_v46  ;;  %v920_v31 = vsel %vm609_vm9, %v918_v16, %v919_v25  ;;  %v943_v34 = vstv %s2789_s21  ;;  %s3081_s21 = sld [smem:[#allocation4 + $0x18]] }
 0x4ab   :  { %v878_v18 = vpop.permute.xlu0 %877  ;;  %v834_v53 = vpop.permute.xlu1 %833  ;;  %v1017_v16 = vstv %s2881_s5  ;;  %s3149_s5 = sld [smem:[#allocation4 + $0x4d]] }
 0x4ac   :  { %v2767_v57 = vadd.f32 %v827_v47, %v2618_v44  ;;  %v2770_v58 = vadd.f32 %v828_v48, %v2620_v45  ;;  %v836_v59 = vsel %vm835_vm5, %v832_v21, %v834_v53  ;;  %v837_v60 = vsel %vm835_vm5, %v834_v53, %v832_v21  ;;  %vm2808_vm5 = vmand %vm781_vm10, %vm3910_vm12 }
 0x4ad   :  { %v844_v63 = vsel %vm2756_vm6, %v837_v60, 0.0  ;;  %v845_v3 = vsel %vm3881_vm3, %v836_v59, 0.0  ;;  %1581 = vrot.lane.b32.xlu0 %v2358_v42, %s2201_s19  ;;  %1535 = vrot.lane.b32.xlu1 %v2364_v43, %s2199_s13  ;;  %vm905_vm6 = vcmp.lt.s32.totalorder %v2288_v20, 30  ;;  %vm2870_vm12 = vmand %vm781_vm10, %vm605_vm1  ;;  %s2995_s13 = sld [smem:[#allocation4 + $0x14]] }
 0x4ae   :  { %v851_v44 = vmul.f32 %v850_v52, %v844_v63  ;;  %v852_v45 = vmul.f32 %v850_v52, %v845_v3  ;;  %v969_v52 = vstv %s2820_s23  ;;  %s3091_s23 = sld [smem:[#allocation4 + $0x4a]] }
 0x4af   :  { %v902_v8 = vpop.permute.xlu0 %901  ;;  %v858_v62 = vpop.permute.xlu1 %857 }
 0x4b0   :  { %v2792_v13 = vadd.f32 %v851_v44, %v2659_v6  ;;  %v2795_v15 = vadd.f32 %v852_v45, %v2661_v7  ;;  %v860_v10 = vsel %vm859_vm11, %v856_v33, %v858_v62  ;;  %v861_v19 = vsel %vm859_vm11, %v858_v62, %v856_v33  ;;  %vm2839_vm11 = vmand %vm781_vm10, %vm603_vm7 }
 0x4b1   :  { %v866_v11 = vsel %vm781_vm10, %v861_v19, 0.0  ;;  %v874_v5 = vmul.f32 %v872_v4, %v860_v10  ;;  %1607 = vrot.lane.b32.xlu0 %v2358_v42, %s2202_s22  ;;  %1559 = vrot.lane.b32.xlu1 %v2364_v43, %s2200_s16  ;;  %v942_v33 = vstv %s2787_s20  ;;  %vm955_vm10 = vcmp.lt.s32.totalorder %v2288_v20, 19  ;;  %s3026_s16 = sld [smem:[#allocation4 + $0x46]]  ;;  %s3070_s20 = sld [smem:[#allocation4 + $0x48]] }
 0x4b2   :  { %v873_v6 = vmul.f32 %v872_v4, %v866_v11  ;;  %v944_v48 = vsel %vm609_vm9, %v942_v33, %v943_v34  ;;  %v993_v62 = vstv %s2849_s26  ;;  %v1039_v33 = vstv %s2912_s7  ;;  %s3124_s26 = sld [smem:[#allocation4 + $0x1b]]  ;;  %s3180_s7 = sld [smem:[#allocation4 + $0x1e]] }
 0x4b3   :  { %v2813_v12 = vadd.f32 %v874_v5, %v2703_v23  ;;  %v926_v21 = vpop.permute.xlu0 %925  ;;  %v880_v0 = vpop.permute.xlu1 %879 }
 0x4b4   :  { %v2823_v22 = vadd.f32 %v873_v6, %v2701_v1  ;;  %v882_v24 = vsel %vm881_vm13, %v878_v18, %v880_v0  ;;  %v883_v2 = vsel %vm881_vm13, %v880_v0, %v878_v18  ;;  %vm929_vm13 = vcmp.lt.s32.totalorder %v2288_v20, 29 }
 0x4b5   :  { %v890_v23 = vsel %vm2808_vm5, %v883_v2, 0.0  ;;  %v891_v27 = vsel %vm3883_vm4, %v882_v24, 0.0  ;;  %1631 = vrot.lane.b32.xlu0 %v2358_v42, %s2203_s24  ;;  %1583 = vrot.lane.b32.xlu1 %v2364_v43, %s2201_s19  ;;  %vm949_vm5 = vcmp.ge.s32.totalorder %v2288_v20, 16  ;;  %v968_v18 = vstv %s2818_s0  ;;  %s3068_s19 = sld [smem:[#allocation4 + $0x17]]  ;;  %s3089_s0 = sld [smem:[#allocation4 + $0x19]] }
 0x4b6   :  { %v897_v1 = vmul.f32 %v896_v14, %v890_v23  ;;  %v898_v28 = vmul.f32 %v896_v14, %v891_v27  ;;  %v970_v45 = vsel %vm609_vm9, %v968_v18, %v969_v52  ;;  %v1016_v0 = vstv %s2879_s28  ;;  %s3147_s28 = sld [smem:[#allocation4 + $0x1c]] }
 0x4b7   :  { %v952_v30 = vpop.permute.xlu0 %951  ;;  %v904_v32 = vpop.permute.xlu1 %903  ;;  %v1111_v6 = vstv %s2997_s14  ;;  %s3283_s14 = sld [smem:[#allocation4 + $0x53]] }
 0x4b8   :  { %v2852_v36 = vadd.f32 %v897_v1, %v2735_v17  ;;  %v2855_v37 = vadd.f32 %v898_v28, %v2737_v39  ;;  %v906_v38 = vsel %vm905_vm6, %v902_v8, %v904_v32  ;;  %v907_v40 = vsel %vm905_vm6, %v904_v32, %v902_v8 }
 0x4b9   :  { %v914_v41 = vsel %vm2839_vm11, %v907_v40, 0.0  ;;  %v915_v35 = vsel %vm3884_vm8, %v906_v38, 0.0  ;;  %1655 = vrot.lane.b32.xlu0 %v2358_v42, %s2204_s27  ;;  %1609 = vrot.lane.b32.xlu1 %v2364_v43, %s2202_s22  ;;  %vm3917_vm6 = vcmp.ge.s32.totalorder %v2455_v50, 3  ;;  %v992_v8 = vstv %s2847_s25  ;;  %s3083_s22 = sld [smem:[#allocation4 + $0x49]]  ;;  %s3110_s25 = sld [smem:[#allocation4 + $0x4b]] }
 0x4ba   :  { %v921_v17 = vmul.f32 %v920_v31, %v914_v41  ;;  %v922_v39 = vmul.f32 %v920_v31, %v915_v35  ;;  %vm2902_vm11 = vmand %vm949_vm5, %vm3917_vm6  ;;  %vm1003_vm6 = vcmp.lt.s32.totalorder %v2288_v20, 17  ;;  %v1038_v32 = vstv %s2910_s1  ;;  %s3164_s1 = sld [smem:[#allocation4 + $0x4e]] }
 0x4bb   :  { %v976_v47 = vpop.permute.xlu0 %975  ;;  %v928_v51 = vpop.permute.xlu1 %927 }
 0x4bc   :  { %v2884_v53 = vadd.f32 %v921_v17, %v2767_v57  ;;  %v2887_v55 = vadd.f32 %v922_v39, %v2770_v58  ;;  %v930_v56 = vsel %vm929_vm13, %v926_v21, %v928_v51  ;;  %v931_v59 = vsel %vm929_vm13, %v928_v51, %v926_v21 }
 0x4bd   :  { %v938_v60 = vsel %vm2870_vm12, %v931_v59, 0.0  ;;  %v939_v63 = vsel %vm606_vm2, %v930_v56, 0.0  ;;  %1679 = vrot.lane.b32.xlu0 %v2358_v42, %s2205_s6  ;;  %1633 = vrot.lane.b32.xlu1 %v2364_v43, %s2203_s24  ;;  %vm3920_vm13 = vcmp.ge.s32.totalorder %v2462_v54, 3  ;;  %vm979_vm12 = vcmp.lt.s32.totalorder %v2288_v20, 18  ;;  %s3108_s24 = sld [smem:[#allocation4 + $0x1a]] }
 0x4be   :  { %v945_v57 = vmul.f32 %v944_v48, %v938_v60  ;;  %v946_v58 = vmul.f32 %v944_v48, %v939_v63  ;;  %v994_v21 = vsel %vm609_vm9, %v992_v8, %v993_v62  ;;  %v1040_v39 = vsel %vm609_vm9, %v1038_v32, %v1039_v33 }
 0x4bf   :  { %v1000_v44 = vpop.permute.xlu0 %999  ;;  %v954_v4 = vpop.permute.xlu1 %953  ;;  %v1062_v48 = vstv %s2941_s9  ;;  %v1063_v51 = vstv %s2943_s2  ;;  %v1087_v62 = vstv %s2980_s11  ;;  %s3265_s9 = sld [smem:[#allocation4 + $0x1f]]  ;;  %s3267_s2 = sld [smem:[#allocation4 + $0x50]] }
 0x4c0   :  { %v2915_v61 = vadd.f32 %v945_v57, %v2792_v13  ;;  %v2918_v9 = vadd.f32 %v946_v58, %v2795_v15  ;;  %v956_v10 = vsel %vm955_vm10, %v952_v30, %v954_v4  ;;  %v957_v19 = vsel %vm955_vm10, %v954_v4, %v952_v30  ;;  %vm2933_vm10 = vmand %vm949_vm5, %vm3882_vm14  ;;  %s3273_s11 = sld [smem:[#allocation4 + $0x21]] }
 0x4c1   :  { %v964_v11 = vsel %vm2902_vm11, %v957_v19, 0.0  ;;  %v965_v5 = vsel %vm3920_vm13, %v956_v10, 0.0  ;;  %1701 = vrot.lane.b32.xlu0 %v2358_v42, %s2206_s8  ;;  %1657 = vrot.lane.b32.xlu1 %v2364_v43, %s2204_s27  ;;  %vm2964_vm11 = vmand %vm949_vm5, %vm3880_vm0  ;;  %v1018_v30 = vsel %vm609_vm9, %v1016_v0, %v1017_v16  ;;  %vm1027_vm13 = vcmp.lt.s32.totalorder %v2288_v20, 16  ;;  %s3126_s27 = sld [smem:[#allocation4 + $0x4c]] }
 0x4c2   :  { %v971_v13 = vmul.f32 %v970_v45, %v964_v11  ;;  %v972_v15 = vmul.f32 %v970_v45, %v965_v5  ;;  %v1064_v58 = vsel %vm609_vm9, %v1062_v48, %v1063_v51 }
 0x4c3   :  { %v1024_v7 = vpop.permute.xlu0 %1023  ;;  %v978_v14 = vpop.permute.xlu1 %977 }
 0x4c4   :  { %v2946_v24 = vadd.f32 %v971_v13, %v2823_v22  ;;  %v2949_v2 = vadd.f32 %v972_v15, %v2813_v12  ;;  %v980_v25 = vsel %vm979_vm12, %v976_v47, %v978_v14  ;;  %v981_v23 = vsel %vm979_vm12, %v978_v14, %v976_v47 }
 0x4c5   :  { %v988_v27 = vsel %vm2933_vm10, %v981_v23, 0.0  ;;  %v989_v1 = vsel %vm3887_vm15, %v980_v25, 0.0  ;;  %1725 = vrot.lane.b32.xlu0 %v2358_v42, %s2207_s10  ;;  %1681 = vrot.lane.b32.xlu1 %v2364_v43, %s2205_s6  ;;  %vm1049_vm12 = vcmp.lt.s32.totalorder %v2288_v20, 15  ;;  %vm3925_vm10 = vcmp.lt.s32.totalorder %v2455_v50, 15  ;;  %s3162_s6 = sld [smem:[#allocation4 + $0x1d]] }
 0x4c6   :  { %v995_v12 = vmul.f32 %v994_v21, %v988_v27  ;;  %v996_v22 = vmul.f32 %v994_v21, %v989_v1  ;;  %v1110_v15 = vstv %s2995_s13  ;;  %v1132_v1 = vstv %s3024_s15  ;;  %s3281_s13 = sld [smem:[#allocation4 + $0x22]]  ;;  %s3285_s15 = sld [smem:[#allocation4 + $0x23]] }
 0x4c7   :  { %v1046_v29 = vpop.permute.xlu0 %1045  ;;  %v1002_v31 = vpop.permute.xlu1 %1001 }
 0x4c8   :  { %v2975_v34 = vadd.f32 %v995_v12, %v2852_v36  ;;  %v2978_v38 = vadd.f32 %v996_v22, %v2855_v37  ;;  %v1004_v40 = vsel %vm1003_vm6, %v1000_v44, %v1002_v31  ;;  %v1005_v41 = vsel %vm1003_vm6, %v1002_v31, %v1000_v44  ;;  %vm3014_vm6 = vmand %vm949_vm5, %vm3925_vm10 }
 0x4c9   :  { %v1012_v35 = vsel %vm2964_vm11, %v1005_v41, 0.0  ;;  %v1013_v17 = vsel %vm3881_vm3, %v1004_v40, 0.0  ;;  %1749 = vrot.lane.b32.xlu0 %v2358_v42, %s2208_s12  ;;  %1703 = vrot.lane.b32.xlu1 %v2364_v43, %s2206_s8  ;;  %v1086_v44 = vstv %s2972_s3  ;;  %vm1073_vm11 = vcmp.lt.s32.totalorder %v2288_v20, 14  ;;  %vm1100_vm10 = vmand %vm949_vm5, %vm605_vm1  ;;  %s3182_s8 = sld [smem:[#allocation4 + $0x4f]]  ;;  %s3271_s3 = sld [smem:[#allocation4 + $0x51]] }
 0x4ca   :  { %v1019_v36 = vmul.f32 %v1018_v30, %v1012_v35  ;;  %v1020_v37 = vmul.f32 %v1018_v30, %v1013_v17  ;;  %v1088_v5 = vsel %vm609_vm9, %v1086_v44, %v1087_v62  ;;  %v1133_v12 = vstv %s3026_s16  ;;  %s3287_s16 = sld [smem:[#allocation4 + $0x54]] }
 0x4cb   :  { %v1070_v46 = vpop.permute.xlu0 %1069  ;;  %v1026_v47 = vpop.permute.xlu1 %1025  ;;  %v1154_v35 = vstv %s3047_s17  ;;  %v1155_v17 = vstv %s3049_s18  ;;  %s3289_s17 = sld [smem:[#allocation4 + $0x24]]  ;;  %s3291_s18 = sld [smem:[#allocation4 + $0x55]] }
 0x4cc   :  { %v3000_v42 = vadd.f32 %v1019_v36, %v2884_v53  ;;  %v3003_v18 = vadd.f32 %v1020_v37, %v2887_v55  ;;  %v1028_v52 = vsel %vm1027_vm13, %v1024_v7, %v1026_v47  ;;  %v1029_v56 = vsel %vm1027_vm13, %v1026_v47, %v1024_v7  ;;  %vm1076_vm13 = vmand %vm949_vm5, %vm603_vm7 }
 0x4cd   :  { %v1034_v59 = vsel %vm949_vm5, %v1029_v56, 0.0  ;;  %v1042_v60 = vmul.f32 %v1040_v39, %v1028_v52  ;;  %1727 = vrot.lane.b32.xlu1 %v2364_v43, %s2207_s10  ;;  %vm1121_vm5 = vcmp.lt.s32.totalorder %v2288_v20, 3  ;;  %v2209_v56 = vmov 839922192   ;;  %s3269_s10 = sld [smem:[#allocation4 + $0x20]] }
 0x4ce   :  { %v1041_v63 = vmul.f32 %v1040_v39, %v1034_v59  ;;  %v1190_v59 = vunpack.c.l.s4 %v2209_v56  ;;  %v1177_v53 = vstv %s3070_s20  ;;  %s3299_s20 = sld [smem:[#allocation4 + $0x56]] }
 0x4cf   :  { %v3019_v55 = vadd.f32 %v1042_v60, %v2918_v9  ;;  %v1094_v57 = vpop.permute.xlu0 %1093  ;;  %v1048_v3 = vpop.permute.xlu1 %1047 }
 0x4d0   :  { %v3029_v45 = vadd.f32 %v1041_v63, %v2915_v61  ;;  %v1050_v4 = vsel %vm1049_vm12, %v1046_v29, %v1048_v3  ;;  %v1051_v8 = vsel %vm1049_vm12, %v1048_v3, %v1046_v29  ;;  %vm1097_vm12 = vcmp.lt.s32.totalorder %v2288_v20, 13 }
 0x4d1   :  { %v1058_v9 = vsel %vm3014_vm6, %v1051_v8, 0.0  ;;  %v1059_v10 = vsel %vm3883_vm4, %v1050_v4, 0.0  ;;  %1751 = vrot.lane.b32.xlu1 %v2364_v43, %s2208_s12  ;;  %vm3928_vm6 = vcmp.ge.s32.totalorder %v2455_v50, 3  ;;  %v1176_v63 = vstv %s3068_s19  ;;  %s3275_s12 = sld [smem:[#allocation4 + $0x52]]  ;;  %s3297_s19 = sld [smem:[#allocation4 + $0x25]] }
 0x4d2   :  { %v1065_v19 = vmul.f32 %v1064_v58, %v1058_v9  ;;  %v1066_v11 = vmul.f32 %v1064_v58, %v1059_v10  ;;  %v1185_v10 = vstv %s3081_s21  ;;  %s3301_s21 = sld [smem:[#allocation4 + $0x26]] }
 0x4d3   :  { %v1118_v61 = vpop.permute.xlu0 %1117  ;;  %v1072_v13 = vpop.permute.xlu1 %1071 }
 0x4d4   :  { %v3052_v43 = vadd.f32 %v1065_v19, %v2946_v24  ;;  %v3055_v7 = vadd.f32 %v1066_v11, %v2949_v2  ;;  %v1074_v21 = vsel %vm1073_vm11, %v1070_v46, %v1072_v13  ;;  %v1075_v14 = vsel %vm1073_vm11, %v1072_v13, %v1070_v46 }
 0x4d5   :  { %v1082_v0 = vsel %vm1076_vm13, %v1075_v14, 0.0  ;;  %v1083_v16 = vsel %vm3884_vm8, %v1074_v21, 0.0  ;;  %v1112_v2 = vsel %vm609_vm9, %v1110_v15, %v1111_v6  ;;  %vm3929_vm11 = vcmp.ge.s32.totalorder %v2462_v54, 3 }
 0x4d6   :  { %v1089_v25 = vmul.f32 %v1088_v5, %v1082_v0  ;;  %v1090_v23 = vmul.f32 %v1088_v5, %v1083_v16  ;;  %vm1143_vm13 = vcmp.lt.s32.totalorder %v2288_v20, 2  ;;  %v1191_v19 = vunpack.c.0.s8 %v1190_v59 }
 0x4d7   :  { %v1140_v24 = vpop.permute.xlu0 %1139  ;;  %v1096_v27 = vpop.permute.xlu1 %1095  ;;  %v1219_v5 = vstv %s3091_s23  ;;  %v1186_v13 = vstv %s3083_s22  ;;  %s3303_s22 = sld [smem:[#allocation4 + $0x57]]  ;;  %s3307_s23 = sld [smem:[#allocation4 + $0x58]] }
 0x4d8   :  { %v3073_v22 = vadd.f32 %v1089_v25, %v2975_v34  ;;  %v3076_v28 = vadd.f32 %v1090_v23, %v2978_v38  ;;  %v1098_v29 = vsel %vm1097_vm12, %v1094_v57, %v1096_v27  ;;  %v1099_v30 = vsel %vm1097_vm12, %v1096_v27, %v1094_v57 }
 0x4d9   :  { %v1106_v31 = vsel %vm1100_vm10, %v1099_v30, 0.0  ;;  %v1107_v32 = vsel %vm606_vm2, %v1098_v29, 0.0  ;;  %v1134_v34 = vsel %vm609_vm9, %v1132_v1, %v1133_v12  ;;  %vm1165_vm12 = vcmp.lt.s32.totalorder %v2288_v20, 1 }
 0x4da   :  { %v1113_v33 = vmul.f32 %v1112_v2, %v1106_v31  ;;  %v1114_v40 = vmul.f32 %v1112_v2, %v1107_v32  ;;  %vm1207_vm10 = vcmp.lt.s32.totalorder %v2288_v20, 127  ;;  %v1240_v27 = vstv %s3108_s24  ;;  %s3309_s24 = sld [smem:[#allocation4 + $0x28]] }
 0x4db   :  { %v1162_v41 = vpop.permute.xlu0 %1161  ;;  %v1120_v38 = vpop.permute.xlu1 %1119  ;;  %v1241_v1 = vstv %s3110_s25  ;;  %v1187_v12 = vsel %vm609_vm9, %v1185_v10, %v1186_v13  ;;  %s3311_s25 = sld [smem:[#allocation4 + $0x59]] }
 0x4dc   :  { %v3094_v36 = vadd.f32 %v1113_v33, %v3000_v42  ;;  %v3097_v37 = vadd.f32 %v1114_v40, %v3003_v18  ;;  %v1122_v39 = vsel %vm1121_vm5, %v1118_v61, %v1120_v38  ;;  %v1123_v46 = vsel %vm1121_vm5, %v1120_v38, %v1118_v61 }
 0x4dd   :  { %v1128_v47 = vsel %vm3928_vm6, %v1123_v46, 0.0  ;;  %v1129_v48 = vsel %vm3929_vm11, %v1122_v39, 0.0  ;;  %v1156_v42 = vsel %vm609_vm9, %v1154_v35, %v1155_v17  ;;  %v1218_v61 = vstv %s3089_s0  ;;  %s3305_s0 = sld [smem:[#allocation4 + $0x27]] }
 0x4de   :  { %v1135_v51 = vmul.f32 %v1134_v34, %v1128_v47  ;;  %v1136_v52 = vmul.f32 %v1134_v34, %v1129_v48  ;;  %vm3930_vm5 = vcmp.lt.s32.totalorder %v2455_v50, 15  ;;  %vm1229_vm6 = vcmp.lt.s32.totalorder %v2288_v20, 126 }
 0x4df   :  { %v1204_v60 = vpop.permute.xlu0 %1203  ;;  %v1142_v18 = vpop.permute.xlu1 %1141  ;;  %v1242_v17 = vsel %vm609_vm9, %v1240_v27, %v1241_v1  ;;  %v1262_v39 = vstv %s3124_s26  ;;  %vm1251_vm11 = vcmp.lt.s32.totalorder %v2288_v20, 125  ;;  %s3317_s26 = sld [smem:[#allocation4 + $0x29]] }
 0x4e0   :  { %v1137_v57 = vadd.f32 %v1135_v51, %v3029_v45  ;;  %v1138_v58 = vadd.f32 %v1136_v52, %v3019_v55  ;;  %v1144_v3 = vsel %vm1143_vm13, %v1140_v24, %v1142_v18  ;;  %v1145_v44 = vsel %vm1143_vm13, %v1142_v18, %v1140_v24 }
 0x4e1   :  { %v1150_v4 = vsel %vm3882_vm14, %v1145_v44, 0.0  ;;  %v1151_v8 = vsel %vm3887_vm15, %v1144_v3, 0.0  ;;  %v1178_v45 = vsel %vm609_vm9, %v1176_v63, %v1177_v53  ;;  %vm1270_vm13 = vcmp.lt.s32.totalorder %v2442_v49, 240 }
 0x4e2   :  { %v1157_v62 = vmul.f32 %v1156_v42, %v1150_v4  ;;  %v1158_v9 = vmul.f32 %v1156_v42, %v1151_v8  ;;  %v2091_v42 = vld [vmem:[#allocation2] sm:$0xff]  ;;  %v1289_v3 = vstv %s3149_s5  ;;  %s3323_s5 = sld [smem:[#allocation4 + $0x5b]] }
 0x4e3   :  { %v1226_v11 = vpop.permute.xlu0 %1225  ;;  %v1164_v55 = vpop.permute.xlu1 %1163 }
 0x4e4   :  { %v1159_v15 = vadd.f32 %v1157_v62, %v3052_v43  ;;  %v1160_v6 = vadd.f32 %v1158_v9, %v3055_v7  ;;  %v1166_v21 = vsel %vm1165_vm12, %v1162_v41, %v1164_v55  ;;  %v1167_v14 = vsel %vm1165_vm12, %v1164_v55, %v1162_v41 }
 0x4e5   :  { %v1172_v0 = vsel %vm3880_vm0, %v1167_v14, 0.0  ;;  %v1173_v16 = vsel %vm3881_vm3, %v1166_v21, 0.0  ;;  %v1194_v43 = vsub.s32 %v1191_v19, %v2326_v26  ;;  %v1220_v7 = vsel %vm609_vm9, %v1218_v61, %v1219_v5 }
 0x4e6   :  { %v1179_v25 = vmul.f32 %v1178_v45, %v1172_v0  ;;  %v1180_v23 = vmul.f32 %v1178_v45, %v1173_v16  ;;  %vm1275_vm12 = vcmp.lt.s32.totalorder %v2288_v20, 115  ;;  %v1406_v45 = vstv %s3273_s11  ;;  %s3390_s11 = sld [smem:[#allocation4 + $0x2f]] }
 0x4e7   :  { %v1248_v24 = vpop.permute.xlu0 %1247  ;;  %v1206_v2 = vpop.permute.xlu1 %1205  ;;  %v1195_v38 = vrot.slane %v1187_v12, %v1194_v43 }
 0x4e8   :  { %v1181_v29 = vadd.f32 %v1179_v25, %v3073_v22  ;;  %v1182_v30 = vadd.f32 %v1180_v23, %v3076_v28  ;;  %v1208_v31 = vsel %vm1207_vm10, %v1204_v60, %v1206_v2  ;;  %v1209_v32 = vsel %vm1207_vm10, %v1206_v2, %v1204_v60 }
 0x4e9   :  { %v1214_v33 = vsel %vm3930_vm5, %v1208_v31, 0.0  ;;  %v1215_v40 = vsel %vm3883_vm4, %v1209_v32, 0.0  ;;  %v1263_v28 = vstv %s3126_s27  ;;  %v1197_v18 = vmul.f32 %v2091_v42, %v1195_v38  ;;  %s3319_s27 = sld [smem:[#allocation4 + $0x5a]] }
 0x4ea   :  { %v1221_v41 = vmul.f32 %v1220_v7, %v1214_v33  ;;  %v1222_v34 = vmul.f32 %v1220_v7, %v1215_v40  ;;  %v1264_v53 = vsel %vm609_vm9, %v1262_v39, %v1263_v28  ;;  %vm3931_vm10 = vcmp.ge.s32.totalorder %v2462_v54, 3 }
 0x4eb   :  { %v1272_v35 = vpop.permute.xlu0 %1271  ;;  %v1228_v22 = vpop.permute.xlu1 %1227  ;;  %vm3197_vm5 = vmand %vm1270_vm13, %vm3931_vm10  ;;  %v1199_v61 = vcombine.high %v1197_v18, %v1197_v18  ;;  %v1201_v43 = vadd.f32 %v1197_v18, %v3094_v36 }
 0x4ec   :  { %v3166_v46 = vadd.f32 %v1221_v41, %v1137_v57  ;;  %v3168_v47 = vadd.f32 %v1222_v34, %v1138_v58  ;;  %v1230_v48 = vsel %vm1229_vm6, %v1226_v11, %v1228_v22  ;;  %v1231_v51 = vsel %vm1229_vm6, %v1228_v22, %v1226_v11  ;;  %vm1303_vm10 = vmand %vm1270_vm13, %vm3887_vm15 }
 0x4ed   :  { %v1236_v52 = vsel %vm603_vm7, %v1230_v48, 0.0  ;;  %v1237_v56 = vsel %vm3884_vm8, %v1231_v51, 0.0  ;;  %v1288_v58 = vstv %s3147_s28  ;;  %vm3934_vm6 = vcmp.ge.s32.totalorder %v2455_v50, 3  ;;  %s3321_s28 = sld [smem:[#allocation4 + $0x2a]] }
 0x4ee   :  { %v1243_v59 = vmul.f32 %v1242_v17, %v1236_v52  ;;  %v1244_v60 = vmul.f32 %v1242_v17, %v1237_v56  ;;  %v1290_v5 = vsel %vm609_vm9, %v1288_v58, %v1289_v3 }
 0x4ef   :  { %v1296_v63 = vpop.permute.xlu0 %1295  ;;  %v1250_v57 = vpop.permute.xlu1 %1249 }
 0x4f0   :  { %v1245_v44 = vadd.f32 %v1243_v59, %v1159_v15  ;;  %v1246_v4 = vadd.f32 %v1244_v60, %v1160_v6  ;;  %v1252_v8 = vsel %vm1251_vm11, %v1248_v24, %v1250_v57  ;;  %v1253_v62 = vsel %vm1251_vm11, %v1250_v57, %v1248_v24 }
 0x4f1   :  { %v1258_v9 = vsel %vm605_vm1, %v1252_v8, 0.0  ;;  %v1259_v10 = vsel %vm606_vm2, %v1253_v62, 0.0  ;;  %v1312_v15 = vstv %s3162_s6  ;;  %v1313_v6 = vstv %s3164_s1  ;;  %s3329_s6 = sld [smem:[#allocation4 + $0x2b]]  ;;  %s3331_s1 = sld [smem:[#allocation4 + $0x5c]] }
 0x4f2   :  { %v1265_v19 = vmul.f32 %v1264_v53, %v1258_v9  ;;  %v1266_v11 = vmul.f32 %v1264_v53, %v1259_v10  ;;  %vm1299_vm11 = vcmp.lt.s32.totalorder %v2288_v20, 114  ;;  %v1202_v24 = vadd.f32 %v1199_v61, %v3097_v37 }
 0x4f3   :  { %v1320_v55 = vpop.permute.xlu0 %1319  ;;  %v1274_v13 = vpop.permute.xlu1 %1273  ;;  %v1314_v1 = vsel %vm609_vm9, %v1312_v15, %v1313_v6  ;;  %v1358_v9 = vstv %s3265_s9  ;;  %v1359_v10 = vstv %s3267_s2  ;;  %v1430_v61 = vstv %s3281_s13  ;;  %s3347_s9 = sld [smem:[#allocation4 + $0x2d]]  ;;  %s3349_s2 = sld [smem:[#allocation4 + $0x5e]] }
 0x4f4   :  { %v3205_v21 = vadd.f32 %v1265_v19, %v1181_v29  ;;  %v3207_v14 = vadd.f32 %v1266_v11, %v1182_v30  ;;  %v1276_v0 = vsel %vm1275_vm12, %v1272_v35, %v1274_v13  ;;  %v1277_v16 = vsel %vm1275_vm12, %v1274_v13, %v1272_v35  ;;  %s3407_s13 = sld [smem:[#allocation4 + $0x30]] }
 0x4f5   :  { %v1284_v25 = vsel %vm3934_vm6, %v1276_v0, 0.0  ;;  %v1285_v23 = vsel %vm3197_vm5, %v1277_v16, 0.0  ;;  %v1336_v29 = vstv %s3180_s7  ;;  %v1337_v30 = vstv %s3182_s8  ;;  %vm1327_vm5 = vmand %vm1270_vm13, %vm3881_vm3  ;;  %s3337_s7 = sld [smem:[#allocation4 + $0x2c]]  ;;  %s3339_s8 = sld [smem:[#allocation4 + $0x5d]] }
 0x4f6   :  { %v1291_v7 = vmul.f32 %v1290_v5, %v1284_v25  ;;  %v1292_v2 = vmul.f32 %v1290_v5, %v1285_v23  ;;  %vm1323_vm12 = vcmp.lt.s32.totalorder %v2288_v20, 113  ;;  %v1338_v35 = vsel %vm609_vm9, %v1336_v29, %v1337_v30 }
 0x4f7   :  { %v3220_v27 = vpop.permute.xlu0 %1343  ;;  %v1298_v12 = vpop.permute.xlu1 %1297  ;;  %v1382_v19 = vstv %s3269_s10  ;;  %v1383_v11 = vstv %s3271_s3  ;;  %v1431_v5 = vstv %s3283_s14  ;;  %v1456_v13 = vstv %s3285_s15  ;;  %s3378_s10 = sld [smem:[#allocation4 + $0x2e]]  ;;  %s3388_s3 = sld [smem:[#allocation4 + $0x5f]] }
 0x4f8   :  { %v3226_v31 = vadd.f32 %v1291_v7, %v1201_v43  ;;  %v3228_v36 = vadd.f32 %v1292_v2, %v1202_v24  ;;  %v1300_v37 = vsel %vm1299_vm11, %v1296_v63, %v1298_v12  ;;  %v1301_v32 = vsel %vm1299_vm11, %v1298_v12, %v1296_v63  ;;  %s3409_s14 = sld [smem:[#allocation4 + $0x61]]  ;;  %s2210_s15 = smov [#allocation8]  }
 0x4f9   :  { %v1308_v33 = vsel %vm3882_vm14, %v1300_v37, 0.0  ;;  %v1309_v40 = vsel %vm1303_vm10, %v1301_v32, 0.0  ;;  %v1457_v15 = vstv %s3287_s16  ;;  %vm1347_vm6 = vcmp.lt.s32.totalorder %v2288_v20, 112  ;;  %vm3463_vm14 = vmand %vm1270_vm13, %vm3883_vm4  ;;  %s1844_s16 = sshll.u32 %s2210_s15, 4  ;;  %s1845_s16 = int_to_ptr.vmem [resolvable:$true] %s1844_s16 }
 0x4fa   :  { %v1315_v41 = vmul.f32 %v1314_v1, %v1308_v33  ;;  %v1316_v34 = vmul.f32 %v1314_v1, %v1309_v40  ;;  %v3354_v16 = vsel %vm609_vm9, %v1358_v9, %v1359_v10  ;;  %vm1369_vm11 = vcmp.lt.s32.totalorder %v2288_v20, 111  ;;  %p2131_p0 = scmp.lt.s32.totalorder %s1845_s16, %s1845_s16 }
 0x4fb   :  { %v3237_v38 = vpop.permute.xlu0 %1365  ;;  %v1322_v17 = vpop.permute.xlu1 %1321  ;;  %v3359_v25 = vsel %vm609_vm9, %v1382_v19, %v1383_v11  ;;  %vm1393_vm10 = vcmp.lt.s32.totalorder %v2288_v20, 110  ;;  %v3369_v43 = vsel %vm609_vm9, %v1430_v61, %v1431_v5  ;;  %v3374_v24 = vsel %vm609_vm9, %v1456_v13, %v1457_v15 }
 0x4fc   :  { %v3242_v22 = vadd.f32 %v1315_v41, %v3166_v46  ;;  %v3245_v39 = vadd.f32 %v1316_v34, %v3168_v47  ;;  %v1324_v28 = vsel %vm1323_vm12, %v1320_v55, %v1322_v17  ;;  %v1325_v48 = vsel %vm1323_vm12, %v1322_v17, %v1320_v55 }
 0x4fd   :  { %v1332_v51 = vsel %vm3880_vm0, %v1324_v28, 0.0  ;;  %v1333_v52 = vsel %vm1327_vm5, %v1325_v48, 0.0  ;;  %v1407_v55 = vstv %s3275_s12  ;;  %vm1417_vm12 = vcmp.lt.s32.totalorder %v2288_v20, 109  ;;  %s3397_s12 = sld [smem:[#allocation4 + $0x60]] }
 0x4fe   :  { %v1339_v56 = vmul.f32 %v1338_v35, %v1332_v51  ;;  %v1340_v59 = vmul.f32 %v1338_v35, %v1333_v52  ;;  %v3364_v23 = vsel %vm609_vm9, %v1406_v45, %v1407_v55  ;;  %vm1443_vm5 = vcmp.lt.s32.totalorder %v2288_v20, 99 }
 0x4ff   :  { %v3249_v60 = vpop.permute.xlu0 %1389  ;;  %v3251_v42 = vpop.permute.xlu1 %1345  ;;  %v1480_v7 = vstv %s3289_s17  ;;  %v1481_v2 = vstv %s3291_s18  ;;  %v1504_v1 = vstv %s3297_s19  ;;  %v1505_v12 = vstv %s3299_s20  ;;  %s2126_s17 = scalar_lea.vmem %s1845_s16, 1024 }
 0x500   :  { %v3253_v18 = vadd.f32 %v1339_v56, %v1245_v44  ;;  %v3255_v63 = vadd.f32 %v1340_v59, %v1246_v4  ;;  %v1526_v30 = vstv %s3301_s21  ;;  %v1527_v37 = vstv %s3303_s22  ;;  %p2127_p13 = scmp.ne.s32.totalorder %s1845_s16, %s2126_s17  ;;  %p2132_p1 = scmp.lt.s32.totalorder %s2126_s17, %s2126_s17 }
 0x501   :  { %vm1438_vm0 = vcmp.lt.s32.totalorder %v2442_v49, 224  ;;  %v1550_v33 = vstv %s3305_s0  ;;  %v1551_v40 = vstv %s3307_s23  ;;  %v1574_v41 = vstv %s3309_s24 }
 0x502   :  { %v1575_v34 = vstv %s3311_s25  ;;  %v1598_v35 = vstv %s3317_s26  ;;  %v1599_v17 = vstv %s3319_s27  ;;  %v1624_v28 = vstv %s3321_s28  ;;  %p2133_p2 = por %p2132_p1, %p2131_p0 }
 0x503   :  { %v3257_v46 = vpop.permute.xlu0 %1413  ;;  %v3259_v47 = vpop.permute.xlu1 %1367  ;;  %v1625_v48 = vstv %s3323_s5  ;;  %v1648_v51 = vstv %s3329_s6  ;;  %v1649_v52 = vstv %s3331_s1  ;;  %v1672_v56 = vstv %s3337_s7 }
 0x504   :  { %v1673_v59 = vstv %s3339_s8  ;;  %vm1467_vm3 = vcmp.lt.s32.totalorder %v2288_v20, 98  ;;  %v3414_v9 = vsel %vm609_vm9, %v1480_v7, %v1481_v2  ;;  %v3418_v10 = vsel %vm609_vm9, %v1504_v1, %v1505_v12  ;;  %p2134_p3 = pnand %p2133_p2, %p2127_p13 }
 0x505   :  { %v1694_v45 = vstv %s3347_s9  ;;  %v1695_v55 = vstv %s3349_s2  ;;  %v3429_v61 = vsel %vm609_vm9, %v1526_v30, %v1527_v37  ;;  %v3433_v5 = vsel %vm609_vm9, %v1550_v33, %v1551_v40 }
 0x506   :  { %v3437_v13 = vsel %vm609_vm9, %v1574_v41, %v1575_v34  ;;  %v3441_v15 = vsel %vm609_vm9, %v1598_v35, %v1599_v17  ;;  %v1349_v7 = vsel %vm1347_vm6, %v3251_v42, %v3220_v27  ;;  %v3449_v2 = vsel %vm609_vm9, %v1624_v28, %v1625_v48 }
 0x507   :  { %v3261_v53 = vpop.permute.xlu0 %1439  ;;  %v3263_v57 = vpop.permute.xlu1 %1391  ;;  %v3453_v1 = vsel %vm609_vm9, %v1648_v51, %v1649_v52  ;;  %v3457_v12 = vsel %vm609_vm9, %v1672_v56, %v1673_v59  ;;  %v1370_v37 = vsel %vm1369_vm11, %v3237_v38, %v3259_v47  ;;  %v1371_v33 = vsel %vm1369_vm11, %v3259_v47, %v3237_v38 }
 0x508   :  { %3935 = vst [vmem:[#allocation12_spill] sm:$0xff] %v3457_v12  ;;  %v3477_v40 = vsel %vm609_vm9, %v1694_v45, %v1695_v55  ;;  %v1718_v41 = vstv %s3378_s10  ;;  %v1348_v34 = vsel %vm1347_vm6, %v3220_v27, %v3251_v42  ;;  %v1394_v35 = vsel %vm1393_vm10, %v3249_v60, %v3263_v57  ;;  %vm3500_vm6 = vmand %vm1270_vm13, %vm3884_vm8 }
 0x509   :  { %3938 = vst [vmem:[#allocation13_spill] sm:$0xff] %v3477_v40  ;;  %v1719_v38 = vstv %s3388_s3  ;;  %v1742_v47 = vstv %s3390_s11  ;;  %v1355_v48 = vsel %vm1270_vm13, %v1349_v7, 0.0  ;;  %v1395_v42 = vsel %vm1393_vm10, %v3263_v57, %v3249_v60  ;;  %vm3523_vm10 = vmand %vm1270_vm13, %vm606_vm2 }
 0x50a   :  { %vm1515_vm11 = vcmp.lt.s32.totalorder %v2288_v20, 96  ;;  %vm1537_vm4 = vcmp.lt.s32.totalorder %v2288_v20, 95  ;;  %v1743_v52 = vstv %s3397_s12  ;;  %vm3941_vm8 = vcmp.lt.s32.totalorder %v2455_v50, 15 }
 0x50b   :  { %v3277_v58 = vpop.permute.xlu0 %1463  ;;  %v3279_v3 = vpop.permute.xlu1 %1415  ;;  %v1378_v56 = vsel %vm3941_vm8, %v1370_v37, 0.0  ;;  %v1379_v59 = vsel %vm3463_vm14, %v1371_v33, 0.0  ;;  %vm1561_vm14 = vcmp.lt.s32.totalorder %v2288_v20, 94  ;;  %v1361_v55 = vmul.f32 %v3354_v16, %v1348_v34 }
 0x50c   :  { %v1418_v51 = vsel %vm1417_vm12, %v3257_v46, %v3279_v3  ;;  %v1419_v57 = vsel %vm1417_vm12, %v3279_v3, %v3257_v46  ;;  %v1402_v7 = vsel %vm603_vm7, %v1394_v35, 0.0  ;;  %v1766_v30 = vstv %s3407_s13 }
 0x50d   :  { %v1767_v37 = vstv %s3409_s14  ;;  %v1362_v33 = vmul.f32 %v3354_v16, %v1355_v48  ;;  %v1403_v40 = vsel %vm3500_vm6, %v1395_v42, 0.0  ;;  %v1426_v46 = vsel %vm605_vm1, %v1418_v51, 0.0 }
 0x50e   :  { %vm3944_vm8 = vcmp.ge.s32.totalorder %v2462_v54, 3  ;;  %vm1585_vm12 = vcmp.lt.s32.totalorder %v2288_v20, 93  ;;  %v1385_v48 = vmul.f32 %v3359_v25, %v1378_v56  ;;  %v1386_v27 = vmul.f32 %v3359_v25, %v1379_v59 }
 0x50f   :  { %v3293_v44 = vpop.permute.xlu0 %1487  ;;  %v3295_v4 = vpop.permute.xlu1 %1441  ;;  %vm3550_vm13 = vmand %vm1438_vm0, %vm3944_vm8  ;;  %v1427_v42 = vsel %vm3523_vm10, %v1419_v57, 0.0  ;;  %vm3947_vm6 = vcmp.ge.s32.totalorder %v2455_v50, 3  ;;  %v1409_v12 = vmul.f32 %v3364_v23, %v1402_v7  ;;  %vm1611_vm8 = vcmp.lt.s32.totalorder %v2288_v20, 83 }
 0x510   :  { %v1444_v45 = vsel %vm1443_vm5, %v3261_v53, %v3295_v4  ;;  %v1445_v34 = vsel %vm1443_vm5, %v3295_v4, %v3261_v53  ;;  %vm1606_vm5 = vcmp.lt.s32.totalorder %v2442_v49, 208  ;;  %v3574_v53 = vsel %vm609_vm9, %v1718_v41, %v1719_v38 }
 0x511   :  { %v1452_v51 = vsel %vm3947_vm6, %v1444_v45, 0.0  ;;  %v3578_v4 = vsel %vm609_vm9, %v1742_v47, %v1743_v52  ;;  %v3582_v25 = vsel %vm609_vm9, %v1766_v30, %v1767_v37  ;;  %v1410_v56 = vmul.f32 %v3364_v23, %v1403_v40  ;;  %vm3598_vm9 = vmand %vm1438_vm0, %vm3887_vm15 }
 0x512   :  { %v1433_v59 = vmul.f32 %v3369_v43, %v1426_v46  ;;  %v1453_v60 = vsel %vm3550_vm13, %v1445_v34, 0.0  ;;  %v1434_v38 = vmul.f32 %v3369_v43, %v1427_v42  ;;  %v1459_v47 = vmul.f32 %v3374_v24, %v1452_v51 }
 0x513   :  { %v3313_v8 = vpop.permute.xlu0 %1511  ;;  %v3315_v62 = vpop.permute.xlu1 %1465  ;;  %vm3950_vm10 = vcmp.lt.s32.totalorder %v2288_v20, 97  ;;  %v1363_v45 = vadd.f32 %v1361_v55, %v3205_v21  ;;  %v1364_v7 = vadd.f32 %v1362_v33, %v3207_v14  ;;  %v1387_v30 = vadd.f32 %v1385_v48, %v3226_v31 }
 0x514   :  { %v1468_v41 = vsel %vm1467_vm3, %v3277_v58, %v3315_v62  ;;  %v1469_v40 = vsel %vm1467_vm3, %v3315_v62, %v3277_v58  ;;  %v1388_v37 = vadd.f32 %v1386_v27, %v3228_v36  ;;  %v1411_v46 = vadd.f32 %v1409_v12, %v3242_v22 }
 0x515   :  { %v1460_v58 = vmul.f32 %v3374_v24, %v1453_v60  ;;  %vm3951_vm3 = vcmp.ge.s32.totalorder %v2455_v50, 2  ;;  %vm3952_vm13 = vcmp.ge.s32.totalorder %v2462_v54, 1  ;;  %vm1635_vm15 = vcmp.lt.s32.totalorder %v2288_v20, 82 }
 0x516   :  { %v1476_v62 = vsel %vm3951_vm3, %v1468_v41, 0.0  ;;  %vm3624_vm6 = vmand %vm1438_vm0, %vm3952_vm13  ;;  %v1412_v14 = vadd.f32 %v1410_v56, %v3245_v39  ;;  %v1435_v31 = vadd.f32 %v1433_v59, %v3253_v18  ;;  %v1477_v36 = vsel %vm3598_vm9, %v1469_v40, 0.0 }
 0x517   :  { %v3343_v6 = vpop.permute.xlu0 %1533  ;;  %v3345_v0 = vpop.permute.xlu1 %1489  ;;  %vm3955_vm3 = vcmp.ge.s32.totalorder %v2455_v50, 1  ;;  %v1436_v24 = vadd.f32 %v1434_v38, %v3255_v63  ;;  %v1461_v12 = vadd.f32 %v1459_v47, %v1363_v45  ;;  %vm3956_vm9 = vcmp.lt.s32.totalorder %v2462_v54, 15 }
 0x518   :  { %v1492_v43 = vsel %vm3950_vm10, %v3293_v44, %v3345_v0  ;;  %v1493_v21 = vsel %vm3950_vm10, %v3345_v0, %v3293_v44  ;;  %v1483_v0 = vmul.f32 %v3414_v9, %v1476_v62  ;;  %vm3655_vm13 = vmand %vm1438_vm0, %vm3956_vm9  ;;  %v1462_v48 = vadd.f32 %v1460_v58, %v1364_v7 }
 0x519   :  { %v1500_v22 = vsel %vm3955_vm3, %v1492_v43, 0.0  ;;  %v1501_v55 = vsel %vm3624_vm6, %v1493_v21, 0.0  ;;  %vm1659_vm6 = vcmp.lt.s32.totalorder %v2288_v20, 81  ;;  %v1484_v27 = vmul.f32 %v3414_v9, %v1477_v36 }
 0x51a   :  { %v1507_v42 = vmul.f32 %v3418_v10, %v1500_v22  ;;  %vm3959_vm10 = vcmp.lt.s32.totalorder %v2455_v50, 15  ;;  %vm3960_vm3 = vcmp.lt.s32.totalorder %v2462_v54, 14  ;;  %v1508_v59 = vmul.f32 %v3418_v10, %v1501_v55 }
 0x51b   :  { %v3382_v29 = vpop.permute.xlu0 %1557  ;;  %v3386_v32 = vpop.permute.xlu1 %1513  ;;  %vm3685_vm9 = vmand %vm1438_vm0, %vm3960_vm3  ;;  %v1485_v38 = vadd.f32 %v1483_v0, %v1387_v30  ;;  %v1486_v30 = vadd.f32 %v1484_v27, %v1388_v37 }
 0x51c   :  { %v1517_v44 = vsel %vm1515_vm11, %v3386_v32, %v3313_v8  ;;  %v1516_v51 = vsel %vm1515_vm11, %v3313_v8, %v3386_v32  ;;  %vm1683_vm11 = vcmp.lt.s32.totalorder %v2288_v20, 80 }
 0x51d   :  { %v1529_v47 = vmul.f32 %v3429_v61, %v1516_v51 }
 0x51f   :  { %v3420_v19 = vpop.permute.xlu0 %1581  ;;  %v3422_v11 = vpop.permute.xlu1 %1535 }
 0x520   :  { %v1538_v39 = vsel %vm1537_vm4, %v3343_v6, %v3422_v11  ;;  %v1539_v33 = vsel %vm1537_vm4, %v3422_v11, %v3343_v6  ;;  %vm1705_vm4 = vcmp.lt.s32.totalorder %v2288_v20, 79  ;;  %v1523_v6 = vsel %vm1438_vm0, %v1517_v44, 0.0 }
 0x521   :  { %v1546_v11 = vsel %vm3959_vm10, %v1538_v39, 0.0  ;;  %v1547_v60 = vsel %vm3655_vm13, %v1539_v33, 0.0  ;;  %vm3965_vm13 = vcmp.ge.s32.totalorder %v2462_v54, 3  ;;  %v1531_v39 = vadd.f32 %v1529_v47, %v1435_v31 }
 0x522   :  { %vm3720_vm10 = vmand %vm1606_vm5, %vm3965_vm13  ;;  %v1553_v43 = vmul.f32 %v3433_v5, %v1546_v11  ;;  %v1554_v58 = vmul.f32 %v3433_v5, %v1547_v60 }
 0x523   :  { %v3488_v17 = vpop.permute.xlu0 %1607  ;;  %v3490_v28 = vpop.permute.xlu1 %1559 }
 0x524   :  { %v1562_v34 = vsel %vm1561_vm14, %v3382_v29, %v3490_v28  ;;  %v1563_v8 = vsel %vm1561_vm14, %v3490_v28, %v3382_v29  ;;  %vm3707_vm14 = vmand %vm1438_vm0, %vm606_vm2  ;;  %vm1729_vm0 = vcmp.lt.s32.totalorder %v2288_v20, 78  ;;  %v1555_v0 = vadd.f32 %v1553_v43, %v1461_v12 }
 0x525   :  { %v1570_v41 = vsel %vm603_vm7, %v1562_v34, 0.0  ;;  %v1571_v45 = vsel %vm3685_vm9, %v1563_v8, 0.0  ;;  %vm1753_vm9 = vcmp.lt.s32.totalorder %v2288_v20, 77  ;;  %v1556_v63 = vadd.f32 %v1554_v58, %v1462_v48 }
 0x526   :  { %v1577_v62 = vmul.f32 %v3437_v13, %v1570_v41  ;;  %v1578_v44 = vmul.f32 %v3437_v13, %v1571_v45  ;;  %v3984_v45 = vld [vmem:[#allocation12_spill] sm:$0xff] }
 0x527   :  { %v3558_v16 = vpop.permute.xlu0 %1631  ;;  %v3561_v35 = vpop.permute.xlu1 %1583 }
 0x528   :  { %v1586_v32 = vsel %vm1585_vm12, %v3420_v19, %v3561_v35  ;;  %v1587_v28 = vsel %vm1585_vm12, %v3561_v35, %v3420_v19  ;;  %v1530_v35 = vmul.f32 %v3429_v61, %v1523_v6  ;;  %v1510_v61 = vadd.f32 %v1508_v59, %v1412_v14 }
 0x529   :  { %v1594_v7 = vsel %vm605_vm1, %v1586_v32, 0.0  ;;  %vm3968_vm12 = vcmp.ge.s32.totalorder %v2455_v50, 3  ;;  %v1579_v33 = vadd.f32 %v1577_v62, %v1485_v38 }
 0x52a   :  { %v1601_v37 = vmul.f32 %v3441_v15, %v1594_v7  ;;  %v1532_v13 = vadd.f32 %v1530_v35, %v1436_v24 }
 0x52b   :  { %v3610_v52 = vpop.permute.xlu0 %1655  ;;  %v1610_v57 = vpop.permute.xlu1 %1609 }
 0x52c   :  { %v1612_v40 = vsel %vm1611_vm8, %v3488_v17, %v1610_v57  ;;  %v1613_v19 = vsel %vm1611_vm8, %v1610_v57, %v3488_v17  ;;  %v1595_v17 = vsel %vm3707_vm14, %v1587_v28, 0.0  ;;  %v1509_v57 = vadd.f32 %v1507_v42, %v1411_v46  ;;  %v1801_v28 = vld [vmem:[#allocation8 + $0x10] sm:$0xff] }
 0x52d   :  { %v1620_v3 = vsel %vm3968_vm12, %v1612_v40, 0.0  ;;  %v1621_v21 = vsel %vm3720_vm10, %v1613_v19, 0.0  ;;  %vm3969_vm8 = vcmp.ge.s32.totalorder %v2462_v54, 2  ;;  %v1602_v55 = vmul.f32 %v3441_v15, %v1595_v17 }
 0x52e   :  { %vm3751_vm3 = vmand %vm1606_vm5, %vm3969_vm8  ;;  %v1627_v34 = vmul.f32 %v3449_v2, %v1620_v3  ;;  %v1628_v27 = vmul.f32 %v3449_v2, %v1621_v21  ;;  %vm3972_vm14 = vcmp.lt.s32.totalorder %v2462_v54, 15  ;;  %vm3976_vm10 = vcmp.ge.s32.totalorder %v2462_v54, 1  ;;  %v3987_v3 = vld [vmem:[#allocation13_spill] sm:$0xff] }
 0x52f   :  { %v1634_v18 = vpop.permute.xlu1 %1633  ;;  %v3674_v56 = vpop.permute.xlu0 %1679  ;;  %vm3769_vm13 = vmand %vm1606_vm5, %vm3972_vm14  ;;  %v1603_v48 = vadd.f32 %v1601_v37, %v1509_v57  ;;  %v1604_v11 = vadd.f32 %v1602_v55, %v1510_v61  ;;  %vm3979_vm8 = vcmp.lt.s32.totalorder %v2455_v50, 15 }
 0x530   :  { %v1636_v46 = vsel %vm1635_vm15, %v3558_v16, %v1634_v18  ;;  %v1637_v14 = vsel %vm1635_vm15, %v1634_v18, %v3558_v16  ;;  %vm3975_vm15 = vcmp.ge.s32.totalorder %v2455_v50, 2  ;;  %vm3781_vm12 = vmand %vm1606_vm5, %vm3976_vm10  ;;  %v1580_v18 = vadd.f32 %v1578_v44, %v1486_v30 }
 0x531   :  { %v1644_v16 = vsel %vm3975_vm15, %v1636_v46, 0.0  ;;  %v1645_v15 = vsel %vm3751_vm3, %v1637_v14, 0.0  ;;  %v1630_v38 = vadd.f32 %v1628_v27, %v1532_v13 }
 0x532   :  { %v1651_v59 = vmul.f32 %v3453_v1, %v1644_v16  ;;  %v1652_v60 = vmul.f32 %v3453_v1, %v1645_v15 }
 0x533   :  { %v1658_v10 = vpop.permute.xlu1 %1657  ;;  %v1702_v36 = vpop.permute.xlu0 %1701 }
 0x534   :  { %v1660_v31 = vsel %vm1659_vm6, %v3610_v52, %v1658_v10  ;;  %v1661_v24 = vsel %vm1659_vm6, %v1658_v10, %v3610_v52  ;;  %vm3980_vm6 = vcmp.ge.s32.totalorder %v2455_v50, 1  ;;  %v1629_v10 = vadd.f32 %v1627_v34, %v1531_v39 }
 0x535   :  { %v1668_v41 = vsel %vm3980_vm6, %v1660_v31, 0.0  ;;  %v1669_v29 = vsel %vm3781_vm12, %v1661_v24, 0.0  ;;  %v1654_v62 = vadd.f32 %v1652_v60, %v1556_v63 }
 0x536   :  { %v1675_v7 = vmul.f32 %v3984_v45, %v1668_v41  ;;  %v1676_v30 = vmul.f32 %v3984_v45, %v1669_v29  ;;  %v1820_v45 = vld [vmem:[#allocation8 + $0x28] sm:$0xff] }
 0x537   :  { %v1682_v22 = vpop.permute.xlu1 %1681  ;;  %v1726_v9 = vpop.permute.xlu0 %1725 }
 0x538   :  { %v1685_v8 = vsel %vm1683_vm11, %v1682_v22, %v3674_v56  ;;  %v1684_v40 = vsel %vm1683_vm11, %v3674_v56, %v1682_v22  ;;  %v1653_v56 = vadd.f32 %v1651_v59, %v1555_v0  ;;  %vm3839_vm11 = vmand %vm1606_vm5, %vm606_vm2  ;;  %v1678_v39 = vadd.f32 %v1676_v30, %v1580_v18 }
 0x539   :  { %v1691_v19 = vsel %vm1606_vm5, %v1685_v8, 0.0  ;;  %v1697_v21 = vmul.f32 %v3987_v3, %v1684_v40  ;;  %v1821_v40 = vld [vmem:[#allocation8 + $0x30] sm:$0xff] }
 0x53b   :  { %v1704_v12 = vpop.permute.xlu1 %1703  ;;  %v1750_v22 = vpop.permute.xlu0 %1749  ;;  %v1699_v42 = vadd.f32 %v1697_v21, %v1603_v48  ;;  %v1805_v48 = vsub.s32 0, %v2326_v26 }
 0x53c   :  { %v1706_v51 = vsel %vm1705_vm4, %v1702_v36, %v1704_v12  ;;  %v1707_v6 = vsel %vm1705_vm4, %v1704_v12, %v1702_v36  ;;  %vm3981_vm4 = vcmp.lt.s32.totalorder %v2462_v54, 14  ;;  %v1698_v36 = vmul.f32 %v3987_v3, %v1691_v19  ;;  %v1800_v19 = vld [vmem:[#allocation8 + $0x8] sm:$0xff] }
 0x53d   :  { %v1714_v32 = vsel %vm3979_vm8, %v1706_v51, 0.0  ;;  %v1715_v52 = vsel %vm3769_vm13, %v1707_v6, 0.0  ;;  %vm3812_vm3 = vmand %vm1606_vm5, %vm3981_vm4  ;;  %v1677_v54 = vadd.f32 %v1675_v7, %v1579_v33  ;;  %v1822_v7 = vld [vmem:[#allocation8 + $0x38] sm:$0xff] }
 0x53e   :  { %v1721_v47 = vmul.f32 %v3574_v53, %v1714_v32  ;;  %v1722_v1 = vmul.f32 %v3574_v53, %v1715_v52  ;;  %v1700_v16 = vadd.f32 %v1698_v36, %v1604_v11  ;;  %v1825_v11 = vsub.s32 1, %v2326_v26 }
 0x53f   :  { %v1728_v23 = vpop.permute.xlu1 %1727 }
 0x540   :  { %v1730_v35 = vsel %vm1729_vm0, %v1726_v9, %v1728_v23  ;;  %v1731_v43 = vsel %vm1729_vm0, %v1728_v23, %v1726_v9  ;;  %v1723_v44 = vadd.f32 %v1721_v47, %v1629_v10  ;;  %v1724_v37 = vadd.f32 %v1722_v1, %v1630_v38  ;;  %v1802_v10 = vld [vmem:[#allocation8 + $0x18] sm:$0xff]  ;;  %v1799_v1 = vld [vmem:[#allocation8] sm:$0xff] }
 0x541   :  { %v1738_v53 = vsel %vm603_vm7, %v1730_v35, 0.0  ;;  %v1739_v58 = vsel %vm3812_vm3, %v1731_v43, 0.0  ;;  %v1819_v23 = vld [vmem:[#allocation8 + $0x20] sm:$0xff] }
 0x542   :  { %v1745_v17 = vmul.f32 %v3578_v4, %v1738_v53  ;;  %v1746_v57 = vmul.f32 %v3578_v4, %v1739_v58 }
 0x543   :  { %v1752_v5 = vpop.permute.xlu1 %1751 }
 0x544   :  { %v1747_v46 = vadd.f32 %v1745_v17, %v1653_v56  ;;  %v1748_v14 = vadd.f32 %v1746_v57, %v1654_v62  ;;  %v1754_v4 = vsel %vm1753_vm9, %v1750_v22, %v1752_v5  ;;  %v1755_v49 = vsel %vm1753_vm9, %v1752_v5, %v1750_v22 }
 0x545   :  { %v1762_v13 = vsel %vm605_vm1, %v1754_v4, 0.0  ;;  %v1763_v0 = vsel %vm3839_vm11, %v1755_v49, 0.0 }
 0x546   :  { %v1775_v55 = vadd.f32 %v1747_v46, %v1723_v44  ;;  %v1776_v63 = vadd.f32 %v1748_v14, %v1724_v37  ;;  %v1769_v34 = vmul.f32 %v3582_v25, %v1762_v13  ;;  %v1770_v27 = vmul.f32 %v3582_v25, %v1763_v0 }
 0x548   :  { %v1771_v15 = vadd.f32 %v1769_v34, %v1677_v54  ;;  %v1772_v2 = vadd.f32 %v1770_v27, %v1678_v39 }
 0x54a   :  { %v1773_v20 = vadd.f32 %v1771_v15, %v1699_v42  ;;  %v1774_v31 = vadd.f32 %v1772_v2, %v1700_v16 }
 0x54c   :  { %v1777_v33 = vadd.f32 %v1775_v55, %v1773_v20  ;;  %v1778_v24 = vadd.f32 %v1776_v63, %v1774_v31 }
 0x54e   :  { %v1781_v12 = vrot.slane %v1777_v33, 2  ;;  %v1782_v50 = vrot.slane %v1778_v24, 2 }
 0x550   :  { %v1785_v18 = vadd.f32 %v1781_v12, %v1777_v33  ;;  %v1786_v51 = vadd.f32 %v1782_v50, %v1778_v24 }
 0x552   :  { %v1965_v6 = vmul.f32 -1.442695, %v1785_v18  ;;  %v1966_v9 = vmul.f32 -1.442695, %v1786_v51 }
 0x554   :  { %2083 = vpow2.f32 %v1965_v6 }
 0x555   :  { %2085 = vpow2.f32 %v1966_v9 }
 0x55e   :  { %v2084_v8 = vpop.eup %2083 }
 0x55f   :  { %v2086_v32 = vpop.eup %2085  ;;  %v1793_v52 = vadd.f32 1.0, %v2084_v8 }
 0x560   :  { %v1794_v25 = vadd.f32 1.0, %v2086_v32 }
 0x561   :  { %2087 = vrcp.f32 %v1793_v52 }
 0x562   :  { %2089 = vrcp.f32 %v1794_v25 }
 0x56b   :  { %v2088_v59 = vpop.eup %2087 }
 0x56c   :  { %v2090_v60 = vpop.eup %2089  ;;  %v1806_v41 = vrot.slane %v2088_v59, %v1805_v48  ;;  %v1826_v29 = vrot.slane %v2088_v59, %v1825_v11 }
 0x56d   :  { %v1810_v38 = vrot.slane %v2090_v60, %v1805_v48  ;;  %v1830_v47 = vrot.slane %v2090_v60, %v1825_v11 }
 0x56e   :  { %v1811_v35 = vmul.f32 %v1806_v41, %v1799_v1  ;;  %v1813_v43 = vmul.f32 %v1806_v41, %v1801_v28  ;;  %v1831_v30 = vmul.f32 %v1826_v29, %v1819_v23  ;;  %v1833_v26 = vmul.f32 %v1826_v29, %v1821_v40 }
 0x56f   :  { %v1812_v53 = vmul.f32 %v1810_v38, %v1800_v19  ;;  %v1814_v58 = vmul.f32 %v1810_v38, %v1802_v10  ;;  %v1832_v56 = vmul.f32 %v1830_v47, %v1820_v45  ;;  %v1834_v62 = vmul.f32 %v1830_v47, %v1822_v7 }
 0x570   :  { %1815 = vst [vmem:[#allocation8] sm:$0xff] %v1811_v35  ;;  %1817 = vst [vmem:[#allocation8 + $0x10] sm:$0xff] %v1813_v43 }
 0x571   :  { %1835 = vst [vmem:[#allocation8 + $0x20] sm:$0xff] %v1831_v30  ;;  %1837 = vst [vmem:[#allocation8 + $0x30] sm:$0xff] %v1833_v26 }
 0x572   :  { %1816 = vst [vmem:[#allocation8 + $0x8] sm:$0xff] %v1812_v53  ;;  %1818 = vst [vmem:[#allocation8 + $0x18] sm:$0xff] %v1814_v58 }
 0x573   :  { %1836 = vst [vmem:[#allocation8 + $0x28] sm:$0xff] %v1832_v56  ;;  %1838 = vst [vmem:[#allocation8 + $0x38] sm:$0xff] %v1834_v62 }
 0x574   :  { %2137 = shalt.err (!%p2134_p3)
}
 0x575   :  { %s2138_s20 = scalar_lea.hbm %s3876_s4, 1024 }
 0x576   :  { %p2139_p4 = scmp.ne.s32.totalorder %s3876_s4, %s2138_s20  ;;  %p2142_p5 = scmp.lt.u32.totalorder %s2138_s20, %s3876_s4 }
 0x578   :  { %p2144_p6 = pnand %p2142_p5, %p2139_p4 }
 0x57a   :  { %2147 = shalt.err (!%p2144_p6)
}
 0x57b   :  { %1850 = dma.vmem_to_hbm [thread:$0]  %s1845_s16, 1024, %s3876_s4, [#allocation7], %s2156_s29, %s2156_s29, %s2157_s30  }
 0x57c   :  { %2152 = dma.done.wait [#allocation7], 1024  }
 0x57d   :  { %2153 = vsyncadd [#allocation7], 4294966272 }
 0x57e   :  { %1854 = vsyncpa [#allocation6], 1 }
 0x57f   :  { %1855 = vsyncpa [#allocation7], 1 }

</bundles_post_ra>
